<compile_context>
chip_gen: v6e
topology: v6e:2x2x1
jax: 0.10.0
libtpu: 0.0.40
codegen_flags: <defaults>
</compile_context>

<pallas_src>
import jax
import jax.numpy as jnp
import numpy as np
from jax.experimental import pallas as pl
from jax.experimental.pallas import tpu as pltpu

FEAT = 128          # feat_size
H1, H2 = 256, 512
CIN, CH, K = 4, 32, 3
L0 = H2 // CIN      # 128 (length after .view and after the whole conv stack)
LSEG = 256          # per-batch lane segment inside the activation slab (lane-dense)
HALO = 128          # left/right zero halo: shifted loads stay in-bounds, stores aligned
EPS = 1e-5
NEG_SLOPE = 0.2


# ------------------------------ Pallas kernel ------------------------------ #

def _pose_decoder_kernel(feat_ref, w1_ref, b1_ref, g1_ref, be1_ref, w2_ref, b2_ref,
                         ct1_ref, cb1_ref, g2_ref, be2_ref,
                         ct2p_ref, cb2_ref, g3_ref, be3_ref,
                         cw3p_ref, cb3_ref, cw4p_ref, cb4_ref,
                         out_ref, slab_ref):
    B = feat_ref.shape[0]
    W = B * LSEG

    # Zero the slab once: inter-segment gaps / halos ARE the conv-transpose zero padding,
    # so they must be exact zeros.
    slab_ref[...] = jnp.zeros_like(slab_ref)

    # ---- pre-net: Linear -> BN(batch stats) -> [LeakyReLU(True) == identity] -> Linear
    feat = feat_ref[...]
    h = jnp.dot(feat, w1_ref[...], preferred_element_type=jnp.float32) + b1_ref[...]
    mu = jnp.mean(h, axis=0, keepdims=True)
    var = jnp.mean((h - mu) ** 2, axis=0, keepdims=True)
    h = (h - mu) * jax.lax.rsqrt(var + EPS) * g1_ref[...] + be1_ref[...]
    g = jnp.dot(h, w2_ref[...], preferred_element_type=jnp.float32) + b2_ref[...]  # (B,512)

    # .view(B, 4, 128) written straight into the slab: channel c of batch b is a
    # lane-dense (1,128) row stored at an aligned lane offset.
    for b in range(B):
        for c in range(CIN):
            slab_ref[c:c + 1, HALO + b * LSEG: HALO + b * LSEG + L0] = \
                g[b:b + 1, c * L0:(c + 1) * L0]

    def load(off, rows):
        # Full-width shifted view of the slab; off in {-2..2} (static). Misaligned
        # loads ride the lane-rotate path; all stores stay 128-aligned.
        return slab_ref[0:rows, HALO + off: HALO + off + W]

    lane = jax.lax.broadcasted_iota(jnp.int32, (CH, W), 1)
    local = jnp.bitwise_and(lane, LSEG - 1)          # lane index within the batch segment

    def bn_lrelu_mask(y, gamma, beta, l_valid):
        # BatchNorm1d (training mode, biased var) over (batch, length) per channel,
        # via masked reductions over the slab, then LeakyReLU(0.2), then re-zero the
        # padding columns (they are the next conv-transpose's zero padding).
        valid = local < l_valid
        inv_n = 1.0 / float(B * l_valid)
        mu_c = jnp.sum(jnp.where(valid, y, 0.0), axis=1, keepdims=True) * inv_n
        d = y - mu_c
        var_c = jnp.sum(jnp.where(valid, d * d, 0.0), axis=1, keepdims=True) * inv_n
        yb = d * jax.lax.rsqrt(var_c + EPS) * gamma + beta
        ya = jnp.where(yb >= 0, yb, NEG_SLOPE * yb)
        return jnp.where(valid, ya, 0.0)

    # ---- ConvTranspose1d(4, 32, 3): gather form, taps read x[t - k]  (contraction 4)
    y = jnp.dot(ct1_ref[0], load(0, CIN), preferred_element_type=jnp.float32)
    y += jnp.dot(ct1_ref[1], load(-1, CIN), preferred_element_type=jnp.float32)
    y += jnp.dot(ct1_ref[2], load(-2, CIN), preferred_element_type=jnp.float32)
    y = bn_lrelu_mask(y + cb1_ref[...], g2_ref[...], be2_ref[...], L0 + 2)   # valid 130
    slab_ref[0:CH, HALO:HALO + W] = y

    # ---- ConvTranspose1d(32, 32, 3): im2col -> one matmul, contraction 96
    xcat = jnp.concatenate([load(0, CH), load(-1, CH), load(-2, CH)], axis=0)   # (96, W)
    y = jnp.dot(ct2p_ref[...], xcat, preferred_element_type=jnp.float32) + cb2_ref[...]
    y = bn_lrelu_mask(y, g3_ref[...], be3_ref[...], L0 + 4)                     # valid 132
    slab_ref[0:CH, HALO:HALO + W] = y

    # ---- Conv1d(32, 32, 3): taps read x[t + k]
    xcat = jnp.concatenate([load(0, CH), load(1, CH), load(2, CH)], axis=0)
    y = jnp.dot(cw3p_ref[...], xcat, preferred_element_type=jnp.float32) + cb3_ref[...]
    slab_ref[0:CH, HALO:HALO + W] = y                                           # valid 130

    # ---- Conv1d(32, dim, 3)
    xcat = jnp.concatenate([load(0, CH), load(1, CH), load(2, CH)], axis=0)
    y = jnp.dot(cw4p_ref[...], xcat, preferred_element_type=jnp.float32) + cb4_ref[...]

    # Copy the valid 128 columns of each segment to the (B, dim, 128) output; the
    # (B,128,dim) transpose stays outside the kernel (lane-dense stores here).
    for b in range(B):
        out_ref[b] = y[:, b * LSEG: b * LSEG + L0]


# --------------------------------- Wrapper --------------------------------- #

def pose_decoder_conv(feat, params, dim):
    B = feat.shape[0]
    W = B * LSEG
    vmem = pl.BlockSpec(memory_space=pltpu.MemorySpace.VMEM)

    # Glue: pack conv weights for the in-kernel im2col.  Column order k*C_in + c matches
    # the kernel's concat order [offset 0, -1, -2] (conv-T) / [0, +1, +2] (conv).
    ct2p = jnp.transpose(params["ct2"], (1, 0, 2)).reshape(CH, K * CH)
    cw3p = jnp.transpose(params["cw3"], (1, 0, 2)).reshape(CH, K * CH)
    cw4p = jnp.transpose(params["cw4"], (1, 0, 2)).reshape(dim, K * CH)

    flops = (2 * B * (FEAT * H1 + H1 * H2)
             + 2 * B * ((L0 + 2) * CH * CIN * K + (L0 + 4) * CH * CH * K
                        + (L0 + 2) * CH * CH * K + L0 * dim * CH * K))
    bytes_accessed = 4 * (B * FEAT + FEAT * H1 + 4 * H1 + H1 * H2 + 2 * H2
                          + K * CH * (CIN + 2 * CH + dim) + 8 * CH + 2 * dim
                          + B * dim * L0)
    cost = pl.CostEstimate(flops=flops, transcendentals=H1 + 2 * CH,
                           bytes_accessed=bytes_accessed)

    y = pl.pallas_call(
        _pose_decoder_kernel,
        out_shape=jax.ShapeDtypeStruct((B, dim, L0), jnp.float32),
        in_specs=[vmem] * 19,
        out_specs=vmem,
        scratch_shapes=[pltpu.VMEM((CH, 2 * HALO + W), jnp.float32)],
        cost_estimate=cost,
    )(feat, params["w1"], params["b1"], params["g1"], params["be1"],
      params["w2"], params["b2"],
      params["ct1"], params["cb1"], params["g2"], params["be2"],
      ct2p, params["cb2"], params["g3"], params["be3"],
      cw3p, params["cb3"], cw4p, params["cb4"])

    return jnp.transpose(y, (0, 2, 1))              # == torch .transpose(1, 2)  (XLA glue)


# --------------------------- Deterministic params -------------------------- #

def init_params(key, dim):
    ks = jax.random.split(key, 12)

    def u(k, shape, fan_in):
        b = 1.0 / np.sqrt(fan_in)
        return jax.random.uniform(k, shape, jnp.float32, -b, b)

    p = {}
    # pre_net
    p["w1"] = u(ks[0], (FEAT, H1), FEAT)            # torch Linear weight (256,128), stored (in,out)
    p["b1"] = u(ks[1], (1, H1), FEAT)
    p["g1"] = jnp.ones((1, H1), jnp.float32)
    p["be1"] = jnp.zeros((1, H1), jnp.float32)
    p["w2"] = u(ks[2], (H1, H2), H1)
    p["b2"] = u(ks[3], (1, H2), H1)
    # ConvTranspose1d weights in torch layout (Cin, Cout, K) -> per-tap (K, Cout, Cin)
    wt1 = u(ks[4], (CIN, CH, K), CIN * K)
    p["ct1"] = jnp.transpose(wt1, (2, 1, 0))
    p["cb1"] = u(ks[5], (CH, 1), CIN * K)
    p["g2"] = jnp.ones((CH, 1), jnp.float32)
    p["be2"] = jnp.zeros((CH, 1), jnp.float32)
    wt2 = u(ks[6], (CH, CH, K), CH * K)
    p["ct2"] = jnp.transpose(wt2, (2, 1, 0))
    p["cb2"] = u(ks[7], (CH, 1), CH * K)
    p["g3"] = jnp.ones((CH, 1), jnp.float32)
    p["be3"] = jnp.zeros((CH, 1), jnp.float32)
    # Conv1d weights in torch layout (Cout, Cin, K) -> per-tap (K, Cout, Cin)
    w3 = u(ks[8], (CH, CH, K), CH * K)
    p["cw3"] = jnp.transpose(w3, (2, 0, 1))
    p["cb3"] = u(ks[9], (CH, 1), CH * K)
    w4 = u(ks[10], (dim, CH, K), CH * K)
    p["cw4"] = jnp.transpose(w4, (2, 0, 1))
    p["cb4"] = u(ks[11], (dim, 1), CH * K)
    return p


# ----------------------------- Pure-JAX reference --------------------------- #

def reference(feat, params, dim):
    def bn(x, g, be, axes):
        mu = jnp.mean(x, axis=axes, keepdims=True)
        var = jnp.mean((x - mu) ** 2, axis=axes, keepdims=True)
        return (x - mu) * jax.lax.rsqrt(var + EPS) * g + be

    def lrelu(v):
        return jnp.where(v >= 0, v, NEG_SLOPE * v)

    h = feat @ params["w1"] + params["b1"]
    h = bn(h, params["g1"], params["be1"], axes=(0,))
    h = h @ params["w2"] + params["b2"]
    x = h.reshape(feat.shape[0], CIN, L0)

    def conv_t(x, taps, bias):                       # scatter form
        B_, _, L = x.shape
        Co = taps.shape[1]
        y = jnp.zeros((B_, Co, L + K - 1), jnp.float32)
        for k in range(K):
            y = y.at[:, :, k:k + L].add(jnp.einsum("oc,bcl->bol", taps[k], x))
        return y + bias[None]

    def conv(x, taps, bias):                         # gather form
        Lout = x.shape[2] - K + 1
        y = sum(jnp.einsum("oc,bcl->bol", taps[k], x[:, :, k:k + Lout]) for k in range(K))
        return y + bias[None]

    y = conv_t(x, params["ct1"], params["cb1"])
    y = lrelu(bn(y, params["g2"][None], params["be2"][None], axes=(0, 2)))
    y = conv_t(y, params["ct2"], params["cb2"])
    y = lrelu(bn(y, params["g3"][None], params["be3"][None], axes=(0, 2)))
    y = conv(y, params["cw3"], params["cb3"])
    y = conv(y, params["cw4"], params["cb4"])
    return jnp.transpose(y, (0, 2, 1))


if __name__ == "__main__":
    key = jax.random.PRNGKey(0)
    kp, kf = jax.random.split(key)
    B, dim = 2, 8                                    # PoseDecoderConv(length=128, dim=8)
    params = init_params(kp, dim)
    feat = jax.random.normal(kf, (B, FEAT), jnp.float32)

    out = jax.block_until_ready(pose_decoder_conv(feat, params, dim))
    assert out.shape == (B, L0, dim), out.shape

    ref = reference(feat, params, dim)
    assert jnp.allclose(out, ref, atol=5e-2, rtol=5e-2), float(jnp.max(jnp.abs(out - ref)))
    print("KERNEL_OK")
</pallas_src>

<mosaic_0001>
module attributes {stable_mosaic.version = 11 : i64} {
  func.func @_pose_decoder_kernel(%arg0: memref<2x128xf32, #tpu.memory_space<vmem>>, %arg1: memref<128x256xf32, #tpu.memory_space<vmem>>, %arg2: memref<1x256xf32, #tpu.memory_space<vmem>>, %arg3: memref<1x256xf32, #tpu.memory_space<vmem>>, %arg4: memref<1x256xf32, #tpu.memory_space<vmem>>, %arg5: memref<256x512xf32, #tpu.memory_space<vmem>>, %arg6: memref<1x512xf32, #tpu.memory_space<vmem>>, %arg7: memref<3x32x4xf32, #tpu.memory_space<vmem>>, %arg8: memref<32x1xf32, #tpu.memory_space<vmem>>, %arg9: memref<32x1xf32, #tpu.memory_space<vmem>>, %arg10: memref<32x1xf32, #tpu.memory_space<vmem>>, %arg11: memref<32x96xf32, #tpu.memory_space<vmem>>, %arg12: memref<32x1xf32, #tpu.memory_space<vmem>>, %arg13: memref<32x1xf32, #tpu.memory_space<vmem>>, %arg14: memref<32x1xf32, #tpu.memory_space<vmem>>, %arg15: memref<32x96xf32, #tpu.memory_space<vmem>>, %arg16: memref<32x1xf32, #tpu.memory_space<vmem>>, %arg17: memref<8x96xf32, #tpu.memory_space<vmem>>, %arg18: memref<8x1xf32, #tpu.memory_space<vmem>>, %arg19: memref<2x8x128xf32, #tpu.memory_space<vmem>>, %arg20: memref<32x768xf32, #tpu.memory_space<vmem>>) attributes {dimension_semantics = [], scalar_prefetch = 0 : i64, scratch_operands = 1 : i64, tpu.core_type = #tpu.core_type<tc>} {
    %cst = arith.constant 0.000000e+00 : f32
    %0 = vector.broadcast %cst : f32 to vector<32x768xf32>
    %c0 = arith.constant 0 : index
    %c0_0 = arith.constant 0 : index
    %1 = vector.load %arg20[%c0, %c0_0] : memref<32x768xf32, #tpu.memory_space<vmem>>, vector<32x768xf32>
    tpu.vector_store %arg20[%c0, %c0_0], %0 {strides = array<i32>} : memref<32x768xf32, #tpu.memory_space<vmem>>, vector<32x768xf32>,
    %c0_1 = arith.constant 0 : index
    %c0_2 = arith.constant 0 : index
    %2 = vector.load %arg0[%c0_1, %c0_2] : memref<2x128xf32, #tpu.memory_space<vmem>>, vector<2x128xf32>
    %c0_3 = arith.constant 0 : index
    %c0_4 = arith.constant 0 : index
    %3 = vector.load %arg1[%c0_3, %c0_4] : memref<128x256xf32, #tpu.memory_space<vmem>>, vector<128x256xf32>
    %cst_5 = arith.constant dense<0.000000e+00> : vector<2x256xf32>
    %4 = tpu.matmul %2, %3, %cst_5 {dimension_numbers = #tpu.dot_dimension_numbers<[1], [0], [0], [1], [0, 0, 1, 1], [], []>} : vector<2x128xf32>, vector<128x256xf32>, vector<2x256xf32> -> vector<2x256xf32>
    %c0_6 = arith.constant 0 : index
    %c0_7 = arith.constant 0 : index
    %5 = vector.load %arg2[%c0_6, %c0_7] : memref<1x256xf32, #tpu.memory_space<vmem>>, vector<1x256xf32>
    %6 = vector.broadcast %5 : vector<1x256xf32> to vector<2x256xf32>
    %7 = arith.addf %4, %6 : vector<2x256xf32>
    %cst_8 = arith.constant dense<0.000000e+00> : vector<256xf32>
    %8 = vector.multi_reduction <add>, %7, %cst_8 [0] : vector<2x256xf32> to vector<256xf32>
    %9 = vector.shape_cast %8 : vector<256xf32> to vector<1x256xf32>
    %cst_9 = arith.constant 2.000000e+00 : f32
    %10 = vector.broadcast %cst_9 : f32 to vector<1x256xf32>
    %11 = arith.divf %9, %10 : vector<1x256xf32>
    %12 = vector.broadcast %11 : vector<1x256xf32> to vector<2x256xf32>
    %13 = arith.subf %7, %12 : vector<2x256xf32>
    %14 = arith.mulf %13, %13 : vector<2x256xf32>
    %cst_10 = arith.constant dense<0.000000e+00> : vector<256xf32>
    %15 = vector.multi_reduction <add>, %14, %cst_10 [0] : vector<2x256xf32> to vector<256xf32>
    %16 = vector.shape_cast %15 : vector<256xf32> to vector<1x256xf32>
    %cst_11 = arith.constant 2.000000e+00 : f32
    %17 = vector.broadcast %cst_11 : f32 to vector<1x256xf32>
    %18 = arith.divf %16, %17 : vector<1x256xf32>
    %19 = vector.broadcast %11 : vector<1x256xf32> to vector<2x256xf32>
    %20 = arith.subf %7, %19 : vector<2x256xf32>
    %cst_12 = arith.constant 9.99999974E-6 : f32
    %21 = vector.broadcast %cst_12 : f32 to vector<1x256xf32>
    %22 = arith.addf %18, %21 : vector<1x256xf32>
    %23 = math.rsqrt %22 : vector<1x256xf32>
    %24 = vector.broadcast %23 : vector<1x256xf32> to vector<2x256xf32>
    %25 = arith.mulf %20, %24 : vector<2x256xf32>
    %c0_13 = arith.constant 0 : index
    %c0_14 = arith.constant 0 : index
    %26 = vector.load %arg3[%c0_13, %c0_14] : memref<1x256xf32, #tpu.memory_space<vmem>>, vector<1x256xf32>
    %27 = vector.broadcast %26 : vector<1x256xf32> to vector<2x256xf32>
    %28 = arith.mulf %25, %27 : vector<2x256xf32>
    %c0_15 = arith.constant 0 : index
    %c0_16 = arith.constant 0 : index
    %29 = vector.load %arg4[%c0_15, %c0_16] : memref<1x256xf32, #tpu.memory_space<vmem>>, vector<1x256xf32>
    %30 = vector.broadcast %29 : vector<1x256xf32> to vector<2x256xf32>
    %31 = arith.addf %28, %30 : vector<2x256xf32>
    %c0_17 = arith.constant 0 : index
    %c0_18 = arith.constant 0 : index
    %32 = vector.load %arg5[%c0_17, %c0_18] : memref<256x512xf32, #tpu.memory_space<vmem>>, vector<256x512xf32>
    %cst_19 = arith.constant dense<0.000000e+00> : vector<2x512xf32>
    %33 = tpu.matmul %31, %32, %cst_19 {dimension_numbers = #tpu.dot_dimension_numbers<[1], [0], [0], [1], [0, 0, 1, 1], [], []>} : vector<2x256xf32>, vector<256x512xf32>, vector<2x512xf32> -> vector<2x512xf32>
    %c0_20 = arith.constant 0 : index
    %c0_21 = arith.constant 0 : index
    %34 = vector.load %arg6[%c0_20, %c0_21] : memref<1x512xf32, #tpu.memory_space<vmem>>, vector<1x512xf32>
    %35 = vector.broadcast %34 : vector<1x512xf32> to vector<2x512xf32>
    %36 = arith.addf %33, %35 : vector<2x512xf32>
    %37 = vector.extract_strided_slice %36 {offsets = [0, 0], sizes = [1, 128], strides = [1, 1]} : vector<2x512xf32> to vector<1x128xf32>
    %c0_22 = arith.constant 0 : index
    %c128 = arith.constant 128 : index
    %38 = vector.load %arg20[%c0_22, %c128] : memref<32x768xf32, #tpu.memory_space<vmem>>, vector<1x128xf32>
    tpu.vector_store %arg20[%c0_22, %c128], %37 {strides = array<i32>} : memref<32x768xf32, #tpu.memory_space<vmem>>, vector<1x128xf32>,
    %39 = vector.extract_strided_slice %36 {offsets = [0, 128], sizes = [1, 128], strides = [1, 1]} : vector<2x512xf32> to vector<1x128xf32>
    %c1 = arith.constant 1 : index
    %c128_23 = arith.constant 128 : index
    %40 = vector.load %arg20[%c1, %c128_23] : memref<32x768xf32, #tpu.memory_space<vmem>>, vector<1x128xf32>
    tpu.vector_store %arg20[%c1, %c128_23], %39 {strides = array<i32>} : memref<32x768xf32, #tpu.memory_space<vmem>>, vector<1x128xf32>,
    %41 = vector.extract_strided_slice %36 {offsets = [0, 256], sizes = [1, 128], strides = [1, 1]} : vector<2x512xf32> to vector<1x128xf32>
    %c2 = arith.constant 2 : index
    %c128_24 = arith.constant 128 : index
    %42 = vector.load %arg20[%c2, %c128_24] : memref<32x768xf32, #tpu.memory_space<vmem>>, vector<1x128xf32>
    tpu.vector_store %arg20[%c2, %c128_24], %41 {strides = array<i32>} : memref<32x768xf32, #tpu.memory_space<vmem>>, vector<1x128xf32>,
    %43 = vector.extract_strided_slice %36 {offsets = [0, 384], sizes = [1, 128], strides = [1, 1]} : vector<2x512xf32> to vector<1x128xf32>
    %c3 = arith.constant 3 : index
    %c128_25 = arith.constant 128 : index
    %44 = vector.load %arg20[%c3, %c128_25] : memref<32x768xf32, #tpu.memory_space<vmem>>, vector<1x128xf32>
    tpu.vector_store %arg20[%c3, %c128_25], %43 {strides = array<i32>} : memref<32x768xf32, #tpu.memory_space<vmem>>, vector<1x128xf32>,
    %45 = vector.extract_strided_slice %36 {offsets = [1, 0], sizes = [1, 128], strides = [1, 1]} : vector<2x512xf32> to vector<1x128xf32>
    %c0_26 = arith.constant 0 : index
    %c384 = arith.constant 384 : index
    %46 = vector.load %arg20[%c0_26, %c384] : memref<32x768xf32, #tpu.memory_space<vmem>>, vector<1x128xf32>
    tpu.vector_store %arg20[%c0_26, %c384], %45 {strides = array<i32>} : memref<32x768xf32, #tpu.memory_space<vmem>>, vector<1x128xf32>,
    %47 = vector.extract_strided_slice %36 {offsets = [1, 128], sizes = [1, 128], strides = [1, 1]} : vector<2x512xf32> to vector<1x128xf32>
    %c1_27 = arith.constant 1 : index
    %c384_28 = arith.constant 384 : index
    %48 = vector.load %arg20[%c1_27, %c384_28] : memref<32x768xf32, #tpu.memory_space<vmem>>, vector<1x128xf32>
    tpu.vector_store %arg20[%c1_27, %c384_28], %47 {strides = array<i32>} : memref<32x768xf32, #tpu.memory_space<vmem>>, vector<1x128xf32>,
    %49 = vector.extract_strided_slice %36 {offsets = [1, 256], sizes = [1, 128], strides = [1, 1]} : vector<2x512xf32> to vector<1x128xf32>
    %c2_29 = arith.constant 2 : index
    %c384_30 = arith.constant 384 : index
    %50 = vector.load %arg20[%c2_29, %c384_30] : memref<32x768xf32, #tpu.memory_space<vmem>>, vector<1x128xf32>
    tpu.vector_store %arg20[%c2_29, %c384_30], %49 {strides = array<i32>} : memref<32x768xf32, #tpu.memory_space<vmem>>, vector<1x128xf32>,
    %51 = vector.extract_strided_slice %36 {offsets = [1, 384], sizes = [1, 128], strides = [1, 1]} : vector<2x512xf32> to vector<1x128xf32>
    %c3_31 = arith.constant 3 : index
    %c384_32 = arith.constant 384 : index
    %52 = vector.load %arg20[%c3_31, %c384_32] : memref<32x768xf32, #tpu.memory_space<vmem>>, vector<1x128xf32>
    tpu.vector_store %arg20[%c3_31, %c384_32], %51 {strides = array<i32>} : memref<32x768xf32, #tpu.memory_space<vmem>>, vector<1x128xf32>,
    %53 = tpu.iota {dimensions = array<i32: 1>} : vector<32x512xi32>
    %c255_i32 = arith.constant 255 : i32
    %54 = vector.broadcast %c255_i32 : i32 to vector<32x512xi32>
    %55 = arith.andi %53, %54 : vector<32x512xi32>
    %c0_33 = arith.constant 0 : index
    %c0_34 = arith.constant 0 : index
    %c0_35 = arith.constant 0 : index
    %56 = vector.load %arg7[%c0_33, %c0_34, %c0_35] : memref<3x32x4xf32, #tpu.memory_space<vmem>>, vector<1x32x4xf32>
    %57 = vector.shape_cast %56 : vector<1x32x4xf32> to vector<32x4xf32>
    %c0_36 = arith.constant 0 : index
    %c128_37 = arith.constant 128 : index
    %58 = vector.load %arg20[%c0_36, %c128_37] : memref<32x768xf32, #tpu.memory_space<vmem>>, vector<4x512xf32>
    %cst_38 = arith.constant dense<0.000000e+00> : vector<32x512xf32>
    %59 = tpu.matmul %57, %58, %cst_38 {dimension_numbers = #tpu.dot_dimension_numbers<[1], [0], [0], [1], [0, 0, 1, 1], [], []>} : vector<32x4xf32>, vector<4x512xf32>, vector<32x512xf32> -> vector<32x512xf32>
    %c1_39 = arith.constant 1 : index
    %c0_40 = arith.constant 0 : index
    %c0_41 = arith.constant 0 : index
    %60 = vector.load %arg7[%c1_39, %c0_40, %c0_41] : memref<3x32x4xf32, #tpu.memory_space<vmem>>, vector<1x32x4xf32>
    %61 = vector.shape_cast %60 : vector<1x32x4xf32> to vector<32x4xf32>
    %c0_42 = arith.constant 0 : index
    %c127 = arith.constant 127 : index
    %62 = vector.load %arg20[%c0_42, %c127] : memref<32x768xf32, #tpu.memory_space<vmem>>, vector<4x512xf32>
    %cst_43 = arith.constant dense<0.000000e+00> : vector<32x512xf32>
    %63 = tpu.matmul %61, %62, %cst_43 {dimension_numbers = #tpu.dot_dimension_numbers<[1], [0], [0], [1], [0, 0, 1, 1], [], []>} : vector<32x4xf32>, vector<4x512xf32>, vector<32x512xf32> -> vector<32x512xf32>
    %64 = arith.addf %59, %63 : vector<32x512xf32>
    %c2_44 = arith.constant 2 : index
    %c0_45 = arith.constant 0 : index
    %c0_46 = arith.constant 0 : index
    %65 = vector.load %arg7[%c2_44, %c0_45, %c0_46] : memref<3x32x4xf32, #tpu.memory_space<vmem>>, vector<1x32x4xf32>
    %66 = vector.shape_cast %65 : vector<1x32x4xf32> to vector<32x4xf32>
    %c0_47 = arith.constant 0 : index
    %c126 = arith.constant 126 : index
    %67 = vector.load %arg20[%c0_47, %c126] : memref<32x768xf32, #tpu.memory_space<vmem>>, vector<4x512xf32>
    %cst_48 = arith.constant dense<0.000000e+00> : vector<32x512xf32>
    %68 = tpu.matmul %66, %67, %cst_48 {dimension_numbers = #tpu.dot_dimension_numbers<[1], [0], [0], [1], [0, 0, 1, 1], [], []>} : vector<32x4xf32>, vector<4x512xf32>, vector<32x512xf32> -> vector<32x512xf32>
    %69 = arith.addf %64, %68 : vector<32x512xf32>
    %c0_49 = arith.constant 0 : index
    %c0_50 = arith.constant 0 : index
    %70 = vector.load %arg8[%c0_49, %c0_50] : memref<32x1xf32, #tpu.memory_space<vmem>>, vector<32x1xf32>
    %71 = vector.broadcast %70 : vector<32x1xf32> to vector<32x512xf32>
    %72 = arith.addf %69, %71 : vector<32x512xf32>
    %c0_51 = arith.constant 0 : index
    %c0_52 = arith.constant 0 : index
    %73 = vector.load %arg9[%c0_51, %c0_52] : memref<32x1xf32, #tpu.memory_space<vmem>>, vector<32x1xf32>
    %c0_53 = arith.constant 0 : index
    %c0_54 = arith.constant 0 : index
    %74 = vector.load %arg10[%c0_53, %c0_54] : memref<32x1xf32, #tpu.memory_space<vmem>>, vector<32x1xf32>
    %c130_i32 = arith.constant 130 : i32
    %75 = vector.broadcast %c130_i32 : i32 to vector<32x512xi32>
    %76 = arith.cmpi slt, %55, %75 : vector<32x512xi32>
    %cst_55 = arith.constant 0.000000e+00 : f32
    %77 = vector.broadcast %cst_55 : f32 to vector<32x512xf32>
    %78 = arith.select %76, %72, %77 : vector<32x512xi1>, vector<32x512xf32>
    %cst_56 = arith.constant dense<0.000000e+00> : vector<32xf32>
    %79 = vector.multi_reduction <add>, %78, %cst_56 [1] : vector<32x512xf32> to vector<32xf32>
    %80 = vector.shape_cast %79 : vector<32xf32> to vector<32x1xf32>
    %cst_57 = arith.constant 0.00384615385 : f32
    %81 = vector.broadcast %cst_57 : f32 to vector<32x1xf32>
    %82 = arith.mulf %80, %81 : vector<32x1xf32>
    %83 = vector.broadcast %82 : vector<32x1xf32> to vector<32x512xf32>
    %84 = arith.subf %72, %83 : vector<32x512xf32>
    %85 = arith.mulf %84, %84 : vector<32x512xf32>
    %cst_58 = arith.constant 0.000000e+00 : f32
    %86 = vector.broadcast %cst_58 : f32 to vector<32x512xf32>
    %87 = arith.select %76, %85, %86 : vector<32x512xi1>, vector<32x512xf32>
    %cst_59 = arith.constant dense<0.000000e+00> : vector<32xf32>
    %88 = vector.multi_reduction <add>, %87, %cst_59 [1] : vector<32x512xf32> to vector<32xf32>
    %89 = vector.shape_cast %88 : vector<32xf32> to vector<32x1xf32>
    %cst_60 = arith.constant 0.00384615385 : f32
    %90 = vector.broadcast %cst_60 : f32 to vector<32x1xf32>
    %91 = arith.mulf %89, %90 : vector<32x1xf32>
    %cst_61 = arith.constant 9.99999974E-6 : f32
    %92 = vector.broadcast %cst_61 : f32 to vector<32x1xf32>
    %93 = arith.addf %91, %92 : vector<32x1xf32>
    %94 = math.rsqrt %93 : vector<32x1xf32>
    %95 = vector.broadcast %94 : vector<32x1xf32> to vector<32x512xf32>
    %96 = arith.mulf %84, %95 : vector<32x512xf32>
    %97 = vector.broadcast %73 : vector<32x1xf32> to vector<32x512xf32>
    %98 = arith.mulf %96, %97 : vector<32x512xf32>
    %99 = vector.broadcast %74 : vector<32x1xf32> to vector<32x512xf32>
    %100 = arith.addf %98, %99 : vector<32x512xf32>
    %cst_62 = arith.constant 0.000000e+00 : f32
    %101 = vector.broadcast %cst_62 : f32 to vector<32x512xf32>
    %102 = arith.cmpf oge, %100, %101 : vector<32x512xf32>
    %cst_63 = arith.constant 2.000000e-01 : f32
    %103 = vector.broadcast %cst_63 : f32 to vector<32x512xf32>
    %104 = arith.mulf %103, %100 : vector<32x512xf32>
    %105 = arith.select %102, %100, %104 : vector<32x512xi1>, vector<32x512xf32>
    %cst_64 = arith.constant 0.000000e+00 : f32
    %106 = vector.broadcast %cst_64 : f32 to vector<32x512xf32>
    %107 = arith.select %76, %105, %106 : vector<32x512xi1>, vector<32x512xf32>
    %c0_65 = arith.constant 0 : index
    %c128_66 = arith.constant 128 : index
    %108 = vector.load %arg20[%c0_65, %c128_66] : memref<32x768xf32, #tpu.memory_space<vmem>>, vector<32x512xf32>
    tpu.vector_store %arg20[%c0_65, %c128_66], %107 {strides = array<i32>} : memref<32x768xf32, #tpu.memory_space<vmem>>, vector<32x512xf32>,
    %c0_67 = arith.constant 0 : index
    %c128_68 = arith.constant 128 : index
    %109 = vector.load %arg20[%c0_67, %c128_68] : memref<32x768xf32, #tpu.memory_space<vmem>>, vector<32x512xf32>
    %c0_69 = arith.constant 0 : index
    %c127_70 = arith.constant 127 : index
    %110 = vector.load %arg20[%c0_69, %c127_70] : memref<32x768xf32, #tpu.memory_space<vmem>>, vector<32x512xf32>
    %c0_71 = arith.constant 0 : index
    %c126_72 = arith.constant 126 : index
    %111 = vector.load %arg20[%c0_71, %c126_72] : memref<32x768xf32, #tpu.memory_space<vmem>>, vector<32x512xf32>
    %112 = tpu.concatenate %109, %110, %111 in 0 : vector<32x512xf32>, vector<32x512xf32>, vector<32x512xf32> -> vector<96x512xf32>
    %c0_73 = arith.constant 0 : index
    %c0_74 = arith.constant 0 : index
    %113 = vector.load %arg11[%c0_73, %c0_74] : memref<32x96xf32, #tpu.memory_space<vmem>>, vector<32x96xf32>
    %cst_75 = arith.constant dense<0.000000e+00> : vector<32x512xf32>
    %114 = tpu.matmul %113, %112, %cst_75 {dimension_numbers = #tpu.dot_dimension_numbers<[1], [0], [0], [1], [0, 0, 1, 1], [], []>} : vector<32x96xf32>, vector<96x512xf32>, vector<32x512xf32> -> vector<32x512xf32>
    %c0_76 = arith.constant 0 : index
    %c0_77 = arith.constant 0 : index
    %115 = vector.load %arg12[%c0_76, %c0_77] : memref<32x1xf32, #tpu.memory_space<vmem>>, vector<32x1xf32>
    %116 = vector.broadcast %115 : vector<32x1xf32> to vector<32x512xf32>
    %117 = arith.addf %114, %116 : vector<32x512xf32>
    %c0_78 = arith.constant 0 : index
    %c0_79 = arith.constant 0 : index
    %118 = vector.load %arg13[%c0_78, %c0_79] : memref<32x1xf32, #tpu.memory_space<vmem>>, vector<32x1xf32>
    %c0_80 = arith.constant 0 : index
    %c0_81 = arith.constant 0 : index
    %119 = vector.load %arg14[%c0_80, %c0_81] : memref<32x1xf32, #tpu.memory_space<vmem>>, vector<32x1xf32>
    %c132_i32 = arith.constant 132 : i32
    %120 = vector.broadcast %c132_i32 : i32 to vector<32x512xi32>
    %121 = arith.cmpi slt, %55, %120 : vector<32x512xi32>
    %cst_82 = arith.constant 0.000000e+00 : f32
    %122 = vector.broadcast %cst_82 : f32 to vector<32x512xf32>
    %123 = arith.select %121, %117, %122 : vector<32x512xi1>, vector<32x512xf32>
    %cst_83 = arith.constant dense<0.000000e+00> : vector<32xf32>
    %124 = vector.multi_reduction <add>, %123, %cst_83 [1] : vector<32x512xf32> to vector<32xf32>
    %125 = vector.shape_cast %124 : vector<32xf32> to vector<32x1xf32>
    %cst_84 = arith.constant 0.0037878789 : f32
    %126 = vector.broadcast %cst_84 : f32 to vector<32x1xf32>
    %127 = arith.mulf %125, %126 : vector<32x1xf32>
    %128 = vector.broadcast %127 : vector<32x1xf32> to vector<32x512xf32>
    %129 = arith.subf %117, %128 : vector<32x512xf32>
    %130 = arith.mulf %129, %129 : vector<32x512xf32>
    %cst_85 = arith.constant 0.000000e+00 : f32
    %131 = vector.broadcast %cst_85 : f32 to vector<32x512xf32>
    %132 = arith.select %121, %130, %131 : vector<32x512xi1>, vector<32x512xf32>
    %cst_86 = arith.constant dense<0.000000e+00> : vector<32xf32>
    %133 = vector.multi_reduction <add>, %132, %cst_86 [1] : vector<32x512xf32> to vector<32xf32>
    %134 = vector.shape_cast %133 : vector<32xf32> to vector<32x1xf32>
    %cst_87 = arith.constant 0.0037878789 : f32
    %135 = vector.broadcast %cst_87 : f32 to vector<32x1xf32>
    %136 = arith.mulf %134, %135 : vector<32x1xf32>
    %cst_88 = arith.constant 9.99999974E-6 : f32
    %137 = vector.broadcast %cst_88 : f32 to vector<32x1xf32>
    %138 = arith.addf %136, %137 : vector<32x1xf32>
    %139 = math.rsqrt %138 : vector<32x1xf32>
    %140 = vector.broadcast %139 : vector<32x1xf32> to vector<32x512xf32>
    %141 = arith.mulf %129, %140 : vector<32x512xf32>
    %142 = vector.broadcast %118 : vector<32x1xf32> to vector<32x512xf32>
    %143 = arith.mulf %141, %142 : vector<32x512xf32>
    %144 = vector.broadcast %119 : vector<32x1xf32> to vector<32x512xf32>
    %145 = arith.addf %143, %144 : vector<32x512xf32>
    %cst_89 = arith.constant 0.000000e+00 : f32
    %146 = vector.broadcast %cst_89 : f32 to vector<32x512xf32>
    %147 = arith.cmpf oge, %145, %146 : vector<32x512xf32>
    %cst_90 = arith.constant 2.000000e-01 : f32
    %148 = vector.broadcast %cst_90 : f32 to vector<32x512xf32>
    %149 = arith.mulf %148, %145 : vector<32x512xf32>
    %150 = arith.select %147, %145, %149 : vector<32x512xi1>, vector<32x512xf32>
    %cst_91 = arith.constant 0.000000e+00 : f32
    %151 = vector.broadcast %cst_91 : f32 to vector<32x512xf32>
    %152 = arith.select %121, %150, %151 : vector<32x512xi1>, vector<32x512xf32>
    %c0_92 = arith.constant 0 : index
    %c128_93 = arith.constant 128 : index
    %153 = vector.load %arg20[%c0_92, %c128_93] : memref<32x768xf32, #tpu.memory_space<vmem>>, vector<32x512xf32>
    tpu.vector_store %arg20[%c0_92, %c128_93], %152 {strides = array<i32>} : memref<32x768xf32, #tpu.memory_space<vmem>>, vector<32x512xf32>,
    %c0_94 = arith.constant 0 : index
    %c128_95 = arith.constant 128 : index
    %154 = vector.load %arg20[%c0_94, %c128_95] : memref<32x768xf32, #tpu.memory_space<vmem>>, vector<32x512xf32>
    %c0_96 = arith.constant 0 : index
    %c129 = arith.constant 129 : index
    %155 = vector.load %arg20[%c0_96, %c129] : memref<32x768xf32, #tpu.memory_space<vmem>>, vector<32x512xf32>
    %c0_97 = arith.constant 0 : index
    %c130 = arith.constant 130 : index
    %156 = vector.load %arg20[%c0_97, %c130] : memref<32x768xf32, #tpu.memory_space<vmem>>, vector<32x512xf32>
    %157 = tpu.concatenate %154, %155, %156 in 0 : vector<32x512xf32>, vector<32x512xf32>, vector<32x512xf32> -> vector<96x512xf32>
    %c0_98 = arith.constant 0 : index
    %c0_99 = arith.constant 0 : index
    %158 = vector.load %arg15[%c0_98, %c0_99] : memref<32x96xf32, #tpu.memory_space<vmem>>, vector<32x96xf32>
    %cst_100 = arith.constant dense<0.000000e+00> : vector<32x512xf32>
    %159 = tpu.matmul %158, %157, %cst_100 {dimension_numbers = #tpu.dot_dimension_numbers<[1], [0], [0], [1], [0, 0, 1, 1], [], []>} : vector<32x96xf32>, vector<96x512xf32>, vector<32x512xf32> -> vector<32x512xf32>
    %c0_101 = arith.constant 0 : index
    %c0_102 = arith.constant 0 : index
    %160 = vector.load %arg16[%c0_101, %c0_102] : memref<32x1xf32, #tpu.memory_space<vmem>>, vector<32x1xf32>
    %161 = vector.broadcast %160 : vector<32x1xf32> to vector<32x512xf32>
    %162 = arith.addf %159, %161 : vector<32x512xf32>
    %c0_103 = arith.constant 0 : index
    %c128_104 = arith.constant 128 : index
    %163 = vector.load %arg20[%c0_103, %c128_104] : memref<32x768xf32, #tpu.memory_space<vmem>>, vector<32x512xf32>
    tpu.vector_store %arg20[%c0_103, %c128_104], %162 {strides = array<i32>} : memref<32x768xf32, #tpu.memory_space<vmem>>, vector<32x512xf32>,
    %c0_105 = arith.constant 0 : index
    %c128_106 = arith.constant 128 : index
    %164 = vector.load %arg20[%c0_105, %c128_106] : memref<32x768xf32, #tpu.memory_space<vmem>>, vector<32x512xf32>
    %c0_107 = arith.constant 0 : index
    %c129_108 = arith.constant 129 : index
    %165 = vector.load %arg20[%c0_107, %c129_108] : memref<32x768xf32, #tpu.memory_space<vmem>>, vector<32x512xf32>
    %c0_109 = arith.constant 0 : index
    %c130_110 = arith.constant 130 : index
    %166 = vector.load %arg20[%c0_109, %c130_110] : memref<32x768xf32, #tpu.memory_space<vmem>>, vector<32x512xf32>
    %167 = tpu.concatenate %164, %165, %166 in 0 : vector<32x512xf32>, vector<32x512xf32>, vector<32x512xf32> -> vector<96x512xf32>
    %c0_111 = arith.constant 0 : index
    %c0_112 = arith.constant 0 : index
    %168 = vector.load %arg17[%c0_111, %c0_112] : memref<8x96xf32, #tpu.memory_space<vmem>>, vector<8x96xf32>
    %cst_113 = arith.constant dense<0.000000e+00> : vector<8x512xf32>
    %169 = tpu.matmul %168, %167, %cst_113 {dimension_numbers = #tpu.dot_dimension_numbers<[1], [0], [0], [1], [0, 0, 1, 1], [], []>} : vector<8x96xf32>, vector<96x512xf32>, vector<8x512xf32> -> vector<8x512xf32>
    %c0_114 = arith.constant 0 : index
    %c0_115 = arith.constant 0 : index
    %170 = vector.load %arg18[%c0_114, %c0_115] : memref<8x1xf32, #tpu.memory_space<vmem>>, vector<8x1xf32>
    %171 = vector.broadcast %170 : vector<8x1xf32> to vector<8x512xf32>
    %172 = arith.addf %169, %171 : vector<8x512xf32>
    %173 = vector.extract_strided_slice %172 {offsets = [0, 0], sizes = [8, 128], strides = [1, 1]} : vector<8x512xf32> to vector<8x128xf32>
    %c0_116 = arith.constant 0 : index
    %c0_117 = arith.constant 0 : index
    %c0_118 = arith.constant 0 : index
    %174 = vector.load %arg19[%c0_116, %c0_117, %c0_118] : memref<2x8x128xf32, #tpu.memory_space<vmem>>, vector<1x8x128xf32>
    %175 = vector.shape_cast %174 : vector<1x8x128xf32> to vector<8x128xf32>
    %176 = vector.shape_cast %173 : vector<8x128xf32> to vector<1x8x128xf32>
    tpu.vector_store %arg19[%c0_116, %c0_117, %c0_118], %176 {strides = array<i32>} : memref<2x8x128xf32, #tpu.memory_space<vmem>>, vector<1x8x128xf32>,
    %177 = vector.extract_strided_slice %172 {offsets = [0, 256], sizes = [8, 128], strides = [1, 1]} : vector<8x512xf32> to vector<8x128xf32>
    %c1_119 = arith.constant 1 : index
    %c0_120 = arith.constant 0 : index
    %c0_121 = arith.constant 0 : index
    %178 = vector.load %arg19[%c1_119, %c0_120, %c0_121] : memref<2x8x128xf32, #tpu.memory_space<vmem>>, vector<1x8x128xf32>
    %179 = vector.shape_cast %178 : vector<1x8x128xf32> to vector<8x128xf32>
    %180 = vector.shape_cast %177 : vector<8x128xf32> to vector<1x8x128xf32>
    tpu.vector_store %arg19[%c1_119, %c0_120, %c0_121], %180 {strides = array<i32>} : memref<2x8x128xf32, #tpu.memory_space<vmem>>, vector<1x8x128xf32>,
    return
  }
}

</mosaic_0001>

<bundles_post_ra>
// kernel: tpu_custom_call.1
= control target key start
LH: loop header
LB: loop body
LE: loop exit
PB: predicated region body
PF: predicated region fallthrough
CT: control target
= control target key end

     0   :  { %s4869_s0 = inlined_call_operand.vmem [shape: f32[2,128], index: 0, kind: input, shape index: {}]   ;;  %s4870_s1 = inlined_call_operand.vmem [shape: f32[128,256], index: 1, kind: input, shape index: {}]   ;;  %s4871_s2 = inlined_call_operand.vmem [shape: f32[1,256], index: 2, kind: input, shape index: {}]   ;;  %s4872_s3 = inlined_call_operand.vmem [shape: f32[1,256], index: 3, kind: input, shape index: {}]   ;;  %s4873_s4 = inlined_call_operand.vmem [shape: f32[1,256], index: 4, kind: input, shape index: {}]   ;;  %s4874_s5 = inlined_call_operand.hbm [shape: f32[256,512], index: 5, kind: input, shape index: {}]   ;;  %s4875_s6 = inlined_call_operand.vmem [shape: f32[1,512], index: 6, kind: input, shape index: {}]   ;;  %s4876_s7 = inlined_call_operand.vmem [shape: f32[3,32,4], index: 7, kind: input, shape index: {}]   ;;  %s4877_s8 = inlined_call_operand.vmem [shape: f32[32,1], index: 8, kind: input, shape index: {}]   ;;  %s4878_s9 = inlined_call_operand.vmem [shape: f32[32,1], index: 9, kind: input, shape index: {}]   ;;  %s4879_s10 = inlined_call_operand.vmem [shape: f32[32,1], index: 10, kind: input, shape index: {}]   ;;  %s4880_s11 = inlined_call_operand.vmem [shape: f32[32,96], index: 11, kind: input, shape index: {}]   ;;  %s4881_s12 = inlined_call_operand.vmem [shape: f32[32,1], index: 12, kind: input, shape index: {}]   ;;  %s4882_s13 = inlined_call_operand.vmem [shape: f32[32,1], index: 13, kind: input, shape index: {}]   ;;  %s4883_s14 = inlined_call_operand.vmem [shape: f32[32,1], index: 14, kind: input, shape index: {}]   ;;  %s4884_s15 = inlined_call_operand.vmem [shape: f32[32,96], index: 15, kind: input, shape index: {}]   ;;  %s4885_s16 = inlined_call_operand.vmem [shape: f32[32,1], index: 16, kind: input, shape index: {}]   ;;  %s4886_s17 = inlined_call_operand.vmem [shape: f32[8,96], index: 17, kind: input, shape index: {}]   ;;  %s4887_s18 = inlined_call_operand.vmem [shape: f32[8,1], index: 18, kind: input, shape index: {}]   ;;  %s4888_s19 = inlined_call_operand.hbm [shape: f32[2,8,128], index: 19, kind: output, shape index: {}]  }
   0x1   :  { %4890 = sst [smem:[#allocation9_spill]] %s4869_s0 }
   0x2   :  { %4891 = sst [smem:[#allocation10_spill]] %s4870_s1 }
   0x3   :  { %4892 = sst [smem:[#allocation11_spill]] %s4871_s2 }
   0x4   :  { %4893 = sst [smem:[#allocation12_spill]] %s4872_s3 }
   0x5   :  { %24 = vsyncpa [#allocation4], 0 }
   0x6   :  { %25 = vsyncpa [#allocation5], 0  ;;  %s3284_s0 = smov [#allocation3]  }
   0x7   :  { %s41_s30 = sshll.u32 %s3284_s0, 4  ;;  %s42_s30 = int_to_ptr.vmem [resolvable:$true] %s41_s30 }
   0x8   :  { %s3248_s20 = scalar_lea.vmem %s42_s30, 16384  ;;  %p3253_p1 = scmp.lt.s32.totalorder %s42_s30, %s42_s30 }
   0x9   :  { %p3249_p0 = scmp.ne.s32.totalorder %s42_s30, %s3248_s20  ;;  %p3254_p2 = scmp.lt.s32.totalorder %s3248_s20, %s3248_s20 }
   0xb   :  { %p3255_p3 = por %p3254_p2, %p3253_p1 }
   0xd   :  { %p3256_p4 = pnand %p3255_p3, %p3249_p0 }
   0xf   :  { %3259 = shalt.err (!%p3256_p4)
}
  0x10   :  { %s3285_s21 = smov 512   ;;  %s3286_s1 = smov 32  }
  0x11   :  { %47 = dma.hbm_to_vmem [thread:$0]  %s4874_s5, 16384, %s42_s30, [#allocation4], %s3285_s21, %s3285_s21, %s3286_s1  }
  0x12   :  { %3280 = dma.done.wait [#allocation4], 16384  }
  0x13   :  { %3281 = vsyncadd [#allocation4], 4294950912  ;;  %v3287_v0 = vmov 0.0   ;;  %s4894_s25 = sld [smem:[#allocation10_spill]]  ;;  %v350_v15 = vld [vmem:[#allocation3 + $0x1e8] sm:$0xff]  ;;  %v349_v16 = vld [vmem:[#allocation3 + $0x1e0] sm:$0xff] }
  0x14   :  { %210 = vmatprep.mubr.f32.mxu0 %v3287_v0  ;;  %77 = vst [vmem:[#allocation2] sm:$0xff] %v3287_v0  ;;  %78 = vst [vmem:[#allocation2 + $0x8] sm:$0xff] %v3287_v0  ;;  %439 = vmatprep.subr.mxu1 %v350_v15  ;;  %s4895_s28 = sld [smem:[#allocation9_spill]]  ;;  %v352_v36 = vld [vmem:[#allocation3 + $0x1f8] sm:$0xff]  ;;  %v351_v37 = vld [vmem:[#allocation3 + $0x1f0] sm:$0xff]  ;;  %vm217_vm0 = vcmask 1041408  }
  0x15   :  { %79 = vst [vmem:[#allocation2 + $0x10] sm:$0xff] %v3287_v0  ;;  %80 = vst [vmem:[#allocation2 + $0x18] sm:$0xff] %v3287_v0  ;;  %440 = vmatpush1.msra.mxu1 %v349_v16  ;;  %v346_v38 = vld [vmem:[#allocation3 + $0x1c8] sm:$0xff]  ;;  %v348_v39 = vld [vmem:[#allocation3 + $0x1d8] sm:$0xff]  ;;  %s4896_s0 = sld [smem:[#allocation11_spill]]  ;;  %vm657_vm1 = vcmask 1043456  }
  0x16   :  { %81 = vst [vmem:[#allocation2 + $0x20] sm:$0xff] %v3287_v0  ;;  %441 = vmatprep.subr.mxu1 %v346_v38  ;;  %v345_v40 = vld [vmem:[#allocation3 + $0x1c0] sm:$0xff]  ;;  %v347_v41 = vld [vmem:[#allocation3 + $0x1d0] sm:$0xff]  ;;  %v342_v42 = vld [vmem:[#allocation3 + $0x1a8] sm:$0xff]  ;;  %s4897_s21 = sld [smem:[#allocation12_spill]]  ;;  %vm644_vm2 = vcmask 31744  }
  0x17   :  { %442 = vmatpush1.msra.mxu1 %v345_v40  ;;  %v344_v43 = vld [vmem:[#allocation3 + $0x1b8] sm:$0xff]  ;;  %v341_v44 = vld [vmem:[#allocation3 + $0x1a0] sm:$0xff]  ;;  %v343_v45 = vld [vmem:[#allocation3 + $0x1b0] sm:$0xff]  ;;  %s3289_s26 = smov 2   ;;  %vm639_vm3 = vcmask 7168   ;;  %vm1057_vm4 = vcmask 15360  }
  0x18   :  { %443 = vmatprep.subr.mxu1 %v342_v42  ;;  %v338_v46 = vld [vmem:[#allocation3 + $0x188] sm:$0xff]  ;;  %v340_v47 = vld [vmem:[#allocation3 + $0x198] sm:$0xff]  ;;  %v337_v48 = vld [vmem:[#allocation3 + $0x180] sm:$0xff] }
  0x19   :  { %v133_v1 = vld [vmem:[%s4894_s25 + $0xf8] sm:$0xff]  ;;  %v132_v2 = vld [vmem:[%s4894_s25 + $0xf0] sm:$0xff]  ;;  %v131_v3 = vld [vmem:[%s4894_s25 + $0xe8] sm:$0xff]  ;;  %444 = vmatpush1.msra.mxu1 %v341_v44 }
  0x1a   :  { %146 = vmatprep.subr.mxu0 %v133_v1  ;;  %v130_v4 = vld [vmem:[%s4894_s25 + $0xe0] sm:$0xff]  ;;  %v129_v5 = vld [vmem:[%s4894_s25 + $0xd8] sm:$0xff]  ;;  %v128_v6 = vld [vmem:[%s4894_s25 + $0xd0] sm:$0xff]  ;;  %445 = vmatprep.subr.mxu1 %v338_v46 }
  0x1b   :  { %147 = vmatpush1.msra.mxu0 %v132_v2  ;;  %v127_v7 = vld [vmem:[%s4894_s25 + $0xc8] sm:$0xff]  ;;  %v126_v8 = vld [vmem:[%s4894_s25 + $0xc0] sm:$0xff]  ;;  %v125_v9 = vld [vmem:[%s4894_s25 + $0xb8] sm:$0xff]  ;;  %446 = vmatpush1.msra.mxu1 %v337_v48 }
  0x1c   :  { %148 = vmatprep.subr.mxu0 %v131_v3  ;;  %v124_v10 = vld [vmem:[%s4894_s25 + $0xb0] sm:$0xff]  ;;  %v123_v11 = vld [vmem:[%s4894_s25 + $0xa8] sm:$0xff]  ;;  %v122_v12 = vld [vmem:[%s4894_s25 + $0xa0] sm:$0xff] }
  0x1d   :  { %149 = vmatpush1.msra.mxu0 %v130_v4  ;;  %v121_v13 = vld [vmem:[%s4894_s25 + $0x98] sm:$0xff]  ;;  %v120_v14 = vld [vmem:[%s4894_s25 + $0x90] sm:$0xff]  ;;  %v119_v17 = vld [vmem:[%s4894_s25 + $0x88] sm:$0xff] }
  0x1e   :  { %150 = vmatprep.subr.mxu0 %v129_v5  ;;  %v118_v18 = vld [vmem:[%s4894_s25 + $0x80] sm:$0xff]  ;;  %v117_v19 = vld [vmem:[%s4894_s25 + $0x78] sm:$0xff]  ;;  %v116_v20 = vld [vmem:[%s4894_s25 + $0x70] sm:$0xff] }
  0x1f   :  { %151 = vmatpush1.msra.mxu0 %v128_v6  ;;  %v115_v21 = vld [vmem:[%s4894_s25 + $0x68] sm:$0xff]  ;;  %v114_v22 = vld [vmem:[%s4894_s25 + $0x60] sm:$0xff]  ;;  %v113_v23 = vld [vmem:[%s4894_s25 + $0x58] sm:$0xff] }
  0x20   :  { %152 = vmatprep.subr.mxu0 %v127_v7  ;;  %v112_v24 = vld [vmem:[%s4894_s25 + $0x50] sm:$0xff]  ;;  %v111_v25 = vld [vmem:[%s4894_s25 + $0x48] sm:$0xff]  ;;  %v110_v26 = vld [vmem:[%s4894_s25 + $0x40] sm:$0xff] }
  0x21   :  { %153 = vmatpush1.msra.mxu0 %v126_v8  ;;  %v109_v27 = vld [vmem:[%s4894_s25 + $0x38] sm:$0xff]  ;;  %v108_v28 = vld [vmem:[%s4894_s25 + $0x30] sm:$0xff]  ;;  %v107_v29 = vld [vmem:[%s4894_s25 + $0x28] sm:$0xff] }
  0x22   :  { %154 = vmatprep.subr.mxu0 %v125_v9  ;;  %v106_v30 = vld [vmem:[%s4894_s25 + $0x20] sm:$0xff]  ;;  %v105_v31 = vld [vmem:[%s4894_s25 + $0x18] sm:$0xff]  ;;  %v104_v32 = vld [vmem:[%s4894_s25 + $0x10] sm:$0xff] }
  0x23   :  { %155 = vmatpush1.msra.mxu0 %v124_v10  ;;  %v103_v33 = vld [vmem:[%s4894_s25 + $0x8] sm:$0xff]  ;;  %v102_v34 = vld [vmem:[%s4894_s25] sm:$0xff]  ;;  %v339_v49 = vld [vmem:[#allocation3 + $0x190] sm:$0xff] }
  0x24   :  { %156 = vmatprep.subr.mxu0 %v123_v11  ;;  %v101_v35 = vld [vmem:[%s4895_s28] sm:$0x3]  ;;  %v334_v50 = vld [vmem:[#allocation3 + $0x168] sm:$0xff]  ;;  %v336_v51 = vld [vmem:[#allocation3 + $0x178] sm:$0xff] }
  0x25   :  { %157 = vmatpush1.msra.mxu0 %v122_v12  ;;  %447 = vmatprep.subr.mxu1 %v334_v50  ;;  %v333_v52 = vld [vmem:[#allocation3 + $0x160] sm:$0xff]  ;;  %v335_v53 = vld [vmem:[#allocation3 + $0x170] sm:$0xff]  ;;  %v330_v54 = vld [vmem:[#allocation3 + $0x148] sm:$0xff] }
  0x26   :  { %158 = vmatprep.subr.mxu0 %v121_v13  ;;  %448 = vmatpush1.msra.mxu1 %v333_v52  ;;  %v332_v55 = vld [vmem:[#allocation3 + $0x158] sm:$0xff]  ;;  %v329_v56 = vld [vmem:[#allocation3 + $0x140] sm:$0xff]  ;;  %v331_v57 = vld [vmem:[#allocation3 + $0x150] sm:$0xff] }
  0x27   :  { %159 = vmatpush1.msra.mxu0 %v120_v14  ;;  %449 = vmatprep.subr.mxu1 %v330_v54  ;;  %v326_v58 = vld [vmem:[#allocation3 + $0x128] sm:$0xff]  ;;  %v328_v59 = vld [vmem:[#allocation3 + $0x138] sm:$0xff]  ;;  %v325_v60 = vld [vmem:[#allocation3 + $0x120] sm:$0xff] }
  0x28   :  { %160 = vmatprep.subr.mxu0 %v119_v17  ;;  %450 = vmatpush1.msra.mxu1 %v329_v56  ;;  %v327_v61 = vld [vmem:[#allocation3 + $0x130] sm:$0xff]  ;;  %v322_v62 = vld [vmem:[#allocation3 + $0x108] sm:$0xff]  ;;  %v324_v63 = vld [vmem:[#allocation3 + $0x118] sm:$0xff] }
  0x29   :  { %161 = vmatpush1.msra.mxu0 %v118_v18  ;;  %451 = vmatprep.subr.mxu1 %v326_v58  ;;  %v321_v1 = vld [vmem:[#allocation3 + $0x100] sm:$0xff]  ;;  %v323_v2 = vld [vmem:[#allocation3 + $0x110] sm:$0xff]  ;;  %v318_v3 = vld [vmem:[#allocation3 + $0xe8] sm:$0xff] }
  0x2a   :  { %162 = vmatprep.subr.mxu0 %v117_v19  ;;  %452 = vmatpush1.msra.mxu1 %v325_v60  ;;  %v320_v4 = vld [vmem:[#allocation3 + $0xf8] sm:$0xff]  ;;  %v317_v5 = vld [vmem:[#allocation3 + $0xe0] sm:$0xff]  ;;  %v319_v6 = vld [vmem:[#allocation3 + $0xf0] sm:$0xff] }
  0x2b   :  { %163 = vmatpush1.msra.mxu0 %v116_v20  ;;  %453 = vmatprep.subr.mxu1 %v322_v62  ;;  %v314_v7 = vld [vmem:[#allocation3 + $0xc8] sm:$0xff]  ;;  %v316_v8 = vld [vmem:[#allocation3 + $0xd8] sm:$0xff]  ;;  %v313_v9 = vld [vmem:[#allocation3 + $0xc0] sm:$0xff] }
  0x2c   :  { %164 = vmatprep.subr.mxu0 %v115_v21  ;;  %454 = vmatpush1.msra.mxu1 %v321_v1  ;;  %v315_v10 = vld [vmem:[#allocation3 + $0xd0] sm:$0xff]  ;;  %v310_v11 = vld [vmem:[#allocation3 + $0xa8] sm:$0xff]  ;;  %v312_v12 = vld [vmem:[#allocation3 + $0xb8] sm:$0xff] }
  0x2d   :  { %165 = vmatpush1.msra.mxu0 %v114_v22  ;;  %455 = vmatprep.subr.mxu1 %v318_v3  ;;  %v309_v13 = vld [vmem:[#allocation3 + $0xa0] sm:$0xff]  ;;  %v311_v14 = vld [vmem:[#allocation3 + $0xb0] sm:$0xff]  ;;  %v306_v15 = vld [vmem:[#allocation3 + $0x88] sm:$0xff] }
  0x2e   :  { %166 = vmatprep.subr.mxu0 %v113_v23  ;;  %456 = vmatpush1.msra.mxu1 %v317_v5  ;;  %v308_v16 = vld [vmem:[#allocation3 + $0x98] sm:$0xff]  ;;  %v305_v17 = vld [vmem:[#allocation3 + $0x80] sm:$0xff]  ;;  %v307_v18 = vld [vmem:[#allocation3 + $0x90] sm:$0xff] }
  0x2f   :  { %167 = vmatpush1.msra.mxu0 %v112_v24  ;;  %457 = vmatprep.subr.mxu1 %v314_v7  ;;  %v302_v19 = vld [vmem:[#allocation3 + $0x68] sm:$0xff]  ;;  %v304_v20 = vld [vmem:[#allocation3 + $0x78] sm:$0xff]  ;;  %v301_v21 = vld [vmem:[#allocation3 + $0x60] sm:$0xff] }
  0x30   :  { %168 = vmatprep.subr.mxu0 %v111_v25  ;;  %458 = vmatpush1.msra.mxu1 %v313_v9  ;;  %v303_v22 = vld [vmem:[#allocation3 + $0x70] sm:$0xff]  ;;  %v298_v23 = vld [vmem:[#allocation3 + $0x48] sm:$0xff]  ;;  %v300_v24 = vld [vmem:[#allocation3 + $0x58] sm:$0xff] }
  0x31   :  { %169 = vmatpush1.msra.mxu0 %v110_v26  ;;  %459 = vmatprep.subr.mxu1 %v310_v11  ;;  %v297_v25 = vld [vmem:[#allocation3 + $0x40] sm:$0xff]  ;;  %v299_v26 = vld [vmem:[#allocation3 + $0x50] sm:$0xff]  ;;  %v412_v40 = vld [vmem:[#allocation3 + $0x3d8] sm:$0xff] }
  0x32   :  { %170 = vmatprep.subr.mxu0 %v109_v27  ;;  %460 = vmatpush1.msra.mxu1 %v309_v13  ;;  %v294_v27 = vld [vmem:[#allocation3 + $0x28] sm:$0xff]  ;;  %v415_v38 = vld [vmem:[#allocation3 + $0x3f0] sm:$0xff]  ;;  %v408_v44 = vld [vmem:[#allocation3 + $0x3b8] sm:$0xff] }
  0x33   :  { %171 = vmatpush1.msra.mxu0 %v108_v28  ;;  %461 = vmatprep.subr.mxu1 %v306_v15  ;;  %v296_v28 = vld [vmem:[#allocation3 + $0x38] sm:$0xff]  ;;  %v411_v42 = vld [vmem:[#allocation3 + $0x3d0] sm:$0xff] }
  0x34   :  { %172 = vmatprep.subr.mxu0 %v107_v29  ;;  %462 = vmatpush1.msra.mxu1 %v305_v17  ;;  %v293_v29 = vld [vmem:[#allocation3 + $0x20] sm:$0xff]  ;;  %v407_v46 = vld [vmem:[#allocation3 + $0x3b0] sm:$0xff]  ;;  %v404_v48 = vld [vmem:[#allocation3 + $0x398] sm:$0xff] }
  0x35   :  { %173 = vmatpush1.msra.mxu0 %v106_v30  ;;  %463 = vmatprep.subr.mxu1 %v302_v19  ;;  %v295_v30 = vld [vmem:[#allocation3 + $0x30] sm:$0xff]  ;;  %v400_v52 = vld [vmem:[#allocation3 + $0x378] sm:$0xff] }
  0x36   :  { %174 = vmatprep.subr.mxu0 %v105_v31  ;;  %464 = vmatpush1.msra.mxu1 %v301_v21  ;;  %v290_v31 = vld [vmem:[#allocation3 + $0x8] sm:$0xff]  ;;  %v403_v50 = vld [vmem:[#allocation3 + $0x390] sm:$0xff]  ;;  %v396_v56 = vld [vmem:[#allocation3 + $0x358] sm:$0xff] }
  0x37   :  { %175 = vmatpush1.msra.mxu0 %v104_v32  ;;  %465 = vmatprep.subr.mxu1 %v298_v23  ;;  %v292_v32 = vld [vmem:[#allocation3 + $0x18] sm:$0xff]  ;;  %v399_v54 = vld [vmem:[#allocation3 + $0x370] sm:$0xff] }
  0x38   :  { %176 = vmatprep.subr.mxu0 %v103_v33  ;;  %466 = vmatpush1.msra.mxu1 %v297_v25  ;;  %v289_v33 = vld [vmem:[#allocation3] sm:$0xff]  ;;  %v395_v58 = vld [vmem:[#allocation3 + $0x350] sm:$0xff]  ;;  %v392_v60 = vld [vmem:[#allocation3 + $0x338] sm:$0xff] }
  0x39   :  { %177 = vmatpush1.msra.mxu0 %v102_v34  ;;  %467 = vmatprep.subr.mxu1 %v294_v27  ;;  %v291_v34 = vld [vmem:[#allocation3 + $0x10] sm:$0xff]  ;;  %v388_v1 = vld [vmem:[#allocation3 + $0x318] sm:$0xff] }
  0x3a   :  { %211 = vmatmul.mubr.f32.vlgmr.msra.gmra.mxu0 %v101_v35  ;;  %510 = vmatprep.subr.mxu0 %v352_v36  ;;  %v414_v35 = vld [vmem:[#allocation3 + $0x3e8] sm:$0xff]  ;;  %v416_v36 = vld [vmem:[#allocation3 + $0x3f8] sm:$0xff]  ;;  %v391_v62 = vld [vmem:[#allocation3 + $0x330] sm:$0xff] }
  0x3b   :  { %511 = vmatpush1.msra.mxu0 %v351_v37  ;;  %468 = vmatpush1.msra.mxu1 %v293_v29  ;;  %v413_v37 = vld [vmem:[#allocation3 + $0x3e0] sm:$0xff]  ;;  %v387_v3 = vld [vmem:[#allocation3 + $0x310] sm:$0xff]  ;;  %v384_v5 = vld [vmem:[#allocation3 + $0x2f8] sm:$0xff] }
  0x3c   :  { %512 = vmatprep.subr.mxu0 %v348_v39  ;;  %469 = vmatprep.subr.mxu1 %v290_v31  ;;  %v410_v39 = vld [vmem:[#allocation3 + $0x3c8] sm:$0xff]  ;;  %v383_v7 = vld [vmem:[#allocation3 + $0x2f0] sm:$0xff]  ;;  %v380_v9 = vld [vmem:[#allocation3 + $0x2d8] sm:$0xff] }
  0x3d   :  { %513 = vmatpush1.msra.mxu0 %v347_v41  ;;  %470 = vmatpush1.msra.mxu1 %v289_v33  ;;  %v409_v41 = vld [vmem:[#allocation3 + $0x3c0] sm:$0xff]  ;;  %v379_v11 = vld [vmem:[#allocation3 + $0x2d0] sm:$0xff]  ;;  %v376_v13 = vld [vmem:[#allocation3 + $0x2b8] sm:$0xff] }
  0x3e   :  { %514 = vmatprep.subr.mxu0 %v344_v43  ;;  %471 = vmatprep.subr.mxu1 %v414_v35  ;;  %v406_v43 = vld [vmem:[#allocation3 + $0x3a8] sm:$0xff]  ;;  %v375_v15 = vld [vmem:[#allocation3 + $0x2b0] sm:$0xff]  ;;  %v372_v17 = vld [vmem:[#allocation3 + $0x298] sm:$0xff] }
  0x3f   :  { %515 = vmatpush1.msra.mxu0 %v343_v45  ;;  %472 = vmatpush2.msra.mxu1 %v413_v37  ;;  %v405_v45 = vld [vmem:[#allocation3 + $0x3a0] sm:$0xff]  ;;  %v371_v19 = vld [vmem:[#allocation3 + $0x290] sm:$0xff]  ;;  %v368_v21 = vld [vmem:[#allocation3 + $0x278] sm:$0xff] }
  0x40   :  { %516 = vmatprep.subr.mxu0 %v340_v47  ;;  %473 = vmatprep.subr.mxu1 %v410_v39  ;;  %v402_v47 = vld [vmem:[#allocation3 + $0x388] sm:$0xff]  ;;  %v367_v23 = vld [vmem:[#allocation3 + $0x270] sm:$0xff]  ;;  %v364_v25 = vld [vmem:[#allocation3 + $0x258] sm:$0xff] }
  0x41   :  { %517 = vmatpush1.msra.mxu0 %v339_v49  ;;  %474 = vmatpush2.msra.mxu1 %v409_v41  ;;  %v401_v49 = vld [vmem:[#allocation3 + $0x380] sm:$0xff]  ;;  %v363_v27 = vld [vmem:[#allocation3 + $0x250] sm:$0xff]  ;;  %v360_v29 = vld [vmem:[#allocation3 + $0x238] sm:$0xff] }
  0x42   :  { %518 = vmatprep.subr.mxu0 %v336_v51  ;;  %475 = vmatprep.subr.mxu1 %v406_v43  ;;  %v398_v51 = vld [vmem:[#allocation3 + $0x368] sm:$0xff]  ;;  %v359_v31 = vld [vmem:[#allocation3 + $0x230] sm:$0xff]  ;;  %v356_v33 = vld [vmem:[#allocation3 + $0x218] sm:$0xff] }
  0x43   :  { %519 = vmatpush1.msra.mxu0 %v335_v53  ;;  %476 = vmatpush2.msra.mxu1 %v405_v45  ;;  %v397_v53 = vld [vmem:[#allocation3 + $0x360] sm:$0xff]  ;;  %v355_v35 = vld [vmem:[#allocation3 + $0x210] sm:$0xff] }
  0x44   :  { %520 = vmatprep.subr.mxu0 %v332_v55  ;;  %477 = vmatprep.subr.mxu1 %v402_v47  ;;  %v394_v55 = vld [vmem:[#allocation3 + $0x348] sm:$0xff]  ;;  %v134_v39 = vld [vmem:[%s4896_s0] sm:$0x3] }
  0x45   :  { %521 = vmatpush1.msra.mxu0 %v331_v57  ;;  %478 = vmatpush2.msra.mxu1 %v401_v49  ;;  %v393_v57 = vld [vmem:[#allocation3 + $0x340] sm:$0xff] }
  0x46   :  { %522 = vmatprep.subr.mxu0 %v328_v59  ;;  %479 = vmatprep.subr.mxu1 %v398_v51  ;;  %v390_v59 = vld [vmem:[#allocation3 + $0x328] sm:$0xff] }
  0x47   :  { %523 = vmatpush1.msra.mxu0 %v327_v61  ;;  %480 = vmatpush2.msra.mxu1 %v397_v53  ;;  %v389_v61 = vld [vmem:[#allocation3 + $0x320] sm:$0xff] }
  0x48   :  { %524 = vmatprep.subr.mxu0 %v324_v63  ;;  %481 = vmatprep.subr.mxu1 %v394_v55  ;;  %v386_v63 = vld [vmem:[#allocation3 + $0x308] sm:$0xff] }
  0x49   :  { %525 = vmatpush1.msra.mxu0 %v323_v2  ;;  %482 = vmatpush2.msra.mxu1 %v393_v57  ;;  %v385_v2 = vld [vmem:[#allocation3 + $0x300] sm:$0xff] }
  0x4a   :  { %526 = vmatprep.subr.mxu0 %v320_v4  ;;  %483 = vmatprep.subr.mxu1 %v390_v59  ;;  %v382_v4 = vld [vmem:[#allocation3 + $0x2e8] sm:$0xff] }
  0x4b   :  { %527 = vmatpush1.msra.mxu0 %v319_v6  ;;  %484 = vmatpush2.msra.mxu1 %v389_v61  ;;  %v381_v6 = vld [vmem:[#allocation3 + $0x2e0] sm:$0xff] }
  0x4c   :  { %528 = vmatprep.subr.mxu0 %v316_v8  ;;  %485 = vmatprep.subr.mxu1 %v386_v63  ;;  %v378_v8 = vld [vmem:[#allocation3 + $0x2c8] sm:$0xff] }
  0x4d   :  { %529 = vmatpush1.msra.mxu0 %v315_v10  ;;  %486 = vmatpush2.msra.mxu1 %v385_v2  ;;  %v377_v10 = vld [vmem:[#allocation3 + $0x2c0] sm:$0xff] }
  0x4e   :  { %530 = vmatprep.subr.mxu0 %v312_v12  ;;  %487 = vmatprep.subr.mxu1 %v382_v4  ;;  %v374_v12 = vld [vmem:[#allocation3 + $0x2a8] sm:$0xff] }
  0x4f   :  { %531 = vmatpush1.msra.mxu0 %v311_v14  ;;  %488 = vmatpush2.msra.mxu1 %v381_v6  ;;  %v373_v14 = vld [vmem:[#allocation3 + $0x2a0] sm:$0xff] }
  0x50   :  { %532 = vmatprep.subr.mxu0 %v308_v16  ;;  %489 = vmatprep.subr.mxu1 %v378_v8  ;;  %v370_v16 = vld [vmem:[#allocation3 + $0x288] sm:$0xff] }
  0x51   :  { %533 = vmatpush1.msra.mxu0 %v307_v18  ;;  %490 = vmatpush2.msra.mxu1 %v377_v10  ;;  %v369_v18 = vld [vmem:[#allocation3 + $0x280] sm:$0xff] }
  0x52   :  { %534 = vmatprep.subr.mxu0 %v304_v20  ;;  %491 = vmatprep.subr.mxu1 %v374_v12  ;;  %v366_v20 = vld [vmem:[#allocation3 + $0x268] sm:$0xff] }
  0x53   :  { %535 = vmatpush1.msra.mxu0 %v303_v22  ;;  %492 = vmatpush2.msra.mxu1 %v373_v14  ;;  %v365_v22 = vld [vmem:[#allocation3 + $0x260] sm:$0xff] }
  0x54   :  { %536 = vmatprep.subr.mxu0 %v300_v24  ;;  %493 = vmatprep.subr.mxu1 %v370_v16  ;;  %v362_v24 = vld [vmem:[#allocation3 + $0x248] sm:$0xff] }
  0x55   :  { %537 = vmatpush1.msra.mxu0 %v299_v26  ;;  %494 = vmatpush2.msra.mxu1 %v369_v18  ;;  %v361_v26 = vld [vmem:[#allocation3 + $0x240] sm:$0xff] }
  0x56   :  { %538 = vmatprep.subr.mxu0 %v296_v28  ;;  %495 = vmatprep.subr.mxu1 %v366_v20  ;;  %v358_v28 = vld [vmem:[#allocation3 + $0x228] sm:$0xff] }
  0x57   :  { %539 = vmatpush1.msra.mxu0 %v295_v30  ;;  %496 = vmatpush2.msra.mxu1 %v365_v22  ;;  %v357_v30 = vld [vmem:[#allocation3 + $0x220] sm:$0xff] }
  0x58   :  { %540 = vmatprep.subr.mxu0 %v292_v32  ;;  %497 = vmatprep.subr.mxu1 %v362_v24  ;;  %v354_v32 = vld [vmem:[#allocation3 + $0x208] sm:$0xff]  ;;  %v261_v22 = vld [vmem:[%s4897_s21] sm:$0x3] }
  0x59   :  { %541 = vmatpush1.msra.mxu0 %v291_v34  ;;  %498 = vmatpush2.msra.mxu1 %v361_v26  ;;  %v353_v34 = vld [vmem:[#allocation3 + $0x200] sm:$0xff] }
  0x5a   :  { %542 = vmatprep.subr.mxu0 %v416_v36  ;;  %499 = vmatprep.subr.mxu1 %v358_v28  ;;  %v136_v36 = vlaneseq }
  0x5b   :  { %543 = vmatpush2.msra.mxu0 %v415_v38  ;;  %500 = vmatpush2.msra.mxu1 %v357_v30 }
  0x5c   :  { %544 = vmatprep.subr.mxu0 %v412_v40  ;;  %501 = vmatprep.subr.mxu1 %v354_v32  ;;  %v3505_v37 = vshrl.u32 %v136_v36, 7 }
  0x5d   :  { %545 = vmatpush2.msra.mxu0 %v411_v42  ;;  %502 = vmatpush2.msra.mxu1 %v353_v34 }
  0x5e   :  { %546 = vmatprep.subr.mxu0 %v408_v44  ;;  %v3508_v38 = vsub.s32 0, %v3505_v37  ;;  %v3514_v40 = vsub.s32 1, %v3505_v37 }
  0x5f   :  { %547 = vmatpush2.msra.mxu0 %v407_v46 }
  0x60   :  { %548 = vmatprep.subr.mxu0 %v404_v48  ;;  %v139_v41 = vrot.slane %v134_v39, %v3508_v38  ;;  %v143_v42 = vrot.slane %v134_v39, %v3514_v40  ;;  %v266_v24 = vrot.slane %v261_v22, %v3508_v38  ;;  %v270_v26 = vrot.slane %v261_v22, %v3514_v40  ;;  %v623_v39 = vld [vmem:[#allocation2] sm:$0xf]  ;;  %v3127_v22 = vld [vmem:[%s4876_s7 + $0x30] sm:$0xff] }
  0x61   :  { %549 = vmatpush2.msra.mxu0 %v403_v50 }
  0x62   :  { %550 = vmatprep.subr.mxu0 %v400_v52 }
  0x63   :  { %551 = vmatpush2.msra.mxu0 %v399_v54 }
  0x64   :  { %552 = vmatprep.subr.mxu0 %v396_v56 }
  0x65   :  { %553 = vmatpush2.msra.mxu0 %v395_v58 }
  0x66   :  { %554 = vmatprep.subr.mxu0 %v392_v60 }
  0x67   :  { %555 = vmatpush2.msra.mxu0 %v391_v62 }
  0x68   :  { %556 = vmatprep.subr.mxu0 %v388_v1 }
  0x69   :  { %557 = vmatpush2.msra.mxu0 %v387_v3 }
  0x6a   :  { %558 = vmatprep.subr.mxu0 %v384_v5 }
  0x6b   :  { %559 = vmatpush2.msra.mxu0 %v383_v7 }
  0x6c   :  { %560 = vmatprep.subr.mxu0 %v380_v9 }
  0x6d   :  { %561 = vmatpush2.msra.mxu0 %v379_v11 }
  0x6e   :  { %562 = vmatprep.subr.mxu0 %v376_v13 }
  0x6f   :  { %563 = vmatpush2.msra.mxu0 %v375_v15 }
  0x70   :  { %564 = vmatprep.subr.mxu0 %v372_v17 }
  0x71   :  { %565 = vmatpush2.msra.mxu0 %v371_v19 }
  0x72   :  { %566 = vmatprep.subr.mxu0 %v368_v21 }
  0x73   :  { %567 = vmatpush2.msra.mxu0 %v367_v23 }
  0x74   :  { %568 = vmatprep.subr.mxu0 %v364_v25 }
  0x75   :  { %569 = vmatpush2.msra.mxu0 %v363_v27  ;;  %v275_v27 = vld [vmem:[%s4873_s4] sm:$0x3]  ;;  %s3288_s4 = smov 1  }
  0x76   :  { %570 = vmatprep.subr.mxu0 %v360_v29  ;;  %v284_v30 = vrot.slane %v275_v27, %v3514_v40  ;;  %629 = vrot.lane.b32.xlu1 %v623_v39, %s3288_s4 }
  0x77   :  { %571 = vmatpush2.msra.mxu0 %v359_v31  ;;  %v280_v31 = vrot.slane %v275_v27, %v3508_v38  ;;  %v3642_v27 = vld [vmem:[#allocation2] sm:$0xff] }
  0x78   :  { %572 = vmatprep.subr.mxu0 %v356_v33 }
  0x79   :  { %573 = vmatpush2.msra.mxu0 %v355_v35 }
  0xfa   :  { %v212_v43 = vpop.f32.mrf.mxu0 }
  0xfb   :  { %v213_v44 = vadd.f32 %v212_v43, %v139_v41  ;;  %v615_v41 = vld [vmem:[#allocation2 + $0x10] sm:$0xf]  ;;  %v417_v43 = vld [vmem:[%s4875_s6] sm:$0xf] }
  0xfc   :  { %v214_v45 = vpop.f32.mrf.mxu0  ;;  %3141 = vmatprep.subr.msk.mxu0 %vm657_vm1, %v615_v41 }
  0xfd   :  { %v218_v46 = vsel %vm217_vm0, %v213_v44, 0.0  ;;  %v215_v47 = vadd.f32 %v214_v45, %v143_v42  ;;  %v429_v42 = vsub.s32 2, %v3505_v37  ;;  %v422_v45 = vrot.slane %v417_v43, %v3508_v38 }
  0xfe   :  { %v219_v48 = vrot.slane %v218_v46, 4 }
  0xff   :  { %v225_v49 = vsel %vm217_vm0, %v215_v47, 0.0 }
 0x100   :  { %v220_v50 = vadd.f32 %v219_v48, %v218_v46  ;;  %v226_v51 = vrot.slane %v225_v49, 4  ;;  %v430_v46 = vrot.slane %v417_v43, %v429_v42 }
 0x102   :  { %v221_v52 = vrot.slane %v220_v50, 2  ;;  %v227_v53 = vadd.f32 %v226_v51, %v225_v49 }
 0x104   :  { %v222_v54 = vadd.f32 %v221_v52, %v220_v50  ;;  %v228_v55 = vrot.slane %v227_v53, 2 }
 0x106   :  { %v223_v56 = vrot.slane %v222_v54, 1  ;;  %v229_v57 = vadd.f32 %v228_v55, %v227_v53 }
 0x108   :  { %v224_v58 = vadd.f32 %v223_v56, %v222_v54  ;;  %v230_v59 = vrot.slane %v229_v57, 1 }
 0x10a   :  { %v233_v60 = vmul.f32 0.5, %v224_v58  ;;  %v231_v61 = vadd.f32 %v230_v59, %v229_v57 }
 0x10c   :  { %v235_v62 = vsub.f32 %v213_v44, %v233_v60  ;;  %v234_v63 = vmul.f32 0.5, %v231_v61  ;;  %v433_v44 = vsub.s32 3, %v3505_v37  ;;  %v3560_v61 = vld [vmem:[%s4876_s7 + $0x8] sm:$0xff] }
 0x10e   :  { %v237_v1 = vmul.f32 %v235_v62, %v235_v62  ;;  %v236_v2 = vsub.f32 %v215_v47, %v234_v63  ;;  %v426_v47 = vrot.slane %v417_v43, %v3514_v40  ;;  %v434_v48 = vrot.slane %v417_v43, %v433_v44  ;;  %v3546_v40 = vld [vmem:[%s4876_s7] sm:$0xff]  ;;  %v3570_v63 = vld [vmem:[%s4876_s7 + $0x10] sm:$0xff] }
 0x110   :  { %v239_v3 = vsel %vm217_vm0, %v237_v1, 0.0  ;;  %v238_v4 = vmul.f32 %v236_v2, %v236_v2  ;;  %v3580_v1 = vld [vmem:[%s4876_s7 + $0x18] sm:$0xff] }
 0x111   :  { %v240_v5 = vrot.slane %v239_v3, 4 }
 0x112   :  { %v246_v6 = vsel %vm217_vm0, %v238_v4, 0.0  ;;  %v3290_v4 = vmov 0  }
 0x113   :  { %v241_v7 = vadd.f32 %v240_v5, %v239_v3  ;;  %v247_v8 = vrot.slane %v246_v6, 4  ;;  %v1278_v3 = vld [vmem:[%s4877_s8 + $0x10] sm:$0xff]  ;;  %3199 = vset.pattern.permute.xlu0 %v3290_v4  ;;  %3200 = vset.pattern.permute.xlu1 %v3290_v4  ;;  %v1276_v5 = vld [vmem:[%s4877_s8] sm:$0xff] }
 0x115   :  { %v242_v9 = vrot.slane %v241_v7, 2  ;;  %v248_v10 = vadd.f32 %v247_v8, %v246_v6  ;;  %v1277_v6 = vld [vmem:[%s4877_s8 + $0x8] sm:$0xff] }
 0x117   :  { %v243_v11 = vadd.f32 %v242_v9, %v241_v7  ;;  %v249_v12 = vrot.slane %v248_v10, 2  ;;  %v630_v7 = vpop.permute.xlu1 %629 }
 0x119   :  { %v244_v13 = vrot.slane %v243_v11, 1  ;;  %v250_v14 = vadd.f32 %v249_v12, %v248_v10  ;;  %v3125_v12 = vld [vmem:[%s4876_s7 + $0x20] sm:$0xff] }
 0x11b   :  { %v245_v15 = vadd.f32 %v244_v13, %v243_v11  ;;  %v251_v16 = vrot.slane %v250_v14, 1 }
 0x11d   :  { %v253_v17 = vmul.f32 0.5, %v245_v15  ;;  %v252_v18 = vadd.f32 %v251_v16, %v250_v14 }
 0x11f   :  { %v255_v19 = vadd.f32 1e-05, %v253_v17  ;;  %v254_v20 = vmul.f32 0.5, %v252_v18  ;;  %v3126_v17 = vld [vmem:[%s4876_s7 + $0x28] sm:$0xff] }
 0x121   :  { %3201 = vrsqrt.f32 %v255_v19  ;;  %v256_v21 = vadd.f32 1e-05, %v254_v20 }
 0x123   :  { %3203 = vrsqrt.f32 %v256_v21 }
 0x12e   :  { %v3202_v23 = vpop.eup %3201 }
 0x12f   :  { %v259_v25 = vmul.f32 %v3202_v23, %v235_v62  ;;  %v617_v62 = vld [vmem:[#allocation2 + $0x20] sm:$0xf] }
 0x130   :  { %v3204_v28 = vpop.eup %3203  ;;  %v3153_v23 = vld [vmem:[%s4876_s7 + $0x40] sm:$0xff] }
 0x131   :  { %v260_v29 = vmul.f32 %v3204_v28, %v236_v2  ;;  %v273_v32 = vmul.f32 %v266_v24, %v259_v25  ;;  %v1279_v2 = vld [vmem:[%s4877_s8 + $0x18] sm:$0xff] }
 0x132   :  { %v3128_v25 = vld [vmem:[%s4876_s7 + $0x38] sm:$0xff] }
 0x133   :  { %v274_v33 = vmul.f32 %v270_v26, %v260_v29  ;;  %v287_v35 = vadd.f32 %v280_v31, %v273_v32  ;;  %v3154_v26 = vld [vmem:[%s4876_s7 + $0x48] sm:$0xff]  ;;  %v3156_v31 = vld [vmem:[%s4876_s7 + $0x58] sm:$0xff] }
 0x135   :  { %v288_v34 = vadd.f32 %v284_v30, %v274_v33 }
 0x137   :  { %503 = vmatprep.mubr.f32.mxu1 %v288_v34  ;;  %574 = vmatprep.mubr.f32.mxu0 %v288_v34 }
 0x138   :  { %504 = vmatmul.mubr.f32.vlgmr.msra.gmra.mxu1 %v287_v35  ;;  %575 = vmatmul.mubr.f32.vlgmr.msra.gmra.mxu0 %v287_v35 }
 0x139   :  { %928 = vmatprep.mubr.f32.mxu0 %v3287_v0  ;;  %730 = vmatprep.mubr.f32.mxu1 %v3287_v0 }
 0x1f8   :  { %v505_v49 = vpop.f32.mrf.mxu1  ;;  %v576_v50 = vpop.f32.mrf.mxu0 }
 0x1f9   :  { %v506_v51 = vadd.f32 %v505_v49, %v422_v45  ;;  %v577_v52 = vadd.f32 %v576_v50, %v430_v46 }
 0x1fa   :  { %v507_v53 = vpop.f32.mrf.mxu1  ;;  %v578_v54 = vpop.f32.mrf.mxu0 }
 0x1fb   :  { %581 = vst [vmem:[#allocation2 + $0x8] sm:$0x1] %v506_v51  ;;  %v586_v55 = vrot.slane %v506_v51, 1  ;;  %583 = vst [vmem:[#allocation2 + $0xa] sm:$0x1] %v577_v52  ;;  %v594_v56 = vrot.slane %v577_v52, 1  ;;  %v508_v57 = vadd.f32 %v507_v53, %v426_v47  ;;  %v579_v58 = vadd.f32 %v578_v54, %v434_v48 }
 0x1fd   :  { %588 = vst [vmem:[#allocation2 + $0x18] sm:$0x1] %v586_v55  ;;  %596 = vst [vmem:[#allocation2 + $0x1a] sm:$0x1] %v594_v56  ;;  %v590_v37 = vrot.slane %v508_v57, 1  ;;  %v598_v38 = vrot.slane %v579_v58, 1 }
 0x1fe   :  { %582 = vst [vmem:[#allocation2 + $0x9] sm:$0x1] %v508_v57  ;;  %584 = vst [vmem:[#allocation2 + $0xb] sm:$0x1] %v579_v58 }
 0x1ff   :  { %592 = vst [vmem:[#allocation2 + $0x19] sm:$0x1] %v590_v37  ;;  %600 = vst [vmem:[#allocation2 + $0x1b] sm:$0x1] %v598_v38 }
 0x205   :  { %v614_v59 = vld [vmem:[#allocation2 + $0x8] sm:$0xf] }
 0x206   :  { %631 = vrot.lane.b32.xlu0 %v614_v59, %s3288_s4  ;;  %3142 = vmatpush1.msk.msra.mxu0 %vm657_vm1, %v614_v59  ;;  %v3550_v60 = vld [vmem:[#allocation2 + $0x18] sm:$0xf] }
 0x207   :  { %3143 = vmatmul.mubr.msk.f32.vlgmr.msra.gmra.mxu0 %vm644_vm2, %v3546_v40  ;;  %635 = vrot.lane.b32.xlu1 %v3550_v60, %s3288_s4 }
 0x208   :  { %934 = vmatprep.mubr.f32.mxu0 %v3287_v0 }
 0x20a   :  { %633 = vrot.lane.b32.xlu0 %v615_v41, %s3288_s4 }
 0x20b   :  { %3144 = vmatmul.mubr.msk.f32.gmra.mxu0 %vm644_vm2, %v3560_v61  ;;  %1049 = vrot.lane.b32.xlu1 %v614_v59, %s3289_s26 }
 0x20c   :  { %940 = vmatprep.mubr.f32.mxu0 %v3287_v0 }
 0x20e   :  { %637 = vrot.lane.b32.xlu0 %v617_v62, %s3288_s4 }
 0x20f   :  { %3145 = vmatmul.mubr.msk.f32.gmra.mxu0 %vm644_vm2, %v3570_v63  ;;  %1047 = vrot.lane.b32.xlu1 %v623_v39, %s3289_s26 }
 0x210   :  { %946 = vmatprep.mubr.f32.mxu0 %v3287_v0 }
 0x212   :  { %1051 = vrot.lane.b32.xlu0 %v615_v41, %s3289_s26 }
 0x213   :  { %3146 = vmatmul.mubr.msk.f32.gmra.mxu0 %vm644_vm2, %v3580_v1  ;;  %1055 = vrot.lane.b32.xlu1 %v617_v62, %s3289_s26 }
 0x214   :  { %1146 = vmatprep.mubr.f32.mxu0 %v3287_v0 }
 0x216   :  { %1053 = vrot.lane.b32.xlu0 %v3550_v60, %s3289_s26 }
 0x217   :  { %1292 = vperm.xlu1 %3200, %v1278_v3  }
 0x21a   :  { %1297 = vperm.xlu0 %3199, %v1279_v2  }
 0x21b   :  { %1287 = vperm.xlu1 %3200, %v1277_v6   ;;  %v602_v6 = vand.u32 127, %v136_v36 }
 0x21e   :  { %1282 = vperm.xlu0 %3199, %v1276_v5  }
 0x278   :  { %v632_v8 = vpop.permute.xlu0 %631 }
 0x279   :  { %v636_v9 = vpop.permute.xlu1 %635  ;;  %v640_v13 = vsel %vm639_vm3, %v630_v7, %v632_v8 }
 0x27c   :  { %v634_v10 = vpop.permute.xlu0 %633 }
 0x27d   :  { %v641_v11 = vsel %vm639_vm3, %v632_v8, %v634_v10  ;;  %v1050_v14 = vpop.permute.xlu1 %1049  ;;  %v642_v18 = vsel %vm639_vm3, %v634_v10, %v636_v9 }
 0x27e   :  { %3129 = vmatprep.subr.msk.mxu1 %vm657_vm1, %v641_v11  ;;  %v3699_v11 = vadd.s32 128, %v602_v6 }
 0x27f   :  { %3130 = vmatpush1.msk.msra.mxu1 %vm657_vm1, %v640_v13 }
 0x280   :  { %v638_v15 = vpop.permute.xlu0 %637  ;;  %3131 = vmatmul.mubr.msk.f32.vlgmr.msra.gmra.mxu1 %vm644_vm2, %v3125_v12  ;;  %v607_v36 = vand.u32 255, %v3699_v11 }
 0x281   :  { %v643_v16 = vsel %vm639_vm3, %v636_v9, %v638_v15  ;;  %736 = vmatprep.mubr.f32.mxu1 %v3287_v0  ;;  %v1048_v19 = vpop.permute.xlu1 %1047 }
 0x282   :  { %3135 = vmatprep.subr.msk.mxu1 %vm657_vm1, %v643_v16  ;;  %v1058_v24 = vsel %vm1057_vm4, %v1048_v19, %v1050_v14  ;;  %vm3713_vm5 = vcmp.lt.s32.totalorder %v607_v36, 130 }
 0x283   :  { %3136 = vmatpush1.msk.msra.mxu1 %vm657_vm1, %v642_v18  ;;  %v3701_v18 = vadd.s32 384, %v602_v6 }
 0x284   :  { %v1052_v20 = vpop.permute.xlu0 %1051  ;;  %3132 = vmatmul.mubr.msk.f32.gmra.mxu1 %vm644_vm2, %v3126_v17  ;;  %3147 = vmatprep.subr.msk.mxu1 %vm657_vm1, %v617_v62 }
 0x285   :  { %v1059_v21 = vsel %vm1057_vm4, %v1050_v14, %v1052_v20  ;;  %742 = vmatprep.mubr.f32.mxu1 %v3287_v0  ;;  %v1056_v29 = vpop.permute.xlu1 %1055 }
 0x286   :  { %3157 = vmatprep.subr.msk.mxu0 %vm657_vm1, %v1059_v21 }
 0x287   :  { %3158 = vmatpush1.msk.msra.mxu0 %vm657_vm1, %v1058_v24 }
 0x288   :  { %3133 = vmatmul.mubr.msk.f32.gmra.mxu1 %vm644_vm2, %v3127_v22  ;;  %3159 = vmatmul.mubr.msk.f32.vlgmr.msra.gmra.mxu0 %vm644_vm2, %v3153_v23  ;;  %v1054_v28 = vpop.permute.xlu0 %1053 }
 0x289   :  { %748 = vmatprep.mubr.f32.mxu1 %v3287_v0  ;;  %1152 = vmatprep.mubr.f32.mxu0 %v3287_v0  ;;  %v3155_v0 = vld [vmem:[%s4876_s7 + $0x50] sm:$0xff]  ;;  %v1061_v30 = vsel %vm1057_vm4, %v1054_v28, %v1056_v29  ;;  %v1060_v32 = vsel %vm1057_vm4, %v1052_v20, %v1054_v28 }
 0x28c   :  { %3134 = vmatmul.mubr.msk.f32.gmra.mxu1 %vm644_vm2, %v3128_v25  ;;  %3160 = vmatmul.mubr.msk.f32.gmra.mxu0 %vm644_vm2, %v3154_v26 }
 0x28d   :  { %819 = vmatprep.mubr.f32.mxu1 %v3642_v27  ;;  %1158 = vmatprep.mubr.f32.mxu0 %v3642_v27 }
 0x290   :  { %3137 = vmatmul.mubr.msk.f32.vlgmr.msra.gmra.mxu1 %vm644_vm2, %v3125_v12  ;;  %3161 = vmatmul.mubr.msk.f32.gmra.mxu0 %vm644_vm2, %v3155_v0 }
 0x291   :  { %3148 = vmatpush1.msk.msra.mxu1 %vm657_vm1, %v3550_v60  ;;  %825 = vmatprep.mubr.f32.mxu1 %v3642_v27 }
 0x292   :  { %3163 = vmatprep.subr.msk.mxu1 %vm657_vm1, %v1061_v30  ;;  %1164 = vmatprep.mubr.f32.mxu0 %v3642_v27  ;;  %v1293_v12 = vpop.permute.xlu1 %1292 }
 0x294   :  { %3138 = vmatmul.mubr.msk.f32.gmra.mxu1 %vm644_vm2, %v3126_v17  ;;  %3162 = vmatmul.mubr.msk.f32.gmra.mxu0 %vm644_vm2, %v3156_v31 }
 0x295   :  { %831 = vmatprep.mubr.f32.mxu1 %v3642_v27  ;;  %1905 = vmatprep.mubr.f32.mxu0 %v3642_v27  ;;  %v3703_v19 = vpop.permute.xlu0 %1297 }
 0x298   :  { %3139 = vmatmul.mubr.msk.f32.gmra.mxu1 %vm644_vm2, %v3127_v22 }
 0x299   :  { %837 = vmatprep.mubr.f32.mxu1 %v3642_v27 }
 0x29c   :  { %3140 = vmatmul.mubr.msk.f32.gmra.mxu1 %vm644_vm2, %v3128_v25 }
 0x29d   :  { %1017 = vmatprep.mubr.f32.mxu1 %v3642_v27 }
 0x2a0   :  { %3149 = vmatmul.mubr.msk.f32.vlgmr.msra.gmra.mxu1 %vm644_vm2, %v3546_v40 }
 0x2a1   :  { %3164 = vmatpush1.msk.msra.mxu1 %vm657_vm1, %v1060_v32  ;;  %1023 = vmatprep.mubr.f32.mxu1 %v3642_v27  ;;  %v1288_v32 = vpop.permute.xlu1 %1287 }
 0x2a4   :  { %3150 = vmatmul.mubr.msk.f32.gmra.mxu1 %vm644_vm2, %v3560_v61 }
 0x2a5   :  { %1029 = vmatprep.mubr.f32.mxu1 %v3642_v27 }
 0x2a8   :  { %3151 = vmatmul.mubr.msk.f32.gmra.mxu1 %vm644_vm2, %v3570_v63 }
 0x2a9   :  { %1035 = vmatprep.mubr.f32.mxu1 %v3642_v27 }
 0x2ac   :  { %3152 = vmatmul.mubr.msk.f32.gmra.mxu1 %vm644_vm2, %v3580_v1 }
 0x2ad   :  { %1235 = vmatprep.mubr.f32.mxu1 %v3642_v27 }
 0x2b0   :  { %3165 = vmatmul.mubr.msk.f32.vlgmr.msra.gmra.mxu1 %vm644_vm2, %v3153_v23 }
 0x2b1   :  { %1241 = vmatprep.mubr.f32.mxu1 %v3642_v27 }
 0x2b4   :  { %3166 = vmatmul.mubr.msk.f32.gmra.mxu1 %vm644_vm2, %v3154_v26 }
 0x2b5   :  { %1247 = vmatprep.mubr.f32.mxu1 %v3642_v27 }
 0x2b8   :  { %3167 = vmatmul.mubr.msk.f32.gmra.mxu1 %vm644_vm2, %v3155_v0 }
 0x2b9   :  { %1253 = vmatprep.mubr.f32.mxu1 %v3642_v27 }
 0x2bc   :  { %3168 = vmatmul.mubr.msk.f32.gmra.mxu1 %vm644_vm2, %v3156_v31 }
 0x2bd   :  { %1994 = vmatprep.mubr.f32.mxu1 %v3642_v27 }
 0x2c7   :  { %v930_v33 = vpop.f32.mrf.mxu0 }
 0x2c9   :  { %v932_v34 = vpop.f32.mrf.mxu0 }
 0x2cb   :  { %v936_v35 = vpop.f32.mrf.mxu0 }
 0x2cd   :  { %v938_v39 = vpop.f32.mrf.mxu0 }
 0x2cf   :  { %v942_v43 = vpop.f32.mrf.mxu0 }
 0x2d1   :  { %v944_v46 = vpop.f32.mrf.mxu0 }
 0x2d3   :  { %v948_v49 = vpop.f32.mrf.mxu0 }
 0x2d5   :  { %v950_v52 = vpop.f32.mrf.mxu0 }
 0x340   :  { %v732_v41 = vpop.f32.mrf.mxu1 }
 0x341   :  { %v931_v26 = vadd.f32 %v930_v33, %v732_v41 }
 0x342   :  { %v734_v42 = vpop.f32.mrf.mxu1 }
 0x343   :  { %v933_v22 = vadd.f32 %v932_v34, %v734_v42  ;;  %v1801_v34 = vld [vmem:[%s4880_s11 + $0x8] sm:$0xff] }
 0x344   :  { %v738_v44 = vpop.f32.mrf.mxu1 }
 0x345   :  { %v937_v23 = vadd.f32 %v936_v35, %v738_v44 }
 0x346   :  { %v740_v45 = vpop.f32.mrf.mxu1 }
 0x347   :  { %v939_v14 = vadd.f32 %v938_v39, %v740_v45 }
 0x348   :  { %v744_v47 = vpop.f32.mrf.mxu1  ;;  %v1148_v55 = vpop.f32.mrf.mxu0 }
 0x349   :  { %v943_v24 = vadd.f32 %v942_v43, %v744_v47  ;;  %v1260_v33 = vadd.f32 %v1148_v55, %v931_v26  ;;  %v1283_v43 = vpop.permute.xlu0 %1282 }
 0x34a   :  { %v746_v48 = vpop.f32.mrf.mxu1  ;;  %v1150_v58 = vpop.f32.mrf.mxu0 }
 0x34b   :  { %v945_v10 = vadd.f32 %v944_v46, %v746_v48  ;;  %v1261_v29 = vadd.f32 %v1150_v58, %v933_v22  ;;  %v609_v46 = vand.u32 255, %v3701_v18  ;;  %v1300_v26 = vadd.f32 %v1283_v43, %v1260_v33 }
 0x34c   :  { %v750_v50 = vpop.f32.mrf.mxu1  ;;  %v1154_v40 = vpop.f32.mrf.mxu0 }
 0x34d   :  { %v949_v30 = vadd.f32 %v948_v49, %v750_v50  ;;  %v1264_v31 = vadd.f32 %v1154_v40, %v937_v23  ;;  %vm3750_vm6 = vcmp.lt.s32.totalorder %v609_v46, 130 }
 0x34e   :  { %v752_v51 = vpop.f32.mrf.mxu1  ;;  %v1156_v61 = vpop.f32.mrf.mxu0 }
 0x34f   :  { %v951_v20 = vadd.f32 %v950_v52, %v752_v51  ;;  %v1265_v21 = vadd.f32 %v1156_v61, %v939_v14  ;;  %v3723_v51 = vadd.f32 %v1283_v43, %v1261_v29  ;;  %v3727_v55 = vadd.f32 %v1288_v32, %v1264_v31 }
 0x350   :  { %v3690_v53 = vpop.f32.mrf.mxu1  ;;  %v1160_v1 = vpop.f32.mrf.mxu0 }
 0x351   :  { %v1268_v39 = vadd.f32 %v1160_v1, %v943_v24  ;;  %v3709_v48 = vadd.f32 %v1288_v32, %v1265_v21  ;;  %v1803_v21 = vld [vmem:[%s4880_s11 + $0x18] sm:$0xff] }
 0x352   :  { %v3692_v54 = vpop.f32.mrf.mxu1  ;;  %v1162_v4 = vpop.f32.mrf.mxu0 }
 0x353   :  { %v1269_v15 = vadd.f32 %v1162_v4, %v945_v10  ;;  %v3725_v52 = vadd.f32 %v1293_v12, %v1268_v39 }
 0x354   :  { %v827_v56 = vpop.f32.mrf.mxu1  ;;  %v1166_v8 = vpop.f32.mrf.mxu0 }
 0x355   :  { %v3706_v0 = vadd.f32 %v1293_v12, %v1269_v15  ;;  %v1272_v35 = vadd.f32 %v1166_v8, %v949_v30 }
 0x356   :  { %v829_v57 = vpop.f32.mrf.mxu1  ;;  %v1168_v16 = vpop.f32.mrf.mxu0 }
 0x357   :  { %v1273_v28 = vadd.f32 %v1168_v16, %v951_v20  ;;  %v1337_v44 = vsel %vm3713_vm5, %v3706_v0, 0.0  ;;  %v3733_v4 = vadd.f32 %v3703_v19, %v1272_v35 }
 0x358   :  { %v833_v37 = vpop.f32.mrf.mxu1 }
 0x359   :  { %v3721_v47 = vadd.f32 %v3703_v19, %v1273_v28 }
 0x35a   :  { %v835_v38 = vpop.f32.mrf.mxu1 }
 0x35c   :  { %v3694_v59 = vpop.f32.mrf.mxu1 }
 0x35e   :  { %v3696_v60 = vpop.f32.mrf.mxu1 }
 0x360   :  { %v1019_v62 = vpop.f32.mrf.mxu1 }
 0x362   :  { %v1021_v63 = vpop.f32.mrf.mxu1 }
 0x364   :  { %v1025_v2 = vpop.f32.mrf.mxu1 }
 0x365   :  { %v1026_v41 = vadd.f32 %v1025_v2, %v827_v56  ;;  %v1333_v2 = vsel %vm3713_vm5, %v3709_v48, 0.0 }
 0x366   :  { %v1027_v3 = vpop.f32.mrf.mxu1 }
 0x367   :  { %v1028_v49 = vadd.f32 %v1027_v3, %v829_v57  ;;  %v1020_v57 = vadd.f32 %v1019_v62, %v3690_v53 }
 0x368   :  { %v1031_v5 = vpop.f32.mrf.mxu1 }
 0x369   :  { %v1032_v50 = vadd.f32 %v1031_v5, %v833_v37  ;;  %v1022_v37 = vadd.f32 %v1021_v63, %v3692_v54  ;;  %v1354_v5 = vadd.f32 %v1337_v44, %v3725_v52  ;;  %v1323_v44 = vld [vmem:[%s4879_s10 + $0x18] sm:$0xff] }
 0x36a   :  { %v1033_v7 = vpop.f32.mrf.mxu1 }
 0x36b   :  { %v1034_v56 = vadd.f32 %v1033_v7, %v835_v38  ;;  %v1341_v38 = vsel %vm3713_vm5, %v3721_v47, 0.0 }
 0x36c   :  { %v1037_v9 = vpop.f32.mrf.mxu1  ;;  %v1359_v22 = vadd.f32 %v1341_v38, %v3733_v4 }
 0x36d   :  { %v1038_v6 = vadd.f32 %v1037_v9, %v3694_v59  ;;  %v1329_v59 = vsel %vm3713_vm5, %v3723_v51, 0.0  ;;  %v1349_v9 = vadd.f32 %v1333_v2, %v3727_v55 }
 0x36e   :  { %v1039_v13 = vpop.f32.mrf.mxu1 }
 0x36f   :  { %v1040_v10 = vadd.f32 %v1039_v13, %v3696_v60 }
 0x370   :  { %v1237_v17 = vpop.f32.mrf.mxu1 }
 0x371   :  { %v1262_v14 = vadd.f32 %v1237_v17, %v1020_v57 }
 0x372   :  { %v1239_v25 = vpop.f32.mrf.mxu1 }
 0x373   :  { %v1263_v15 = vadd.f32 %v1239_v25, %v1022_v37  ;;  %v1302_v23 = vadd.f32 %v1283_v43, %v1262_v14 }
 0x374   :  { %v1243_v45 = vpop.f32.mrf.mxu1 }
 0x375   :  { %v1266_v58 = vadd.f32 %v1243_v45, %v1026_v41  ;;  %v1303_v28 = vadd.f32 %v1283_v43, %v1263_v15  ;;  %v1319_v43 = vld [vmem:[%s4878_s9 + $0x18] sm:$0xff] }
 0x376   :  { %v1245_v42 = vpop.f32.mrf.mxu1 }
 0x377   :  { %v1267_v61 = vadd.f32 %v1245_v42, %v1028_v49  ;;  %v1306_v16 = vadd.f32 %v1288_v32, %v1266_v58  ;;  %v1331_v42 = vsel %vm3750_vm6, %v1303_v28, 0.0  ;;  %v1317_v49 = vld [vmem:[%s4878_s9 + $0x8] sm:$0xff] }
 0x378   :  { %v1249_v40 = vpop.f32.mrf.mxu1 }
 0x379   :  { %v1270_v1 = vadd.f32 %v1249_v40, %v1032_v50  ;;  %v1307_v62 = vadd.f32 %v1288_v32, %v1267_v61  ;;  %v1350_v25 = vadd.f32 %v1349_v9, %v1306_v16  ;;  %v1344_v32 = vadd.f32 %v1329_v59, %v1300_v26  ;;  %v1322_v50 = vld [vmem:[%s4879_s10 + $0x10] sm:$0xff] }
 0x37a   :  { %v1251_v3 = vpop.f32.mrf.mxu1 }
 0x37b   :  { %v3742_v7 = vadd.f32 %v1293_v12, %v1270_v1  ;;  %v1271_v8 = vadd.f32 %v1251_v3, %v1034_v56  ;;  %v1335_v31 = vsel %vm3750_vm6, %v1307_v62, 0.0  ;;  %v1345_v41 = vadd.f32 %v1344_v32, %v1302_v23 }
 0x37c   :  { %v1255_v53 = vpop.f32.mrf.mxu1  ;;  %v1351_v35 = vadd.f32 %v1350_v25, %v1335_v31 }
 0x37d   :  { %v3745_v54 = vadd.f32 %v1293_v12, %v1271_v8  ;;  %v1274_v63 = vadd.f32 %v1255_v53, %v1038_v6  ;;  %v1355_v20 = vadd.f32 %v1354_v5, %v3742_v7  ;;  %v1346_v33 = vadd.f32 %v1345_v41, %v1331_v42 }
 0x37e   :  { %v1257_v60 = vpop.f32.mrf.mxu1 }
 0x37f   :  { %v1314_v13 = vadd.f32 %v3703_v19, %v1274_v63  ;;  %v1275_v12 = vadd.f32 %v1257_v60, %v1040_v10  ;;  %v1339_v17 = vsel %vm3750_vm6, %v3745_v54, 0.0 }
 0x380   :  { %v1356_v24 = vadd.f32 %v1355_v20, %v1339_v17 }
 0x381   :  { %v1315_v29 = vadd.f32 %v3703_v19, %v1275_v12  ;;  %v1360_v30 = vadd.f32 %v1359_v22, %v1314_v13  ;;  %v1318_v19 = vld [vmem:[%s4878_s9 + $0x10] sm:$0xff] }
 0x382   :  { %1357 = vadd.xlane.f32.xlu0 %v1356_v24 }
 0x383   :  { %v1343_v39 = vsel %vm3750_vm6, %v1315_v29, 0.0 }
 0x384   :  { %v1361_v45 = vadd.f32 %v1360_v30, %v1343_v39 }
 0x386   :  { %1362 = vadd.xlane.f32.xlu1 %v1361_v45  ;;  %1352 = vadd.xlane.f32.xlu0 %v1351_v35 }
 0x38a   :  { %1347 = vadd.xlane.f32.xlu1 %v1346_v33 }
 0x39b   :  { %1476 = vperm.xlu1 %3200, %v1318_v19  }
 0x39c   :  { %1481 = vperm.xlu0 %3199, %v1319_v43  }
 0x39f   :  { %1517 = vperm.xlu1 %3200, %v1323_v44  }
 0x3a0   :  { %1471 = vperm.xlu0 %3199, %v1317_v49  }
 0x3a3   :  { %1512 = vperm.xlu1 %3200, %v1322_v50  }
 0x40b   :  { %v1358_v58 = vpop.xlane.xlu0 %1357 }
 0x40c   :  { %v1366_v40 = vmul.f32 0.0038461538, %v1358_v58 }
 0x40e   :  { %v3786_v1 = vsub.f32 %v3706_v0, %v1366_v40  ;;  %v3805_v0 = vsub.f32 %v3725_v52, %v1366_v40  ;;  %v3856_v31 = vsub.f32 %v3745_v54, %v1366_v40 }
 0x40f   :  { %v1353_v56 = vpop.xlane.xlu0 %1352  ;;  %v1363_v61 = vpop.xlane.xlu1 %1362 }
 0x410   :  { %v1365_v2 = vmul.f32 0.0038461538, %v1353_v56  ;;  %v1367_v57 = vmul.f32 0.0038461538, %v1363_v61  ;;  %v1395_v49 = vmul.f32 %v3856_v31, %v3856_v31  ;;  %v1321_v61 = vld [vmem:[%s4879_s10 + $0x8] sm:$0xff] }
 0x412   :  { %v3789_v37 = vsub.f32 %v3709_v48, %v1365_v2  ;;  %v3792_v3 = vsub.f32 %v3721_v47, %v1367_v57  ;;  %v3795_v5 = vsub.f32 %v3727_v55, %v1365_v2  ;;  %v3797_v6 = vsub.f32 %v1306_v16, %v1365_v2 }
 0x413   :  { %v1348_v38 = vpop.xlane.xlu1 %1347  ;;  %v3799_v8 = vsub.f32 %v1307_v62, %v1365_v2  ;;  %v3802_v10 = vsub.f32 %v3733_v4, %v1367_v57  ;;  %v1393_v55 = vmul.f32 %v3786_v1, %v3786_v1  ;;  %v3813_v15 = vsub.f32 %v1314_v13, %v1367_v57  ;;  %v1316_v2 = vld [vmem:[%s4878_s9] sm:$0xff] }
 0x414   :  { %v1364_v14 = vmul.f32 0.0038461538, %v1348_v38  ;;  %v1388_v48 = vmul.f32 %v3795_v5, %v3795_v5  ;;  %v1389_v47 = vmul.f32 %v3789_v37, %v3789_v37  ;;  %v3815_v16 = vsub.f32 %v1315_v29, %v1367_v57  ;;  %v1320_v57 = vld [vmem:[%s4879_s10] sm:$0xff] }
 0x415   :  { %v1396_v4 = vmul.f32 %v3802_v10, %v3802_v10  ;;  %v1397_v52 = vmul.f32 %v3792_v3, %v3792_v3  ;;  %v1391_v62 = vmul.f32 %v3799_v8, %v3799_v8  ;;  %v1390_v59 = vmul.f32 %v3797_v6, %v3797_v6 }
 0x416   :  { %v3822_v53 = vsub.f32 %v3723_v51, %v1364_v14  ;;  %v1405_v63 = vsel %vm3713_vm5, %v1389_v47, 0.0  ;;  %v3828_v20 = vsub.f32 %v1300_v26, %v1364_v14  ;;  %v1392_v13 = vmul.f32 %v3805_v0, %v3805_v0 }
 0x417   :  { %v1421_v60 = vadd.f32 %v1405_v63, %v1388_v48  ;;  %v1413_v9 = vsel %vm3713_vm5, %v1397_v52, 0.0  ;;  %v3836_v12 = vsub.f32 %v1302_v23, %v1364_v14  ;;  %v3838_v17 = vsub.f32 %v1303_v28, %v1364_v14  ;;  %v3899_v38 = vpop.permute.xlu1 %1476  ;;  %v3901_v14 = vpop.permute.xlu0 %1481 }
 0x418   :  { %v1431_v51 = vadd.f32 %v1413_v9, %v1396_v4  ;;  %v1384_v22 = vmul.f32 %v3828_v20, %v3828_v20  ;;  %v1398_v25 = vmul.f32 %v3813_v15, %v3813_v15  ;;  %v1385_v26 = vmul.f32 %v3822_v53, %v3822_v53 }
 0x419   :  { %v1422_v24 = vadd.f32 %v1421_v60, %v1390_v59  ;;  %v1409_v29 = vsel %vm3713_vm5, %v1393_v55, 0.0  ;;  %v1407_v30 = vsel %vm3750_vm6, %v1391_v62, 0.0  ;;  %v1399_v23 = vmul.f32 %v3815_v16, %v3815_v16 }
 0x41a   :  { %v3853_v28 = vsub.f32 %v3742_v7, %v1366_v40  ;;  %v1432_v39 = vadd.f32 %v1431_v51, %v1398_v25  ;;  %v1387_v45 = vmul.f32 %v3838_v17, %v3838_v17  ;;  %v1401_v35 = vsel %vm3713_vm5, %v1385_v26, 0.0 }
 0x41b   :  { %v1423_v32 = vadd.f32 %v1422_v24, %v1407_v30  ;;  %v1386_v41 = vmul.f32 %v3836_v12, %v3836_v12  ;;  %v1416_v42 = vadd.f32 %v1401_v35, %v1384_v22  ;;  %v1426_v33 = vadd.f32 %v1409_v29, %v1392_v13  ;;  %v3903_v48 = vpop.permute.xlu1 %1517  ;;  %v1472_v47 = vpop.permute.xlu0 %1471 }
 0x41c   :  { %v1415_v7 = vsel %vm3750_vm6, %v1399_v23, 0.0  ;;  %v1394_v54 = vmul.f32 %v3853_v28, %v3853_v28  ;;  %v1403_v44 = vsel %vm3750_vm6, %v1387_v45, 0.0  ;;  %v1411_v40 = vsel %vm3750_vm6, %v1395_v49, 0.0 }
 0x41d   :  { %1424 = vadd.xlane.f32.xlu0 %v1423_v32  ;;  %v1417_v19 = vadd.f32 %v1416_v42, %v1386_v41  ;;  %v1433_v43 = vadd.f32 %v1432_v39, %v1415_v7 }
 0x41e   :  { %v1427_v58 = vadd.f32 %v1426_v33, %v1394_v54 }
 0x41f   :  { %v1418_v50 = vadd.f32 %v1417_v19, %v1403_v44  ;;  %v3905_v4 = vpop.permute.xlu1 %1512 }
 0x420   :  { %v1428_v56 = vadd.f32 %v1427_v58, %v1411_v40 }
 0x421   :  { %1434 = vadd.xlane.f32.xlu0 %v1433_v43  ;;  %1419 = vadd.xlane.f32.xlu1 %v1418_v50 }
 0x425   :  { %1429 = vadd.xlane.f32.xlu1 %v1428_v56 }
 0x436   :  { %1507 = vperm.xlu1 %3200, %v1321_v61  }
 0x437   :  { %1466 = vperm.xlu0 %3199, %v1316_v2  }
 0x43a   :  { %1758 = vrot.lane.b32.xlu1 %v3642_v27, %s3289_s26 }
 0x43b   :  { %1502 = vperm.xlu0 %3199, %v1320_v57  }
 0x43e   :  { %1738 = vrot.lane.b32.xlu1 %v3642_v27, %s3289_s26 }
 0x43f   :  { %1748 = vrot.lane.b32.xlu0 %v3642_v27, %s3289_s26 }
 0x442   :  { %1686 = vrot.lane.b32.xlu1 %v3642_v27, %s3288_s4 }
 0x443   :  { %1728 = vrot.lane.b32.xlu0 %v3642_v27, %s3289_s26 }
 0x446   :  { %1666 = vrot.lane.b32.xlu1 %v3642_v27, %s3288_s4 }
 0x447   :  { %1676 = vrot.lane.b32.xlu0 %v3642_v27, %s3288_s4 }
 0x44b   :  { %1656 = vrot.lane.b32.xlu0 %v3642_v27, %s3288_s4 }
 0x4a6   :  { %v1425_v55 = vpop.xlane.xlu0 %1424 }
 0x4a7   :  { %v1437_v52 = vmul.f32 0.0038461538, %v1425_v55 }
 0x4a9   :  { %v1441_v62 = vadd.f32 1e-05, %v1437_v52 }
 0x4aa   :  { %v1420_v63 = vpop.xlane.xlu1 %1419  ;;  %v1435_v27 = vpop.xlane.xlu0 %1434 }
 0x4ab   :  { %v1436_v59 = vmul.f32 0.0038461538, %v1420_v63  ;;  %3205 = vrsqrt.f32 %v1441_v62  ;;  %v1439_v19 = vmul.f32 0.0038461538, %v1435_v27 }
 0x4ad   :  { %v1440_v60 = vadd.f32 1e-05, %v1436_v59  ;;  %v1443_v49 = vadd.f32 1e-05, %v1439_v19 }
 0x4ae   :  { %v1430_v9 = vpop.xlane.xlu1 %1429 }
 0x4af   :  { %3207 = vrsqrt.f32 %v1440_v60  ;;  %v1438_v13 = vmul.f32 0.0038461538, %v1430_v9 }
 0x4b1   :  { %v1442_v51 = vadd.f32 1e-05, %v1438_v13 }
 0x4b2   :  { %v1467_v22 = vpop.permute.xlu0 %1466  ;;  %v1508_v50 = vpop.permute.xlu1 %1507 }
 0x4b3   :  { %3209 = vrsqrt.f32 %v1442_v51 }
 0x4b4   :  { %3211 = vrsqrt.f32 %v1443_v49 }
 0x4b6   :  { %v1503_v42 = vpop.permute.xlu0 %1502 }
 0x4b8   :  { %v3206_v24 = vpop.eup %3205 }
 0x4b9   :  { %v1453_v32 = vmul.f32 %v3206_v24, %v3789_v37 }
 0x4bb   :  { %v1489_v44 = vmul.f32 %v1472_v47, %v1453_v32 }
 0x4bc   :  { %v3208_v25 = vpop.eup %3207 }
 0x4bd   :  { %v1448_v26 = vmul.f32 %v3208_v25, %v3828_v20  ;;  %v1449_v29 = vmul.f32 %v3208_v25, %v3822_v53  ;;  %v1450_v30 = vmul.f32 %v3208_v25, %v3836_v12  ;;  %v1451_v23 = vmul.f32 %v3208_v25, %v3838_v17 }
 0x4be   :  { %v1455_v20 = vmul.f32 %v3206_v24, %v3799_v8  ;;  %v1452_v53 = vmul.f32 %v3206_v24, %v3795_v5  ;;  %v1525_v61 = vadd.f32 %v1508_v50, %v1489_v44  ;;  %v1454_v5 = vmul.f32 %v3206_v24, %v3797_v6 }
 0x4bf   :  { %v1484_v39 = vmul.f32 %v1467_v22, %v1448_v26  ;;  %v1485_v45 = vmul.f32 %v1467_v22, %v1449_v29  ;;  %v1486_v35 = vmul.f32 %v1467_v22, %v1450_v30  ;;  %v1487_v41 = vmul.f32 %v1467_v22, %v1451_v23 }
 0x4c0   :  { %v1491_v56 = vmul.f32 %v1472_v47, %v1455_v20  ;;  %v1488_v8 = vmul.f32 %v1472_v47, %v1452_v53  ;;  %v3210_v55 = vpop.eup %3209  ;;  %v1557_v59 = vmul.f32 0.2, %v1525_v61  ;;  %v1490_v60 = vmul.f32 %v1472_v47, %v1454_v5 }
 0x4c1   :  { %v1520_v33 = vadd.f32 %v1503_v42, %v1484_v39  ;;  %v1521_v7 = vadd.f32 %v1503_v42, %v1485_v45  ;;  %v1522_v54 = vadd.f32 %v1503_v42, %v1486_v35  ;;  %v1523_v43 = vadd.f32 %v1503_v42, %v1487_v41  ;;  %v3212_v41 = vpop.eup %3211 }
 0x4c2   :  { %v1527_v63 = vadd.f32 %v1508_v50, %v1491_v56  ;;  %v1524_v6 = vadd.f32 %v1508_v50, %v1488_v8  ;;  %vm1541_vm11 = vcmp.ge.f32.partialorder %v1525_v61, 0.0  ;;  %v1457_v13 = vmul.f32 %v3210_v55, %v3786_v1 }
 0x4c3   :  { %vm1536_vm7 = vcmp.ge.f32.partialorder %v1520_v33, 0.0  ;;  %vm1537_vm8 = vcmp.ge.f32.partialorder %v1521_v7, 0.0  ;;  %v1552_v12 = vmul.f32 0.2, %v1520_v33  ;;  %v1553_v17 = vmul.f32 0.2, %v1521_v7 }
 0x4c4   :  { %v1555_v37 = vmul.f32 0.2, %v1523_v43  ;;  %vm1539_vm9 = vcmp.ge.f32.partialorder %v1523_v43, 0.0  ;;  %v1554_v58 = vmul.f32 0.2, %v1522_v54  ;;  %vm1538_vm10 = vcmp.ge.f32.partialorder %v1522_v54, 0.0 }
 0x4c5   :  { %v3914_v40 = vsel %vm1536_vm7, %v1520_v33, %v1552_v12  ;;  %v3916_v2 = vsel %vm1537_vm8, %v1521_v7, %v1553_v17  ;;  %v1456_v27 = vmul.f32 %v3210_v55, %v3805_v0  ;;  %v1559_v51 = vmul.f32 0.2, %v1527_v63 }
 0x4c6   :  { %1730 = vrot.lane.b32.xlu0 %v3914_v40, %s3289_s26  ;;  %v1585_v57 = vsel %vm3713_vm5, %v3916_v2, 0.0  ;;  %v3924_v52 = vsel %vm1539_vm9, %v1523_v43, %v1555_v37  ;;  %v3927_v62 = vsel %vm1538_vm10, %v1522_v54, %v1554_v58  ;;  %v3940_v22 = vsel %vm1541_vm11, %v1525_v61, %v1557_v59 }
 0x4c7   :  { %1732 = vrot.lane.b32.xlu1 %v1585_v57, %s3289_s26  ;;  %v3934_v9 = vsel %vm3750_vm6, %v3924_v52, 0.0  ;;  %v1526_v47 = vadd.f32 %v1508_v50, %v1490_v60  ;;  %vm1543_vm12 = vcmp.ge.f32.partialorder %v1527_v63, 0.0  ;;  %v1556_v24 = vmul.f32 0.2, %v1524_v6 }
 0x4c8   :  { %vm1540_vm13 = vcmp.ge.f32.partialorder %v1524_v6, 0.0  ;;  %v1493_v25 = vmul.f32 %v3899_v38, %v1457_v13  ;;  %v1459_v26 = vmul.f32 %v3210_v55, %v3856_v31  ;;  %v1589_v1 = vsel %vm3713_vm5, %v3940_v22, 0.0 }
 0x4c9   :  { %v1492_v0 = vmul.f32 %v3899_v38, %v1456_v27  ;;  %v1458_v29 = vmul.f32 %v3210_v55, %v3853_v28  ;;  %v3952_v30 = vsel %vm1543_vm12, %v1527_v63, %v1559_v51  ;;  %v1558_v23 = vmul.f32 0.2, %v1526_v47  ;;  %v1806_v51 = vld [vmem:[%s4881_s12 + $0x10] sm:$0xff] }
 0x4ca   :  { %1734 = vrot.lane.b32.xlu0 %v3927_v62, %s3289_s26  ;;  %v3955_v32 = vsel %vm1540_vm13, %v1524_v6, %v1556_v24  ;;  %vm1542_vm14 = vcmp.ge.f32.partialorder %v1526_v47, 0.0  ;;  %v1529_v31 = vadd.f32 %v3905_v4, %v1493_v25  ;;  %v1495_v39 = vmul.f32 %v3899_v38, %v1459_v26  ;;  %v1804_v24 = vld [vmem:[%s4881_s12] sm:$0xff]  ;;  %v1749_v25 = vpop.permute.xlu0 %1748  ;;  %v1759_v26 = vpop.permute.xlu1 %1758 }
 0x4cb   :  { %1736 = vrot.lane.b32.xlu1 %v3934_v9, %s3289_s26  ;;  %v3964_v45 = vsel %vm3750_vm6, %v3952_v30, 0.0  ;;  %v1528_v28 = vadd.f32 %v3905_v4, %v1492_v0  ;;  %v1494_v35 = vmul.f32 %v3899_v38, %v1458_v29  ;;  %v3970_v42 = vsel %vm1542_vm14, %v1526_v47, %v1558_v23  ;;  %v1807_v47 = vld [vmem:[%s4881_s12 + $0x18] sm:$0xff] }
 0x4cc   :  { %v1561_v33 = vmul.f32 0.2, %v1529_v31  ;;  %v1531_v7 = vadd.f32 %v3905_v4, %v1495_v39  ;;  %vm1545_vm15 = vcmp.ge.f32.partialorder %v1529_v31, 0.0  ;;  %v1461_v38 = vmul.f32 %v3212_v41, %v3792_v3 }
 0x4cd   :  { %v1560_v19 = vmul.f32 0.2, %v1528_v28  ;;  %v1530_v54 = vadd.f32 %v3905_v4, %v1494_v35  ;;  %vm1544_vm0 = vcmp.ge.f32.partialorder %v1528_v28, 0.0  ;;  %v1463_v12 = vmul.f32 %v3212_v41, %v3815_v16 }
 0x4ce   :  { %1658 = vrot.lane.b32.xlu0 %v3914_v40, %s3288_s4  ;;  %v3980_v43 = vsel %vm1545_vm15, %v1529_v31, %v1561_v33  ;;  %v1563_v20 = vmul.f32 0.2, %v1531_v7  ;;  %vm1547_vm1 = vcmp.ge.f32.partialorder %v1531_v7, 0.0  ;;  %v1497_v4 = vmul.f32 %v3901_v14, %v1461_v38  ;;  %v1739_v0 = vpop.permute.xlu1 %1738 }
 0x4cf   :  { %1660 = vrot.lane.b32.xlu1 %v1585_v57, %s3288_s4  ;;  %v3982_v44 = vsel %vm1544_vm0, %v1528_v28, %v1560_v19  ;;  %v1562_v53 = vmul.f32 0.2, %v1530_v54  ;;  %vm1546_vm2 = vcmp.ge.f32.partialorder %v1530_v54, 0.0  ;;  %v1593_v3 = vsel %vm3713_vm5, %v3980_v43, 0.0 }
 0x4d0   :  { %v1460_v17 = vmul.f32 %v3212_v41, %v3802_v10  ;;  %v3993_v37 = vsel %vm1547_vm1, %v1531_v7, %v1563_v20  ;;  %v1533_v50 = vadd.f32 %v3903_v48, %v1497_v4  ;;  %v1499_v58 = vmul.f32 %v3901_v14, %v1463_v12 }
 0x4d1   :  { %v3995_v49 = vsel %vm1546_vm2, %v1530_v54, %v1562_v53  ;;  %v1595_v16 = vsel %vm3750_vm6, %v3993_v37, 0.0  ;;  %v1462_v10 = vmul.f32 %v3212_v41, %v3813_v15 }
 0x4d2   :  { %1742 = vrot.lane.b32.xlu0 %v1589_v1, %s3289_s26  ;;  %v1496_v56 = vmul.f32 %v3901_v14, %v1460_v17  ;;  %v1565_v61 = vmul.f32 0.2, %v1533_v50  ;;  %v1535_v5 = vadd.f32 %v3903_v48, %v1499_v58  ;;  %vm1549_vm7 = vcmp.ge.f32.partialorder %v1533_v50, 0.0  ;;  %v1687_v23 = vpop.permute.xlu1 %1686 }
 0x4d3   :  { %1740 = vrot.lane.b32.xlu1 %v3955_v32, %s3289_s26  ;;  %v1498_v57 = vmul.f32 %v3901_v14, %v1462_v10 }
 0x4d4   :  { %v1532_v8 = vadd.f32 %v3903_v48, %v1496_v56  ;;  %v4015_v55 = vsel %vm1549_vm7, %v1533_v50, %v1565_v61  ;;  %v1567_v15 = vmul.f32 0.2, %v1535_v5  ;;  %vm1551_vm8 = vcmp.ge.f32.partialorder %v1535_v5, 0.0 }
 0x4d5   :  { %v1534_v59 = vadd.f32 %v3903_v48, %v1498_v57  ;;  %v1597_v60 = vsel %vm3713_vm5, %v4015_v55, 0.0 }
 0x4d6   :  { %1746 = vrot.lane.b32.xlu0 %v3964_v45, %s3289_s26  ;;  %v1564_v63 = vmul.f32 0.2, %v1532_v8  ;;  %vm1548_vm9 = vcmp.ge.f32.partialorder %v1532_v8, 0.0  ;;  %v4023_v14 = vsel %vm1551_vm8, %v1535_v5, %v1567_v15  ;;  %v4067_v39 = vpop.permute.xlu1 %1666 }
 0x4d7   :  { %1744 = vrot.lane.b32.xlu1 %v3970_v42, %s3289_s26  ;;  %v1566_v13 = vmul.f32 0.2, %v1534_v59  ;;  %vm1550_vm10 = vcmp.ge.f32.partialorder %v1534_v59, 0.0  ;;  %v1599_v48 = vsel %vm3750_vm6, %v4023_v14, 0.0 }
 0x4d8   :  { %v4025_v6 = vsel %vm1548_vm9, %v1532_v8, %v1564_v63 }
 0x4d9   :  { %v4033_v27 = vsel %vm1550_vm10, %v1534_v59, %v1566_v13 }
 0x4da   :  { %1670 = vrot.lane.b32.xlu0 %v1589_v1, %s3288_s4  ;;  %v1729_v1 = vpop.permute.xlu0 %1728 }
 0x4db   :  { %1668 = vrot.lane.b32.xlu1 %v3955_v32, %s3288_s4 }
 0x4de   :  { %1750 = vrot.lane.b32.xlu0 %v3982_v44, %s3289_s26  ;;  %v4063_v29 = vpop.permute.xlu0 %1676 }
 0x4df   :  { %1752 = vrot.lane.b32.xlu1 %v1593_v3, %s3289_s26 }
 0x4e2   :  { %1754 = vrot.lane.b32.xlu0 %v3995_v49, %s3289_s26  ;;  %v4065_v31 = vpop.permute.xlu0 %1656 }
 0x4e3   :  { %1756 = vrot.lane.b32.xlu1 %v1595_v16, %s3289_s26 }
 0x4e6   :  { %1678 = vrot.lane.b32.xlu0 %v3982_v44, %s3288_s4 }
 0x4e7   :  { %1680 = vrot.lane.b32.xlu1 %v1593_v3, %s3288_s4 }
 0x4ea   :  { %1682 = vrot.lane.b32.xlu0 %v3995_v49, %s3288_s4 }
 0x4eb   :  { %1684 = vrot.lane.b32.xlu1 %v1595_v16, %s3288_s4 }
 0x4ee   :  { %1762 = vrot.lane.b32.xlu0 %v1597_v60, %s3289_s26 }
 0x4ef   :  { %1760 = vrot.lane.b32.xlu1 %v4025_v6, %s3289_s26 }
 0x4f2   :  { %1766 = vrot.lane.b32.xlu0 %v1599_v48, %s3289_s26 }
 0x4f3   :  { %1764 = vrot.lane.b32.xlu1 %v4033_v27, %s3289_s26 }
 0x4f6   :  { %1690 = vrot.lane.b32.xlu0 %v1597_v60, %s3288_s4 }
 0x4f7   :  { %1688 = vrot.lane.b32.xlu1 %v4025_v6, %s3288_s4 }
 0x4fa   :  { %1694 = vrot.lane.b32.xlu0 %v1599_v48, %s3288_s4 }
 0x4fb   :  { %1692 = vrot.lane.b32.xlu1 %v4033_v27, %s3288_s4 }
 0x4fe   :  { %1674 = vrot.lane.b32.xlu0 %v3964_v45, %s3288_s4 }
 0x4ff   :  { %1672 = vrot.lane.b32.xlu1 %v3970_v42, %s3288_s4 }
 0x502   :  { %1664 = vrot.lane.b32.xlu0 %v3934_v9, %s3288_s4  ;;  %v1805_v9 = vld [vmem:[%s4881_s12 + $0x8] sm:$0xff]  ;;  %s3291_s12 = smov 126  }
 0x503   :  { %1662 = vrot.lane.b32.xlu1 %v3927_v62, %s3288_s4 }
 0x506   :  { %1820 = vperm.xlu0 %3199, %v1806_v51  }
 0x507   :  { %1825 = vperm.xlu1 %3200, %v1807_v47  }
 0x50a   :  { %1810 = vperm.xlu0 %3199, %v1804_v24  }
 0x50b   :  { %1815 = vperm.xlu1 %3200, %v1805_v9  }
 0x538   :  { %v1731_v45 = vpop.permute.xlu0 %1730 }
 0x539   :  { %v4069_v28 = vpop.permute.xlu1 %1732 }
 0x53a   :  { %v1769_v9 = vsel %vm1057_vm4, %v1731_v45, %v4069_v28 }
 0x53c   :  { %v4071_v35 = vpop.permute.xlu0 %1734 }
 0x53d   :  { %v1737_v41 = vpop.permute.xlu1 %1736 }
 0x540   :  { %v4073_v33 = vpop.permute.xlu0 %1658 }
 0x541   :  { %v4075_v7 = vpop.permute.xlu1 %1660 }
 0x544   :  { %v1743_v19 = vpop.permute.xlu0 %1742 }
 0x545   :  { %v1741_v54 = vpop.permute.xlu1 %1740 }
 0x546   :  { %v1773_v13 = vsel %vm1057_vm4, %v1741_v54, %v1743_v19  ;;  %v1772_v24 = vsel %vm1057_vm4, %v1739_v0, %v1741_v54 }
 0x548   :  { %v1747_v38 = vpop.permute.xlu0 %1746 }
 0x549   :  { %v1745_v20 = vpop.permute.xlu1 %1744 }
 0x54a   :  { %v1775_v0 = vsel %vm1057_vm4, %v1745_v20, %v1747_v38 }
 0x54c   :  { %v4077_v53 = vpop.permute.xlu0 %1670 }
 0x54d   :  { %v4079_v4 = vpop.permute.xlu1 %1668 }
 0x550   :  { %v1751_v12 = vpop.permute.xlu0 %1750 }
 0x551   :  { %v1753_v3 = vpop.permute.xlu1 %1752  ;;  %v1776_v60 = vsel %vm1057_vm4, %v1749_v25, %v1751_v12 }
 0x552   :  { %v1777_v63 = vsel %vm1057_vm4, %v1751_v12, %v1753_v3  ;;  %v1768_v12 = vsel %vm1057_vm4, %v1729_v1, %v1731_v45  ;;  %v1771_v45 = vsel %vm1057_vm4, %v4071_v35, %v1737_v41 }
 0x554   :  { %v1755_v17 = vpop.permute.xlu0 %1754 }
 0x555   :  { %v1757_v50 = vpop.permute.xlu1 %1756 }
 0x558   :  { %v1679_v58 = vpop.permute.xlu0 %1678 }
 0x559   :  { %v4081_v16 = vpop.permute.xlu1 %1680  ;;  %v1704_v38 = vsel %vm639_vm3, %v4063_v29, %v1679_v58  ;;  %v1700_v29 = vsel %vm639_vm3, %v4067_v39, %v4079_v4 }
 0x55a   :  { %v1705_v1 = vsel %vm639_vm3, %v1679_v58, %v4081_v16 }
 0x55c   :  { %v4083_v56 = vpop.permute.xlu0 %1682 }
 0x55d   :  { %v1685_v10 = vpop.permute.xlu1 %1684  ;;  %v1706_v39 = vsel %vm639_vm3, %v4081_v16, %v4083_v56 }
 0x560   :  { %v1763_v61 = vpop.permute.xlu0 %1762 }
 0x561   :  { %v1761_v5 = vpop.permute.xlu1 %1760 }
 0x562   :  { %v1781_v8 = vsel %vm1057_vm4, %v1761_v5, %v1763_v61  ;;  %v1780_v57 = vsel %vm1057_vm4, %v1759_v26, %v1761_v5  ;;  %v1779_v26 = vsel %vm1057_vm4, %v1755_v17, %v1757_v50  ;;  %v1778_v5 = vsel %vm1057_vm4, %v1753_v3, %v1755_v17 }
 0x563   :  { %1849 = vmatprep.subr.mxu0 %v1781_v8  ;;  %v1774_v50 = vsel %vm1057_vm4, %v1743_v19, %v1745_v20  ;;  %v1701_v19 = vsel %vm639_vm3, %v4079_v4, %v4077_v53 }
 0x564   :  { %v1767_v15 = vpop.permute.xlu0 %1766  ;;  %1850 = vmatpush1.msra.mxu0 %v1780_v57  ;;  %v1696_v57 = vsel %vm639_vm3, %v4065_v31, %v4073_v33 }
 0x565   :  { %1851 = vmatprep.subr.mxu0 %v1777_v63  ;;  %v1765_v59 = vpop.permute.xlu1 %1764 }
 0x566   :  { %1852 = vmatpush1.msra.mxu0 %v1776_v60  ;;  %v1783_v48 = vsel %vm1057_vm4, %v1765_v59, %v1767_v15  ;;  %v1782_v51 = vsel %vm1057_vm4, %v1763_v61, %v1765_v59 }
 0x567   :  { %1853 = vmatprep.subr.mxu0 %v1773_v13  ;;  %1938 = vmatprep.subr.mxu1 %v1783_v48 }
 0x568   :  { %v1691_v47 = vpop.permute.xlu0 %1690  ;;  %1854 = vmatpush1.msra.mxu0 %v1772_v24  ;;  %1939 = vmatpush1.msra.mxu1 %v1782_v51 }
 0x569   :  { %1855 = vmatprep.subr.mxu0 %v1769_v9  ;;  %1940 = vmatprep.subr.mxu1 %v1779_v26  ;;  %v1689_v25 = vpop.permute.xlu1 %1688 }
 0x56a   :  { %1856 = vmatpush1.msra.mxu0 %v1768_v12  ;;  %1941 = vmatpush1.msra.mxu1 %v1778_v5  ;;  %v1709_v61 = vsel %vm639_vm3, %v1689_v25, %v1691_v47  ;;  %v1708_v54 = vsel %vm639_vm3, %v1687_v23, %v1689_v25  ;;  %v1770_v23 = vsel %vm1057_vm4, %v4069_v28, %v4071_v35  ;;  %vm1828_vm4 = vcmask 785408  }
 0x56b   :  { %1857 = vmatprep.subr.mxu0 %v1709_v61  ;;  %1942 = vmatprep.subr.mxu1 %v1775_v0  ;;  %v1697_v28 = vsel %vm639_vm3, %v4073_v33, %v4075_v7  ;;  %v1707_v35 = vsel %vm639_vm3, %v4083_v56, %v1685_v10  ;;  %v2522_v56 = vld [vmem:[%s4884_s15 + $0x8] sm:$0xff] }
 0x56c   :  { %v1695_v8 = vpop.permute.xlu0 %1694  ;;  %1858 = vmatpush1.msra.mxu0 %v1708_v54  ;;  %1943 = vmatpush1.msra.mxu1 %v1774_v50 }
 0x56d   :  { %1859 = vmatprep.subr.mxu0 %v1705_v1  ;;  %1944 = vmatprep.subr.mxu1 %v1771_v45  ;;  %v1693_v3 = vpop.permute.xlu1 %1692  ;;  %v2524_v45 = vld [vmem:[%s4884_s15 + $0x18] sm:$0xff] }
 0x56e   :  { %1860 = vmatpush1.msra.mxu0 %v1704_v38  ;;  %1945 = vmatpush1.msra.mxu1 %v1770_v23  ;;  %v1711_v20 = vsel %vm639_vm3, %v1693_v3, %v1695_v8  ;;  %v1710_v41 = vsel %vm639_vm3, %v1691_v47, %v1693_v3 }
 0x56f   :  { %1861 = vmatprep.subr.mxu0 %v1701_v19  ;;  %1946 = vmatprep.subr.mxu1 %v1711_v20 }
 0x570   :  { %v1675_v17 = vpop.permute.xlu0 %1674  ;;  %1862 = vmatpush1.msra.mxu0 %v1700_v29  ;;  %1947 = vmatpush1.msra.mxu1 %v1710_v41 }
 0x571   :  { %1863 = vmatprep.subr.mxu0 %v1697_v28  ;;  %1948 = vmatprep.subr.mxu1 %v1707_v35  ;;  %v1673_v58 = vpop.permute.xlu1 %1672 }
 0x572   :  { %1864 = vmatpush1.msra.mxu0 %v1696_v57  ;;  %1949 = vmatpush1.msra.mxu1 %v1706_v39  ;;  %v1703_v4 = vsel %vm639_vm3, %v1673_v58, %v1675_v17  ;;  %v1702_v15 = vsel %vm639_vm3, %v4077_v53, %v1673_v58 }
 0x573   :  { %3224 = vmatprep.subr.msk.mxu0 %vm3713_vm5, %v4015_v55  ;;  %1950 = vmatprep.subr.mxu1 %v1703_v4 }
 0x574   :  { %v1665_v10 = vpop.permute.xlu0 %1664  ;;  %1866 = vmatpush1.msra.mxu0 %v4025_v6  ;;  %1951 = vmatpush1.msra.mxu1 %v1702_v15 }
 0x575   :  { %3225 = vmatprep.subr.msk.mxu0 %vm3713_vm5, %v3980_v43  ;;  %v1663_v31 = vpop.permute.xlu1 %1662  ;;  %v1800_v43 = vld [vmem:[%s4880_s11] sm:$0xff] }
 0x576   :  { %1868 = vmatpush1.msra.mxu0 %v3982_v44  ;;  %v1699_v33 = vsel %vm639_vm3, %v1663_v31, %v1665_v10  ;;  %v1698_v53 = vsel %vm639_vm3, %v4075_v7, %v1663_v31  ;;  %vm4202_vm3 = vcmp.lt.s32.totalorder %v607_v36, 132 }
 0x577   :  { %3226 = vmatprep.subr.msk.mxu0 %vm3713_vm5, %v3940_v22  ;;  %1952 = vmatprep.subr.mxu1 %v1699_v33  ;;  %v4164_v22 = vld [vmem:[#allocation2] sm:$0xff] }
 0x578   :  { %1870 = vmatpush1.msra.mxu0 %v3955_v32  ;;  %1953 = vmatpush1.msra.mxu1 %v1698_v53  ;;  %v2021_v53 = vld [vmem:[%s4882_s13 + $0x10] sm:$0xff] }
 0x579   :  { %3227 = vmatprep.subr.msk.mxu0 %vm3713_vm5, %v3916_v2  ;;  %3228 = vmatprep.subr.msk.mxu1 %vm3750_vm6, %v4023_v14  ;;  %vm4228_vm5 = vcmp.lt.s32.totalorder %v609_v46, 132 }
 0x57a   :  { %1872 = vmatpush1.msra.mxu0 %v3914_v40  ;;  %1955 = vmatpush1.msra.mxu1 %v4033_v27  ;;  %v1802_v40 = vld [vmem:[%s4880_s11 + $0x10] sm:$0xff] }
 0x57b   :  { %3169 = vmatmul.mubr.msk.f32.vlgmr.msra.gmra.mxu0 %vm1828_vm4, %v1800_v43  ;;  %3229 = vmatprep.subr.msk.mxu1 %vm3750_vm6, %v3993_v37 }
 0x57c   :  { %1957 = vmatpush1.msra.mxu1 %v3995_v49  ;;  %1911 = vmatprep.mubr.f32.mxu0 %v4164_v22 }
 0x57d   :  { %3230 = vmatprep.subr.msk.mxu1 %vm3750_vm6, %v3952_v30 }
 0x57e   :  { %1959 = vmatpush1.msra.mxu1 %v3970_v42 }
 0x57f   :  { %3170 = vmatmul.mubr.msk.f32.gmra.mxu0 %vm1828_vm4, %v1801_v34  ;;  %3231 = vmatprep.subr.msk.mxu1 %vm3750_vm6, %v3924_v52 }
 0x580   :  { %1961 = vmatpush1.msra.mxu1 %v3927_v62  ;;  %1917 = vmatprep.mubr.f32.mxu0 %v4164_v22 }
 0x581   :  { %3173 = vmatmul.mubr.msk.f32.vlgmr.msra.gmra.mxu1 %vm1828_vm4, %v1800_v43  ;;  %v1821_v32 = vpop.permute.xlu0 %1820  ;;  %v2022_v43 = vld [vmem:[%s4882_s13 + $0x18] sm:$0xff] }
 0x582   :  { %2000 = vmatprep.mubr.f32.mxu1 %v4164_v22  ;;  %v1826_v52 = vpop.permute.xlu1 %1825 }
 0x583   :  { %3171 = vmatmul.mubr.msk.f32.gmra.mxu0 %vm1828_vm4, %v1802_v40 }
 0x584   :  { %1923 = vmatprep.mubr.f32.mxu0 %v4164_v22 }
 0x585   :  { %3174 = vmatmul.mubr.msk.f32.gmra.mxu1 %vm1828_vm4, %v1801_v34  ;;  %v1811_v7 = vpop.permute.xlu0 %1810  ;;  %v2026_v34 = vld [vmem:[%s4883_s14 + $0x18] sm:$0xff] }
 0x586   :  { %2006 = vmatprep.mubr.f32.mxu1 %v4164_v22  ;;  %v1816_v37 = vpop.permute.xlu1 %1815 }
 0x587   :  { %3172 = vmatmul.mubr.msk.f32.gmra.mxu0 %vm1828_vm4, %v1803_v21 }
 0x588   :  { %2625 = vmatprep.mubr.f32.mxu0 %v4164_v22 }
 0x589   :  { %3175 = vmatmul.mubr.msk.f32.gmra.mxu1 %vm1828_vm4, %v1802_v40  ;;  %v2020_v40 = vld [vmem:[%s4882_s13 + $0x8] sm:$0xff] }
 0x58a   :  { %2012 = vmatprep.mubr.f32.mxu1 %v4164_v22 }
 0x58d   :  { %3176 = vmatmul.mubr.msk.f32.gmra.mxu1 %vm1828_vm4, %v1803_v21  ;;  %v2025_v21 = vld [vmem:[%s4883_s14 + $0x10] sm:$0xff] }
 0x58e   :  { %2714 = vmatprep.mubr.f32.mxu1 %v4164_v22 }
 0x63b   :  { %v1907_v2 = vpop.f32.mrf.mxu0 }
 0x63c   :  { %v1908_v3 = vadd.f32 %v1907_v2, %v1811_v7 }
 0x63d   :  { %v1909_v62 = vpop.f32.mrf.mxu0 }
 0x63e   :  { %v4206_v63 = vadd.f32 %v1909_v62, %v1811_v7 }
 0x63f   :  { %v1913_v30 = vpop.f32.mrf.mxu0 }
 0x640   :  { %v1914_v47 = vadd.f32 %v1913_v30, %v1816_v37  ;;  %v2032_v25 = vsel %vm4202_vm3, %v4206_v63, 0.0 }
 0x641   :  { %v1915_v42 = vpop.f32.mrf.mxu0  ;;  %v1996_v44 = vpop.f32.mrf.mxu1  ;;  %v2047_v41 = vadd.f32 %v2032_v25, %v1908_v3 }
 0x642   :  { %v4198_v14 = vadd.f32 %v1915_v42, %v1816_v37  ;;  %v1997_v17 = vadd.f32 %v1996_v44, %v1811_v7 }
 0x643   :  { %v1919_v49 = vpop.f32.mrf.mxu0  ;;  %v1998_v55 = vpop.f32.mrf.mxu1 }
 0x644   :  { %v4208_v59 = vadd.f32 %v1919_v49, %v1821_v32  ;;  %v2036_v48 = vsel %vm4202_vm3, %v4198_v14, 0.0  ;;  %v1999_v58 = vadd.f32 %v1998_v55, %v1811_v7  ;;  %v2048_v4 = vadd.f32 %v2047_v41, %v1997_v17 }
 0x645   :  { %v1921_v6 = vpop.f32.mrf.mxu0  ;;  %v2002_v27 = vpop.f32.mrf.mxu1  ;;  %v2052_v12 = vadd.f32 %v2036_v48, %v1914_v47 }
 0x646   :  { %v1922_v16 = vadd.f32 %v1921_v6, %v1821_v32  ;;  %v2003_v5 = vadd.f32 %v2002_v27, %v1816_v37  ;;  %v2034_v31 = vsel %vm4228_vm5, %v1999_v58, 0.0 }
 0x647   :  { %v1925_v60 = vpop.f32.mrf.mxu0  ;;  %v2004_v13 = vpop.f32.mrf.mxu1  ;;  %v2049_v33 = vadd.f32 %v2048_v4, %v2034_v31 }
 0x648   :  { %v2040_v51 = vsel %vm4202_vm3, %v1922_v16, 0.0  ;;  %v1926_v61 = vadd.f32 %v1925_v60, %v1826_v52  ;;  %v2005_v54 = vadd.f32 %v2004_v13, %v1816_v37  ;;  %v2053_v29 = vadd.f32 %v2052_v12, %v2003_v5 }
 0x649   :  { %v2057_v11 = vadd.f32 %v2040_v51, %v4208_v59  ;;  %v1927_v36 = vpop.f32.mrf.mxu0  ;;  %v2008_v24 = vpop.f32.mrf.mxu1 }
 0x64a   :  { %v1928_v9 = vadd.f32 %v1927_v36, %v1826_v52  ;;  %v4216_v26 = vadd.f32 %v2008_v24, %v1821_v32  ;;  %v2038_v46 = vsel %vm4228_vm5, %v2005_v54, 0.0 }
 0x64b   :  { %v2010_v0 = vpop.f32.mrf.mxu1  ;;  %v2054_v10 = vadd.f32 %v2053_v29, %v2038_v46 }
 0x64c   :  { %v2044_v8 = vsel %vm4202_vm3, %v1928_v9, 0.0  ;;  %v2058_v50 = vadd.f32 %v2057_v11, %v4216_v26  ;;  %v4224_v1 = vadd.f32 %v2010_v0, %v1821_v32 }
 0x64d   :  { %v2062_v38 = vadd.f32 %v2044_v8, %v1926_v61  ;;  %v2014_v23 = vpop.f32.mrf.mxu1 }
 0x64e   :  { %v2015_v19 = vadd.f32 %v2014_v23, %v1826_v52  ;;  %v2042_v20 = vsel %vm4228_vm5, %v4224_v1, 0.0 }
 0x64f   :  { %v2016_v28 = vpop.f32.mrf.mxu1  ;;  %v2059_v35 = vadd.f32 %v2058_v50, %v2042_v20 }
 0x650   :  { %v2063_v57 = vadd.f32 %v2062_v38, %v2015_v19  ;;  %v2017_v18 = vadd.f32 %v2016_v28, %v1826_v52 }
 0x651   :  { %2060 = vadd.xlane.f32.xlu0 %v2059_v35 }
 0x652   :  { %v2046_v39 = vsel %vm4228_vm5, %v2017_v18, 0.0 }
 0x653   :  { %v2064_v15 = vadd.f32 %v2063_v57, %v2046_v39 }
 0x655   :  { %2065 = vadd.xlane.f32.xlu1 %v2064_v15  ;;  %2055 = vadd.xlane.f32.xlu0 %v2054_v10 }
 0x659   :  { %2050 = vadd.xlane.f32.xlu1 %v2049_v33 }
 0x66a   :  { %2179 = vperm.xlu1 %3200, %v2021_v53  }
 0x66b   :  { %2184 = vperm.xlu0 %3199, %v2022_v43  }
 0x66e   :  { %2220 = vperm.xlu1 %3200, %v2026_v34  }
 0x66f   :  { %2174 = vperm.xlu0 %3199, %v2020_v40  }
 0x672   :  { %2215 = vperm.xlu1 %3200, %v2025_v21   ;;  %v2024_v21 = vld [vmem:[%s4883_s14 + $0x8] sm:$0xff] }
 0x6da   :  { %v2061_v2 = vpop.xlane.xlu0 %2060 }
 0x6db   :  { %v2069_v52 = vmul.f32 0.003787879, %v2061_v2  ;;  %v2019_v2 = vld [vmem:[%s4882_s13] sm:$0xff]  ;;  %s3292_s13 = smov 127  }
 0x6dd   :  { %v4256_v32 = vsub.f32 %v1922_v16, %v2069_v52  ;;  %v4272_v13 = vsub.f32 %v4208_v59, %v2069_v52  ;;  %v4320_v29 = vsub.f32 %v4216_v26, %v2069_v52  ;;  %v4323_v28 = vsub.f32 %v4224_v1, %v2069_v52  ;;  %v2023_v52 = vld [vmem:[%s4883_s14] sm:$0xff] }
 0x6de   :  { %v2056_v62 = vpop.xlane.xlu0 %2055  ;;  %v2066_v30 = vpop.xlane.xlu1 %2065 }
 0x6df   :  { %v2068_v42 = vmul.f32 0.003787879, %v2056_v62  ;;  %v2070_v44 = vmul.f32 0.003787879, %v2066_v30  ;;  %v2096_v51 = vmul.f32 %v4256_v32, %v4256_v32  ;;  %v2097_v1 = vmul.f32 %v4320_v29, %v4320_v29 }
 0x6e0   :  { %v2098_v33 = vmul.f32 %v4323_v28, %v4323_v28 }
 0x6e1   :  { %v4258_v37 = vsub.f32 %v1914_v47, %v2068_v42  ;;  %v4261_v49 = vsub.f32 %v4198_v14, %v2068_v42  ;;  %v4263_v55 = vsub.f32 %v1928_v9, %v2070_v44  ;;  %v4265_v27 = vsub.f32 %v2003_v5, %v2068_v42 }
 0x6e2   :  { %v2051_v6 = vpop.xlane.xlu1 %2050  ;;  %v4267_v7 = vsub.f32 %v2005_v54, %v2068_v42  ;;  %v4269_v60 = vsub.f32 %v1926_v61, %v2070_v44  ;;  %v4280_v47 = vsub.f32 %v2015_v19, %v2070_v44  ;;  %v4282_v11 = vsub.f32 %v2017_v18, %v2070_v44 }
 0x6e3   :  { %v2067_v16 = vmul.f32 0.003787879, %v2051_v6  ;;  %v2091_v48 = vmul.f32 %v4258_v37, %v4258_v37  ;;  %v2092_v14 = vmul.f32 %v4261_v49, %v4261_v49  ;;  %v2100_v59 = vmul.f32 %v4263_v55, %v4263_v55 }
 0x6e4   :  { %v2099_v36 = vmul.f32 %v4269_v60, %v4269_v60  ;;  %v2094_v9 = vmul.f32 %v4267_v7, %v4267_v7  ;;  %v2093_v5 = vmul.f32 %v4265_v27, %v4265_v27  ;;  %v2095_v54 = vmul.f32 %v4272_v13, %v4272_v13 }
 0x6e5   :  { %v4289_v24 = vsub.f32 %v4206_v63, %v2067_v16  ;;  %v2108_v25 = vsel %vm4202_vm3, %v2092_v14, 0.0  ;;  %v4295_v12 = vsub.f32 %v1908_v3, %v2067_v16  ;;  %v2116_v0 = vsel %vm4202_vm3, %v2100_v59, 0.0 }
 0x6e6   :  { %v2124_v61 = vadd.f32 %v2108_v25, %v2091_v48  ;;  %v2134_v63 = vadd.f32 %v2116_v0, %v2099_v36  ;;  %v4303_v8 = vsub.f32 %v1997_v17, %v2067_v16  ;;  %v4305_v50 = vsub.f32 %v1999_v58, %v2067_v16  ;;  %v4364_v62 = vpop.permute.xlu1 %2179  ;;  %v4366_v30 = vpop.permute.xlu0 %2184 }
 0x6e7   :  { %v2087_v38 = vmul.f32 %v4295_v12, %v4295_v12  ;;  %v2101_v23 = vmul.f32 %v4280_v47, %v4280_v47  ;;  %v2088_v19 = vmul.f32 %v4289_v24, %v4289_v24  ;;  %v2112_v20 = vsel %vm4202_vm3, %v2096_v51, 0.0 }
 0x6e8   :  { %v2125_v3 = vadd.f32 %v2124_v61, %v2093_v5  ;;  %v2110_v41 = vsel %vm4228_vm5, %v2094_v9, 0.0  ;;  %v2102_v17 = vmul.f32 %v4282_v11, %v4282_v11  ;;  %v2090_v57 = vmul.f32 %v4305_v50, %v4305_v50 }
 0x6e9   :  { %v2135_v58 = vadd.f32 %v2134_v63, %v2101_v23  ;;  %v2104_v18 = vsel %vm4202_vm3, %v2088_v19, 0.0  ;;  %v2089_v46 = vmul.f32 %v4303_v8, %v4303_v8  ;;  %v2129_v4 = vadd.f32 %v2112_v20, %v2095_v54 }
 0x6ea   :  { %v2126_v35 = vadd.f32 %v2125_v3, %v2110_v41  ;;  %v2119_v39 = vadd.f32 %v2104_v18, %v2087_v38  ;;  %v2118_v26 = vsel %vm4228_vm5, %v2102_v17, 0.0  ;;  %v2106_v31 = vsel %vm4228_vm5, %v2090_v57, 0.0  ;;  %v4368_v42 = vpop.permute.xlu1 %2220  ;;  %v2175_v44 = vpop.permute.xlu0 %2174 }
 0x6eb   :  { %v2136_v10 = vadd.f32 %v2135_v58, %v2118_v26  ;;  %v2130_v43 = vadd.f32 %v2129_v4, %v2097_v1  ;;  %v2114_v34 = vsel %vm4228_vm5, %v2098_v33, 0.0 }
 0x6ec   :  { %2127 = vadd.xlane.f32.xlu0 %v2126_v35  ;;  %v2120_v15 = vadd.f32 %v2119_v39, %v2089_v46 }
 0x6ed   :  { %v2131_v40 = vadd.f32 %v2130_v43, %v2114_v34 }
 0x6ee   :  { %v2121_v53 = vadd.f32 %v2120_v15, %v2106_v31  ;;  %v4370_v16 = vpop.permute.xlu1 %2215 }
 0x6f0   :  { %2137 = vadd.xlane.f32.xlu0 %v2136_v10  ;;  %2122 = vadd.xlane.f32.xlu1 %v2121_v53 }
 0x6f4   :  { %2132 = vadd.xlane.f32.xlu1 %v2131_v40 }
 0x705   :  { %2210 = vperm.xlu1 %3200, %v2024_v21  }
 0x706   :  { %2169 = vperm.xlu0 %3199, %v2019_v2  }
 0x709   :  { %2476 = vrot.lane.b32.xlu1 %v4164_v22, %s3291_s12 }
 0x70a   :  { %2205 = vperm.xlu0 %3199, %v2023_v52  }
 0x70d   :  { %2456 = vrot.lane.b32.xlu1 %v4164_v22, %s3291_s12 }
 0x70e   :  { %2486 = vrot.lane.b32.xlu0 %v4164_v22, %s3291_s12 }
 0x711   :  { %2403 = vrot.lane.b32.xlu1 %v4164_v22, %s3292_s13 }
 0x712   :  { %2466 = vrot.lane.b32.xlu0 %v4164_v22, %s3291_s12 }
 0x716   :  { %2413 = vrot.lane.b32.xlu0 %v4164_v22, %s3292_s13 }
 0x71a   :  { %2393 = vrot.lane.b32.xlu0 %v4164_v22, %s3292_s13 }
 0x775   :  { %v2128_v6 = vpop.xlane.xlu0 %2127 }
 0x776   :  { %v2140_v48 = vmul.f32 0.003787879, %v2128_v6 }
 0x778   :  { %v2144_v14 = vadd.f32 1e-05, %v2140_v48 }
 0x779   :  { %v2123_v51 = vpop.xlane.xlu1 %2122  ;;  %v2138_v5 = vpop.xlane.xlu0 %2137 }
 0x77a   :  { %3213 = vrsqrt.f32 %v2144_v14  ;;  %v2139_v36 = vmul.f32 0.003787879, %v2123_v51  ;;  %v2142_v26 = vmul.f32 0.003787879, %v2138_v5 }
 0x77c   :  { %v2143_v59 = vadd.f32 1e-05, %v2139_v36 }
 0x77d   :  { %v2133_v9 = vpop.xlane.xlu1 %2132 }
 0x77e   :  { %3215 = vrsqrt.f32 %v2143_v59  ;;  %v2141_v25 = vmul.f32 0.003787879, %v2133_v9 }
 0x780   :  { %v2145_v61 = vadd.f32 1e-05, %v2141_v25 }
 0x781   :  { %v2170_v54 = vpop.permute.xlu0 %2169  ;;  %v2211_v15 = vpop.permute.xlu1 %2210 }
 0x782   :  { %3217 = vrsqrt.f32 %v2145_v61 }
 0x785   :  { %v2206_v46 = vpop.permute.xlu0 %2205 }
 0x787   :  { %v3214_v0 = vpop.eup %3213 }
 0x788   :  { %v2155_v63 = vmul.f32 %v3214_v0, %v4258_v37  ;;  %v2156_v18 = vmul.f32 %v3214_v0, %v4261_v49  ;;  %v2146_v49 = vadd.f32 1e-05, %v2142_v26 }
 0x78a   :  { %v2191_v41 = vmul.f32 %v2175_v44, %v2155_v63  ;;  %3219 = vrsqrt.f32 %v2146_v49 }
 0x78b   :  { %v3216_v38 = vpop.eup %3215 }
 0x78c   :  { %v2151_v3 = vmul.f32 %v3216_v38, %v4295_v12  ;;  %v2152_v23 = vmul.f32 %v3216_v38, %v4289_v24  ;;  %v2153_v19 = vmul.f32 %v3216_v38, %v4303_v8  ;;  %v2154_v20 = vmul.f32 %v3216_v38, %v4305_v50 }
 0x78d   :  { %v2157_v12 = vmul.f32 %v3214_v0, %v4265_v27  ;;  %v2158_v24 = vmul.f32 %v3214_v0, %v4267_v7  ;;  %v2227_v8 = vadd.f32 %v2211_v15, %v2191_v41  ;;  %v2192_v50 = vmul.f32 %v2175_v44, %v2156_v18 }
 0x78e   :  { %v2187_v17 = vmul.f32 %v2170_v54, %v2151_v3  ;;  %v2188_v35 = vmul.f32 %v2170_v54, %v2152_v23  ;;  %v2189_v58 = vmul.f32 %v2170_v54, %v2153_v19  ;;  %v2190_v57 = vmul.f32 %v2170_v54, %v2154_v20 }
 0x78f   :  { %v2193_v53 = vmul.f32 %v2175_v44, %v2157_v12  ;;  %v2194_v43 = vmul.f32 %v2175_v44, %v2158_v24  ;;  %v3218_v40 = vpop.eup %3217  ;;  %v2259_v21 = vmul.f32 0.2, %v2227_v8  ;;  %v2228_v52 = vadd.f32 %v2211_v15, %v2192_v50 }
 0x790   :  { %v2223_v39 = vadd.f32 %v2206_v46, %v2187_v17  ;;  %v2224_v4 = vadd.f32 %v2206_v46, %v2188_v35  ;;  %v2225_v37 = vadd.f32 %v2206_v46, %v2189_v58  ;;  %v2226_v1 = vadd.f32 %v2206_v46, %v2190_v57 }
 0x791   :  { %vm2243_vm13 = vcmp.ge.f32.partialorder %v2227_v8, 0.0  ;;  %v2229_v6 = vadd.f32 %v2211_v15, %v2193_v53  ;;  %v2230_v44 = vadd.f32 %v2211_v15, %v2194_v43  ;;  %v2159_v14 = vmul.f32 %v3218_v40, %v4272_v13 }
 0x792   :  { %vm2239_vm6 = vcmp.ge.f32.partialorder %v2223_v39, 0.0  ;;  %vm2240_vm11 = vcmp.ge.f32.partialorder %v2224_v4, 0.0  ;;  %vm2241_vm12 = vcmp.ge.f32.partialorder %v2225_v37, 0.0  ;;  %v2255_v10 = vmul.f32 0.2, %v2223_v39 }
 0x793   :  { %v2256_v31 = vmul.f32 0.2, %v2224_v4  ;;  %v2257_v33 = vmul.f32 0.2, %v2225_v37  ;;  %v2258_v27 = vmul.f32 0.2, %v2226_v1  ;;  %v4396_v51 = vsel %vm2243_vm13, %v2227_v8, %v2259_v21 }
 0x794   :  { %v4380_v34 = vsel %vm2239_vm6, %v2223_v39, %v2255_v10  ;;  %vm2242_vm14 = vcmp.ge.f32.partialorder %v2226_v1, 0.0  ;;  %v2260_v59 = vmul.f32 0.2, %v2228_v52  ;;  %vm2244_vm15 = vcmp.ge.f32.partialorder %v2228_v52, 0.0 }
 0x795   :  { %v4382_v2 = vsel %vm2240_vm11, %v2224_v4, %v2256_v31  ;;  %v4384_v7 = vsel %vm2241_vm12, %v2225_v37, %v2257_v33  ;;  %2448 = vrot.lane.b32.xlu0 %v4380_v34, %s3291_s12  ;;  %v4398_v36 = vsel %vm2242_vm14, %v2226_v1, %v2258_v27  ;;  %v2261_v9 = vmul.f32 0.2, %v2229_v6 }
 0x796   :  { %2452 = vrot.lane.b32.xlu1 %v4384_v7, %s3291_s12  ;;  %v4393_v48 = vsel %vm4202_vm3, %v4382_v2, 0.0  ;;  %v2262_v25 = vmul.f32 0.2, %v2230_v44  ;;  %v4407_v5 = vsel %vm4228_vm5, %v4398_v36, 0.0  ;;  %v2195_v13 = vmul.f32 %v4364_v62, %v2159_v14  ;;  %v2528_v14 = vld [vmem:[%s4885_s16 + $0x18] sm:$0xff] }
 0x797   :  { %vm2245_vm0 = vcmp.ge.f32.partialorder %v2229_v6, 0.0  ;;  %vm2246_vm1 = vcmp.ge.f32.partialorder %v2230_v44, 0.0  ;;  %v2160_v61 = vmul.f32 %v3218_v40, %v4256_v32  ;;  %v4413_v0 = vsel %vm2244_vm15, %v2228_v52, %v2260_v59  ;;  %v2526_v59 = vld [vmem:[%s4885_s16 + $0x8] sm:$0xff] }
 0x798   :  { %v4417_v54 = vsel %vm2245_vm0, %v2229_v6, %v2261_v9  ;;  %v4419_v63 = vsel %vm2246_vm1, %v2230_v44, %v2262_v25  ;;  %v2231_v38 = vadd.f32 %v4370_v16, %v2195_v13  ;;  %v2292_v3 = vsel %vm4202_vm3, %v4413_v0, 0.0  ;;  %v2527_v44 = vld [vmem:[%s4885_s16 + $0x10] sm:$0xff]  ;;  %v2487_v9 = vpop.permute.xlu0 %2486 }
 0x799   :  { %2450 = vrot.lane.b32.xlu0 %v4393_v48, %s3291_s12  ;;  %v2196_v32 = vmul.f32 %v4364_v62, %v2160_v61  ;;  %v2161_v23 = vmul.f32 %v3218_v40, %v4320_v29  ;;  %v2162_v19 = vmul.f32 %v3218_v40, %v4323_v28  ;;  %v2294_v20 = vsel %vm4228_vm5, %v4419_v63, 0.0  ;;  %v3220_v29 = vpop.eup %3219 }
 0x79a   :  { %2458 = vrot.lane.b32.xlu1 %v4396_v51, %s3291_s12  ;;  %v2263_v41 = vmul.f32 0.2, %v2231_v38  ;;  %vm2247_vm2 = vcmp.ge.f32.partialorder %v2231_v38, 0.0  ;;  %v2163_v39 = vmul.f32 %v3220_v29, %v4269_v60  ;;  %v2165_v12 = vmul.f32 %v3220_v29, %v4280_v47 }
 0x79b   :  { %v2232_v17 = vadd.f32 %v4370_v16, %v2196_v32  ;;  %v2197_v35 = vmul.f32 %v4364_v62, %v2161_v23  ;;  %v2198_v58 = vmul.f32 %v4364_v62, %v2162_v19  ;;  %vm2488_vm13 = vcmask 1031168  }
 0x79c   :  { %v4440_v28 = vsel %vm2247_vm2, %v2231_v38, %v2263_v41  ;;  %v2199_v26 = vmul.f32 %v4366_v30, %v2163_v39  ;;  %v2201_v47 = vmul.f32 %v4366_v30, %v2165_v12  ;;  %v4544_v25 = vpop.permute.xlu0 %2466  ;;  %vm2415_vm14 = vcmask 1039360  }
 0x79d   :  { %2454 = vrot.lane.b32.xlu0 %v4407_v5, %s3291_s12  ;;  %v2264_v57 = vmul.f32 0.2, %v2232_v17  ;;  %v2233_v18 = vadd.f32 %v4370_v16, %v2197_v35  ;;  %v2234_v46 = vadd.f32 %v4370_v16, %v2198_v58  ;;  %vm2248_vm7 = vcmp.ge.f32.partialorder %v2232_v17, 0.0 }
 0x79e   :  { %2385 = vrot.lane.b32.xlu1 %v4396_v51, %s3292_s13  ;;  %v2164_v16 = vmul.f32 %v3220_v29, %v4263_v55  ;;  %v2235_v8 = vadd.f32 %v4368_v42, %v2199_v26  ;;  %v2166_v55 = vmul.f32 %v3220_v29, %v4282_v11  ;;  %v2237_v49 = vadd.f32 %v4368_v42, %v2201_v47 }
 0x79f   :  { %v4450_v62 = vsel %vm2248_vm7, %v2232_v17, %v2264_v57  ;;  %v2265_v4 = vmul.f32 0.2, %v2233_v18  ;;  %v2266_v37 = vmul.f32 0.2, %v2234_v46  ;;  %vm2249_vm8 = vcmp.ge.f32.partialorder %v2233_v18, 0.0 }
 0x7a0   :  { %vm2250_vm9 = vcmp.ge.f32.partialorder %v2234_v46, 0.0  ;;  %v2296_v60 = vsel %vm4202_vm3, %v4450_v62, 0.0  ;;  %v2200_v1 = vmul.f32 %v4366_v30, %v2164_v16  ;;  %v2267_v10 = vmul.f32 0.2, %v2235_v8  ;;  %v4546_v13 = vpop.permute.xlu0 %2413 }
 0x7a1   :  { %2462 = vrot.lane.b32.xlu0 %v4417_v54, %s3291_s12  ;;  %v4460_v24 = vsel %vm2249_vm8, %v2233_v18, %v2265_v4  ;;  %v4462_v15 = vsel %vm2250_vm9, %v2234_v46, %v2266_v37  ;;  %vm2251_vm10 = vcmp.ge.f32.partialorder %v2235_v8, 0.0  ;;  %v2202_v33 = vmul.f32 %v4366_v30, %v2166_v55 }
 0x7a2   :  { %2460 = vrot.lane.b32.xlu1 %v2292_v3, %s3291_s12  ;;  %v2298_v50 = vsel %vm4228_vm5, %v4462_v15, 0.0  ;;  %v2236_v31 = vadd.f32 %v4368_v42, %v2200_v1  ;;  %v4480_v11 = vsel %vm2251_vm10, %v2235_v8, %v2267_v10  ;;  %v2269_v40 = vmul.f32 0.2, %v2237_v49 }
 0x7a3   :  { %v2238_v43 = vadd.f32 %v4368_v42, %v2202_v33  ;;  %vm2253_vm11 = vcmp.ge.f32.partialorder %v2237_v49, 0.0 }
 0x7a4   :  { %v2268_v53 = vmul.f32 0.2, %v2236_v31  ;;  %vm2252_vm6 = vcmp.ge.f32.partialorder %v2236_v31, 0.0  ;;  %v4490_v27 = vsel %vm2253_vm11, %v2237_v49, %v2269_v40  ;;  %v4550_v38 = vpop.permute.xlu0 %2393 }
 0x7a5   :  { %2389 = vrot.lane.b32.xlu0 %v4417_v54, %s3292_s13  ;;  %v2270_v21 = vmul.f32 0.2, %v2238_v43  ;;  %vm2254_vm12 = vcmp.ge.f32.partialorder %v2238_v43, 0.0 }
 0x7a6   :  { %2464 = vrot.lane.b32.xlu1 %v2294_v20, %s3291_s12  ;;  %v4488_v30 = vsel %vm2252_vm6, %v2236_v31, %v2268_v53 }
 0x7a7   :  { %v2300_v42 = vsel %vm4202_vm3, %v4488_v30, 0.0  ;;  %v4498_v52 = vsel %vm2254_vm12, %v2238_v43, %v2270_v21 }
 0x7a8   :  { %v2302_v6 = vsel %vm4228_vm5, %v4498_v52, 0.0 }
 0x7a9   :  { %2468 = vrot.lane.b32.xlu0 %v4440_v28, %s3291_s12 }
 0x7aa   :  { %2387 = vrot.lane.b32.xlu1 %v2292_v3, %s3292_s13 }
 0x7ad   :  { %2395 = vrot.lane.b32.xlu0 %v4440_v28, %s3292_s13 }
 0x7ae   :  { %2391 = vrot.lane.b32.xlu1 %v2294_v20, %s3292_s13 }
 0x7b1   :  { %2470 = vrot.lane.b32.xlu0 %v2296_v60, %s3291_s12 }
 0x7b2   :  { %2472 = vrot.lane.b32.xlu1 %v4460_v24, %s3291_s12 }
 0x7b5   :  { %2474 = vrot.lane.b32.xlu0 %v2298_v50, %s3291_s12 }
 0x7b6   :  { %2399 = vrot.lane.b32.xlu1 %v4460_v24, %s3292_s13 }
 0x7b9   :  { %2397 = vrot.lane.b32.xlu0 %v2296_v60, %s3292_s13 }
 0x7ba   :  { %2478 = vrot.lane.b32.xlu1 %v4480_v11, %s3291_s12 }
 0x7bd   :  { %2401 = vrot.lane.b32.xlu0 %v2298_v50, %s3292_s13 }
 0x7be   :  { %2405 = vrot.lane.b32.xlu1 %v4480_v11, %s3292_s13 }
 0x7c1   :  { %2482 = vrot.lane.b32.xlu0 %v4490_v27, %s3291_s12 }
 0x7c2   :  { %2480 = vrot.lane.b32.xlu1 %v2300_v42, %s3291_s12 }
 0x7c5   :  { %2377 = vrot.lane.b32.xlu0 %v4393_v48, %s3292_s13  ;;  %v2525_v48 = vld [vmem:[%s4885_s16] sm:$0xff] }
 0x7c6   :  { %2484 = vrot.lane.b32.xlu1 %v2302_v6, %s3291_s12 }
 0x7c9   :  { %2409 = vrot.lane.b32.xlu0 %v4490_v27, %s3292_s13 }
 0x7ca   :  { %2407 = vrot.lane.b32.xlu1 %v2300_v42, %s3292_s13 }
 0x7cd   :  { %2381 = vrot.lane.b32.xlu0 %v4407_v5, %s3292_s13  ;;  %v2477_v5 = vpop.permute.xlu1 %2476 }
 0x7ce   :  { %2411 = vrot.lane.b32.xlu1 %v2302_v6, %s3292_s13 }
 0x7d1   :  { %2375 = vrot.lane.b32.xlu0 %v4380_v34, %s3292_s13  ;;  %v4548_v61 = vpop.permute.xlu1 %2456 }
 0x7d2   :  { %2379 = vrot.lane.b32.xlu1 %v4384_v7, %s3292_s13 }
 0x7d5   :  { %2541 = vperm.xlu0 %3199, %v2527_v44   ;;  %v4552_v3 = vpop.permute.xlu1 %2403 }
 0x7d6   :  { %2383 = vrot.lane.b32.xlu1 %v4164_v22, %s3292_s13 }
 0x7d9   :  { %2531 = vperm.xlu0 %3199, %v2525_v48  }
 0x7da   :  { %2546 = vperm.xlu1 %3200, %v2528_v14  }
 0x7dd   :  { %2921 = vrot.lane.b32.xlu0 %v4164_v22, %s3291_s12 }
 0x7de   :  { %2536 = vperm.xlu1 %3200, %v2526_v59  }
 0x7e1   :  { %2901 = vrot.lane.b32.xlu0 %v4164_v22, %s3291_s12 }
 0x7e2   :  { %2911 = vrot.lane.b32.xlu1 %v4164_v22, %s3291_s12 }
 0x7e5   :  { %2849 = vrot.lane.b32.xlu0 %v4164_v22, %s3292_s13 }
 0x7e6   :  { %2891 = vrot.lane.b32.xlu1 %v4164_v22, %s3291_s12 }
 0x7e9   :  { %2829 = vrot.lane.b32.xlu0 %v4164_v22, %s3292_s13 }
 0x7ea   :  { %2839 = vrot.lane.b32.xlu1 %v4164_v22, %s3292_s13 }
 0x807   :  { %v2449_v32 = vpop.permute.xlu0 %2448 }
 0x808   :  { %v4554_v23 = vpop.permute.xlu1 %2452 }
 0x80b   :  { %v2451_v19 = vpop.permute.xlu0 %2450 }
 0x80c   :  { %v2459_v20 = vpop.permute.xlu1 %2458  ;;  %v2490_v48 = vsel %vm2488_vm13, %v2451_v19, %v4554_v23  ;;  %v2489_v59 = vsel %vm2488_vm13, %v2449_v32, %v2451_v19 }
 0x80f   :  { %v2455_v41 = vpop.permute.xlu0 %2454 }
 0x810   :  { %v4556_v17 = vpop.permute.xlu1 %2385  ;;  %v2492_v19 = vsel %vm2488_vm13, %v2455_v41, %v4548_v61 }
 0x813   :  { %v2463_v35 = vpop.permute.xlu0 %2462 }
 0x814   :  { %v2461_v58 = vpop.permute.xlu1 %2460 }
 0x815   :  { %v2494_v21 = vsel %vm2488_vm13, %v2461_v58, %v2463_v35  ;;  %v2493_v6 = vsel %vm2488_vm13, %v2459_v20, %v2461_v58 }
 0x817   :  { %v4558_v29 = vpop.permute.xlu0 %2389 }
 0x818   :  { %v2465_v57 = vpop.permute.xlu1 %2464 }
 0x81b   :  { %v2469_v18 = vpop.permute.xlu0 %2468 }
 0x81c   :  { %v4560_v46 = vpop.permute.xlu1 %2387 }
 0x81d   :  { %v2420_v61 = vsel %vm2415_vm14, %v4556_v17, %v4560_v46 }
 0x81f   :  { %v2396_v39 = vpop.permute.xlu0 %2395 }
 0x820   :  { %v4562_v4 = vpop.permute.xlu1 %2391 }
 0x823   :  { %v2471_v37 = vpop.permute.xlu0 %2470 }
 0x824   :  { %v2473_v26 = vpop.permute.xlu1 %2472  ;;  %v2497_v53 = vsel %vm2488_vm13, %v2469_v18, %v2471_v37 }
 0x825   :  { %v2498_v49 = vsel %vm2488_vm13, %v2471_v37, %v2473_v26  ;;  %v2496_v37 = vsel %vm2488_vm13, %v2465_v57, %v4544_v25 }
 0x827   :  { %v2475_v16 = vpop.permute.xlu0 %2474 }
 0x828   :  { %v4564_v60 = vpop.permute.xlu1 %2399  ;;  %v2500_v14 = vsel %vm2488_vm13, %v2475_v16, %v2477_v5  ;;  %v2499_v18 = vsel %vm2488_vm13, %v2473_v26, %v2475_v16  ;;  %v2491_v26 = vsel %vm2488_vm13, %v4554_v23, %v2455_v41 }
 0x82b   :  { %v2398_v12 = vpop.permute.xlu0 %2397 }
 0x82c   :  { %v2479_v8 = vpop.permute.xlu1 %2478  ;;  %v2425_v32 = vsel %vm2415_vm14, %v2398_v12, %v4564_v60  ;;  %v2424_v16 = vsel %vm2415_vm14, %v2396_v39, %v2398_v12 }
 0x82f   :  { %v4566_v1 = vpop.permute.xlu0 %2401 }
 0x830   :  { %v2406_v55 = vpop.permute.xlu1 %2405  ;;  %v2427_v41 = vsel %vm2415_vm14, %v4566_v1, %v4552_v3  ;;  %v2426_v39 = vsel %vm2415_vm14, %v4564_v60, %v4566_v1 }
 0x833   :  { %v2483_v50 = vpop.permute.xlu0 %2482 }
 0x834   :  { %v2481_v47 = vpop.permute.xlu1 %2480 }
 0x835   :  { %v2501_v10 = vsel %vm2488_vm13, %v2479_v8, %v2481_v47  ;;  %v2502_v31 = vsel %vm2488_vm13, %v2481_v47, %v2483_v50  ;;  %v2495_v8 = vsel %vm2488_vm13, %v2463_v35, %v2465_v57  ;;  %v2421_v57 = vsel %vm2415_vm14, %v4560_v46, %v4558_v29 }
 0x836   :  { %2569 = vmatprep.subr.mxu0 %v2502_v31  ;;  %v2423_v46 = vsel %vm2415_vm14, %v4562_v4, %v4550_v38 }
 0x837   :  { %2570 = vmatpush1.msra.mxu0 %v2501_v10  ;;  %v2378_v33 = vpop.permute.xlu0 %2377 }
 0x838   :  { %2571 = vmatprep.subr.mxu0 %v2498_v49  ;;  %v2485_v43 = vpop.permute.xlu1 %2484 }
 0x839   :  { %v2503_v40 = vsel %vm2488_vm13, %v2483_v50, %v2485_v43  ;;  %2572 = vmatpush1.msra.mxu0 %v2497_v53  ;;  %v2504_v42 = vsel %vm2488_vm13, %v2485_v43, %v2487_v9  ;;  %v2422_v50 = vsel %vm2415_vm14, %v4558_v29, %v4562_v4 }
 0x83a   :  { %2573 = vmatprep.subr.mxu0 %v2494_v21  ;;  %2658 = vmatprep.subr.mxu1 %v2504_v42 }
 0x83b   :  { %2574 = vmatpush1.msra.mxu0 %v2493_v6  ;;  %2659 = vmatpush1.msra.mxu1 %v2503_v40  ;;  %v2410_v44 = vpop.permute.xlu0 %2409 }
 0x83c   :  { %2575 = vmatprep.subr.mxu0 %v2490_v48  ;;  %2660 = vmatprep.subr.mxu1 %v2500_v14  ;;  %v2408_v9 = vpop.permute.xlu1 %2407 }
 0x83d   :  { %v2428_v20 = vsel %vm2415_vm14, %v2406_v55, %v2408_v9  ;;  %2576 = vmatpush1.msra.mxu0 %v2489_v59  ;;  %2661 = vmatpush1.msra.mxu1 %v2499_v18  ;;  %v2429_v58 = vsel %vm2415_vm14, %v2408_v9, %v2410_v44 }
 0x83e   :  { %2577 = vmatprep.subr.mxu0 %v2429_v58  ;;  %2662 = vmatprep.subr.mxu1 %v2496_v37  ;;  %v3223_v58 = vld [vmem:[#allocation2] sm:$0xff] }
 0x83f   :  { %2578 = vmatpush1.msra.mxu0 %v2428_v20  ;;  %2663 = vmatpush1.msra.mxu1 %v2495_v8  ;;  %v2382_v5 = vpop.permute.xlu0 %2381  ;;  %v2956_v37 = vld [vmem:[%s4887_s18] sm:$0xff] }
 0x840   :  { %2579 = vmatprep.subr.mxu0 %v2425_v32  ;;  %2664 = vmatprep.subr.mxu1 %v2492_v19  ;;  %v2412_v25 = vpop.permute.xlu1 %2411 }
 0x841   :  { %v2430_v35 = vsel %vm2415_vm14, %v2410_v44, %v2412_v25  ;;  %2580 = vmatpush1.msra.mxu0 %v2424_v16  ;;  %2665 = vmatpush1.msra.mxu1 %v2491_v26  ;;  %v2431_v55 = vsel %vm2415_vm14, %v2412_v25, %v4546_v13 }
 0x842   :  { %2581 = vmatprep.subr.mxu0 %v2421_v57  ;;  %2666 = vmatprep.subr.mxu1 %v2431_v55 }
 0x843   :  { %2582 = vmatpush1.msra.mxu0 %v2420_v61  ;;  %2667 = vmatpush1.msra.mxu1 %v2430_v35  ;;  %v2376_v23 = vpop.permute.xlu0 %2375 }
 0x844   :  { %v2416_v12 = vsel %vm2415_vm14, %v2376_v23, %v2378_v33  ;;  %2668 = vmatprep.subr.mxu1 %v2427_v41  ;;  %v2380_v13 = vpop.permute.xlu1 %2379 }
 0x845   :  { %2669 = vmatpush1.msra.mxu1 %v2426_v39  ;;  %v2417_v17 = vsel %vm2415_vm14, %v2378_v33, %v2380_v13  ;;  %v2418_v1 = vsel %vm2415_vm14, %v2380_v13, %v2382_v5 }
 0x846   :  { %2583 = vmatprep.subr.mxu0 %v2417_v17  ;;  %2670 = vmatprep.subr.mxu1 %v2423_v46 }
 0x847   :  { %2584 = vmatpush1.msra.mxu0 %v2416_v12  ;;  %2671 = vmatpush1.msra.mxu1 %v2422_v50 }
 0x848   :  { %3232 = vmatprep.subr.msk.mxu0 %vm4202_vm3, %v4488_v30  ;;  %v2384_v3 = vpop.permute.xlu1 %2383 }
 0x849   :  { %2586 = vmatpush1.msra.mxu0 %v4480_v11  ;;  %v2419_v60 = vsel %vm2415_vm14, %v2382_v5, %v2384_v3 }
 0x84a   :  { %3233 = vmatprep.subr.msk.mxu0 %vm4202_vm3, %v4450_v62  ;;  %2672 = vmatprep.subr.mxu1 %v2419_v60  ;;  %v2521_v62 = vld [vmem:[%s4884_s15] sm:$0xff] }
 0x84b   :  { %2588 = vmatpush1.msra.mxu0 %v4440_v28  ;;  %2673 = vmatpush1.msra.mxu1 %v2418_v1 }
 0x84c   :  { %3234 = vmatprep.subr.msk.mxu0 %vm4202_vm3, %v4413_v0  ;;  %3235 = vmatprep.subr.msk.mxu1 %vm4228_vm5, %v4498_v52 }
 0x84d   :  { %2590 = vmatpush1.msra.mxu0 %v4396_v51  ;;  %2675 = vmatpush1.msra.mxu1 %v4490_v27 }
 0x84e   :  { %3236 = vmatprep.subr.msk.mxu0 %vm4202_vm3, %v4382_v2  ;;  %3237 = vmatprep.subr.msk.mxu1 %vm4228_vm5, %v4462_v15 }
 0x84f   :  { %2592 = vmatpush1.msra.mxu0 %v4380_v34  ;;  %2677 = vmatpush1.msra.mxu1 %v4460_v24  ;;  %v2523_v34 = vld [vmem:[%s4884_s15 + $0x10] sm:$0xff] }
 0x850   :  { %3177 = vmatmul.mubr.msk.f32.vlgmr.msra.gmra.mxu0 %vm1828_vm4, %v2521_v62  ;;  %3238 = vmatprep.subr.msk.mxu1 %vm4228_vm5, %v4419_v63  ;;  %v2542_v2 = vpop.permute.xlu0 %2541 }
 0x851   :  { %2679 = vmatpush1.msra.mxu1 %v4417_v54  ;;  %2631 = vmatprep.mubr.f32.mxu0 %v4164_v22 }
 0x852   :  { %3239 = vmatprep.subr.msk.mxu1 %vm4228_vm5, %v4398_v36 }
 0x853   :  { %2681 = vmatpush1.msra.mxu1 %v4384_v7 }
 0x854   :  { %3178 = vmatmul.mubr.msk.f32.gmra.mxu0 %vm1828_vm4, %v2522_v56  ;;  %3181 = vmatmul.mubr.msk.f32.vlgmr.msra.gmra.mxu1 %vm1828_vm4, %v2521_v62  ;;  %v2532_v51 = vpop.permute.xlu0 %2531 }
 0x855   :  { %2637 = vmatprep.mubr.f32.mxu0 %v4164_v22  ;;  %2720 = vmatprep.mubr.f32.mxu1 %v4164_v22  ;;  %v2547_v7 = vpop.permute.xlu1 %2546 }
 0x858   :  { %3179 = vmatmul.mubr.msk.f32.gmra.mxu0 %vm1828_vm4, %v2523_v34  ;;  %3182 = vmatmul.mubr.msk.f32.gmra.mxu1 %vm1828_vm4, %v2522_v56  ;;  %v2922_v8 = vpop.permute.xlu0 %2921 }
 0x859   :  { %2643 = vmatprep.mubr.f32.mxu0 %v4164_v22  ;;  %2726 = vmatprep.mubr.f32.mxu1 %v4164_v22  ;;  %v2537_v63 = vpop.permute.xlu1 %2536 }
 0x85c   :  { %3180 = vmatmul.mubr.msk.f32.gmra.mxu0 %vm1828_vm4, %v2524_v45  ;;  %3183 = vmatmul.mubr.msk.f32.gmra.mxu1 %vm1828_vm4, %v2523_v34  ;;  %v2902_v5 = vpop.permute.xlu0 %2901 }
 0x85d   :  { %2732 = vmatprep.mubr.f32.mxu1 %v4164_v22  ;;  %3029 = vmatprep.mubr.f32.mxu0 %v4164_v22  ;;  %v2912_v32 = vpop.permute.xlu1 %2911 }
 0x860   :  { %3184 = vmatmul.mubr.msk.f32.gmra.mxu1 %vm1828_vm4, %v2524_v45  ;;  %v4782_v19 = vpop.permute.xlu0 %2849 }
 0x861   :  { %3099 = vmatprep.mubr.f32.mxu1 %v4164_v22  ;;  %v4784_v26 = vpop.permute.xlu1 %2891 }
 0x864   :  { %v4786_v16 = vpop.permute.xlu0 %2829 }
 0x865   :  { %v4788_v25 = vpop.permute.xlu1 %2839 }
 0x910   :  { %v2627_v36 = vpop.f32.mrf.mxu0 }
 0x911   :  { %v4678_v0 = vadd.f32 %v2627_v36, %v2532_v51 }
 0x912   :  { %v2629_v54 = vpop.f32.mrf.mxu0 }
 0x913   :  { %2739 = vst [vmem:[#allocation2 + $0x8] sm:$0xff] %v4678_v0  ;;  %v4681_v28 = vadd.f32 %v2629_v54, %v2532_v51  ;;  %2883 = vrot.lane.b32.xlu0 %v4678_v0, %s3291_s12 }
 0x914   :  { %v2633_v24 = vpop.f32.mrf.mxu0  ;;  %v2716_v15 = vpop.f32.mrf.mxu1 }
 0x915   :  { %2740 = vst [vmem:[#allocation2 + $0x10] sm:$0xff] %v4681_v28  ;;  %v4686_v22 = vadd.f32 %v2633_v24, %v2537_v63  ;;  %v4688_v11 = vadd.f32 %v2716_v15, %v2532_v51 }
 0x916   :  { %v2635_v30 = vpop.f32.mrf.mxu0  ;;  %v2718_v27 = vpop.f32.mrf.mxu1 }
 0x917   :  { %2741 = vst [vmem:[#allocation2 + $0x18] sm:$0xff] %v4688_v11  ;;  %v4691_v52 = vadd.f32 %v2635_v30, %v2537_v63  ;;  %v4693_v38 = vadd.f32 %v2718_v27, %v2532_v51  ;;  %2885 = vrot.lane.b32.xlu0 %v4681_v28, %s3291_s12  ;;  %2887 = vrot.lane.b32.xlu1 %v4688_v11, %s3291_s12 }
 0x918   :  { %v2639_v29 = vpop.f32.mrf.mxu0  ;;  %v2722_v4 = vpop.f32.mrf.mxu1 }
 0x919   :  { %2742 = vst [vmem:[#allocation2 + $0x20] sm:$0xff] %v4693_v38  ;;  %v4700_v47 = vadd.f32 %v2639_v29, %v2542_v2  ;;  %v4702_v10 = vadd.f32 %v2722_v4, %v2537_v63 }
 0x91a   :  { %v2641_v31 = vpop.f32.mrf.mxu0  ;;  %v2724_v33 = vpop.f32.mrf.mxu1 }
 0x91b   :  { %v4704_v49 = vadd.f32 %v2641_v31, %v2542_v2  ;;  %v4706_v53 = vadd.f32 %v2724_v33, %v2537_v63  ;;  %2889 = vrot.lane.b32.xlu0 %v4693_v38, %s3291_s12  ;;  %2893 = vrot.lane.b32.xlu1 %v4686_v22, %s3291_s12 }
 0x91c   :  { %v2645_v43 = vpop.f32.mrf.mxu0  ;;  %v2728_v40 = vpop.f32.mrf.mxu1 }
 0x91d   :  { %v4712_v21 = vadd.f32 %v2645_v43, %v2547_v7  ;;  %v4714_v42 = vadd.f32 %v2728_v40, %v2542_v2 }
 0x91e   :  { %v2647_v6 = vpop.f32.mrf.mxu0  ;;  %v2730_v44 = vpop.f32.mrf.mxu1 }
 0x91f   :  { %v4716_v48 = vadd.f32 %v2647_v6, %v2547_v7  ;;  %v4718_v14 = vadd.f32 %v2730_v44, %v2542_v2  ;;  %2897 = vrot.lane.b32.xlu0 %v4702_v10, %s3291_s12  ;;  %2821 = vrot.lane.b32.xlu1 %v4686_v22, %s3292_s13 }
 0x920   :  { %v2734_v59 = vpop.f32.mrf.mxu1 }
 0x921   :  { %v4724_v18 = vadd.f32 %v2734_v59, %v2547_v7 }
 0x922   :  { %v2736_v9 = vpop.f32.mrf.mxu1 }
 0x923   :  { %v4726_v20 = vadd.f32 %v2736_v9, %v2547_v7  ;;  %2825 = vrot.lane.b32.xlu0 %v4702_v10, %s3292_s13  ;;  %2895 = vrot.lane.b32.xlu1 %v4691_v52, %s3291_s12 }
 0x927   :  { %2903 = vrot.lane.b32.xlu0 %v4700_v47, %s3291_s12  ;;  %2899 = vrot.lane.b32.xlu1 %v4706_v53, %s3291_s12 }
 0x92b   :  { %2831 = vrot.lane.b32.xlu0 %v4700_v47, %s3292_s13  ;;  %2823 = vrot.lane.b32.xlu1 %v4691_v52, %s3292_s13 }
 0x92f   :  { %2905 = vrot.lane.b32.xlu0 %v4704_v49, %s3291_s12  ;;  %2827 = vrot.lane.b32.xlu1 %v4706_v53, %s3292_s13 }
 0x933   :  { %2909 = vrot.lane.b32.xlu0 %v4718_v14, %s3291_s12  ;;  %2907 = vrot.lane.b32.xlu1 %v4714_v42, %s3291_s12 }
 0x937   :  { %2833 = vrot.lane.b32.xlu0 %v4704_v49, %s3292_s13  ;;  %2835 = vrot.lane.b32.xlu1 %v4714_v42, %s3292_s13 }
 0x93b   :  { %2837 = vrot.lane.b32.xlu0 %v4718_v14, %s3292_s13  ;;  %2913 = vrot.lane.b32.xlu1 %v4712_v21, %s3291_s12 }
 0x93f   :  { %2917 = vrot.lane.b32.xlu0 %v4724_v18, %s3291_s12  ;;  %2841 = vrot.lane.b32.xlu1 %v4712_v21, %s3292_s13 }
 0x943   :  { %2813 = vrot.lane.b32.xlu0 %v4681_v28, %s3292_s13  ;;  %2915 = vrot.lane.b32.xlu1 %v4716_v48, %s3291_s12 }
 0x947   :  { %2845 = vrot.lane.b32.xlu0 %v4724_v18, %s3292_s13  ;;  %2919 = vrot.lane.b32.xlu1 %v4726_v20, %s3291_s12 }
 0x94b   :  { %2817 = vrot.lane.b32.xlu0 %v4693_v38, %s3292_s13  ;;  %2843 = vrot.lane.b32.xlu1 %v4716_v48, %s3292_s13 }
 0x94f   :  { %2811 = vrot.lane.b32.xlu0 %v4678_v0, %s3292_s13  ;;  %2847 = vrot.lane.b32.xlu1 %v4726_v20, %s3292_s13 }
 0x953   :  { %2815 = vrot.lane.b32.xlu1 %v4688_v11, %s3292_s13 }
 0x957   :  { %2819 = vrot.lane.b32.xlu1 %v3223_v58, %s3292_s13 }
 0x95b   :  { %2959 = vperm.xlu1 %3200, %v2956_v37  }
 0x985   :  { %v2884_v35 = vpop.permute.xlu0 %2883 }
 0x989   :  { %v2886_v57 = vpop.permute.xlu0 %2885  ;;  %v2888_v55 = vpop.permute.xlu1 %2887 }
 0x98a   :  { %v2924_v6 = vsel %vm2488_vm13, %v2886_v57, %v2888_v55  ;;  %v2923_v59 = vsel %vm2488_vm13, %v2884_v35, %v2886_v57 }
 0x98d   :  { %v2890_v61 = vpop.permute.xlu0 %2889  ;;  %v2894_v23 = vpop.permute.xlu1 %2893 }
 0x98e   :  { %v2926_v35 = vsel %vm2488_vm13, %v2890_v61, %v4784_v26  ;;  %v2925_v57 = vsel %vm2488_vm13, %v2888_v55, %v2890_v61 }
 0x991   :  { %v2898_v41 = vpop.permute.xlu0 %2897  ;;  %v4790_v39 = vpop.permute.xlu1 %2821 }
 0x995   :  { %v4792_v12 = vpop.permute.xlu0 %2825  ;;  %v2896_v13 = vpop.permute.xlu1 %2895 }
 0x996   :  { %v2928_v33 = vsel %vm2488_vm13, %v2896_v13, %v2898_v41  ;;  %v2927_v40 = vsel %vm2488_vm13, %v2894_v23, %v2896_v13 }
 0x999   :  { %v2904_v17 = vpop.permute.xlu0 %2903  ;;  %v2900_v46 = vpop.permute.xlu1 %2899 }
 0x99a   :  { %v2930_v13 = vsel %vm2488_vm13, %v2900_v46, %v2902_v5 }
 0x99d   :  { %v2832_v50 = vpop.permute.xlu0 %2831  ;;  %v2824_v3 = vpop.permute.xlu1 %2823 }
 0x99e   :  { %v2855_v26 = vsel %vm2415_vm14, %v4790_v39, %v2824_v3 }
 0x9a1   :  { %v2906_v60 = vpop.permute.xlu0 %2905  ;;  %v4794_v1 = vpop.permute.xlu1 %2827 }
 0x9a2   :  { %v2931_v27 = vsel %vm2488_vm13, %v2904_v17, %v2906_v60  ;;  %v2929_v17 = vsel %vm2488_vm13, %v2898_v41, %v2900_v46  ;;  %v2856_v41 = vsel %vm2415_vm14, %v2824_v3, %v4792_v12  ;;  %v2858_v39 = vsel %vm2415_vm14, %v4794_v1, %v4786_v16 }
 0x9a3   :  { %v2857_v3 = vsel %vm2415_vm14, %v4792_v12, %v4794_v1 }
 0x9a5   :  { %v2910_v62 = vpop.permute.xlu0 %2909  ;;  %v2908_v56 = vpop.permute.xlu1 %2907 }
 0x9a6   :  { %v2932_v30 = vsel %vm2488_vm13, %v2906_v60, %v2908_v56  ;;  %v2934_v44 = vsel %vm2488_vm13, %v2910_v62, %v2912_v32  ;;  %v2933_v9 = vsel %vm2488_vm13, %v2908_v56, %v2910_v62 }
 0x9a9   :  { %v2834_v34 = vpop.permute.xlu0 %2833  ;;  %v4796_v45 = vpop.permute.xlu1 %2835 }
 0x9aa   :  { %v2860_v32 = vsel %vm2415_vm14, %v2834_v34, %v4796_v45  ;;  %v2859_v60 = vsel %vm2415_vm14, %v2832_v50, %v2834_v34 }
 0x9ad   :  { %v2838_v2 = vpop.permute.xlu0 %2837  ;;  %v2914_v7 = vpop.permute.xlu1 %2913 }
 0x9ae   :  { %v2862_v61 = vsel %vm2415_vm14, %v2838_v2, %v4788_v25  ;;  %v2861_v50 = vsel %vm2415_vm14, %v4796_v45, %v2838_v2 }
 0x9b1   :  { %v2918_v51 = vpop.permute.xlu0 %2917  ;;  %v2842_v36 = vpop.permute.xlu1 %2841 }
 0x9b5   :  { %v4798_v54 = vpop.permute.xlu0 %2813  ;;  %v2916_v63 = vpop.permute.xlu1 %2915 }
 0x9b6   :  { %v2935_v24 = vsel %vm2488_vm13, %v2914_v7, %v2916_v63  ;;  %v2936_v15 = vsel %vm2488_vm13, %v2916_v63, %v2918_v51 }
 0x9b7   :  { %2973 = vmatprep.subr.mxu0 %v2936_v15 }
 0x9b8   :  { %2974 = vmatpush1.msra.mxu0 %v2935_v24 }
 0x9b9   :  { %v2846_v29 = vpop.permute.xlu0 %2845  ;;  %2975 = vmatprep.subr.mxu0 %v2932_v30  ;;  %v2920_v4 = vpop.permute.xlu1 %2919 }
 0x9ba   :  { %v2937_v31 = vsel %vm2488_vm13, %v2918_v51, %v2920_v4  ;;  %2976 = vmatpush1.msra.mxu0 %v2931_v27  ;;  %v2938_v43 = vsel %vm2488_vm13, %v2920_v4, %v2922_v8 }
 0x9bb   :  { %2977 = vmatprep.subr.mxu0 %v2928_v33  ;;  %3043 = vmatprep.subr.mxu1 %v2938_v43 }
 0x9bc   :  { %2978 = vmatpush1.msra.mxu0 %v2927_v40  ;;  %3044 = vmatpush1.msra.mxu1 %v2937_v31 }
 0x9bd   :  { %2979 = vmatprep.subr.mxu0 %v2924_v6  ;;  %3045 = vmatprep.subr.mxu1 %v2934_v44  ;;  %v2844_v58 = vpop.permute.xlu1 %2843  ;;  %v2818_v37 = vpop.permute.xlu0 %2817 }
 0x9be   :  { %v2863_v8 = vsel %vm2415_vm14, %v2842_v36, %v2844_v58  ;;  %2980 = vmatpush1.msra.mxu0 %v2923_v59  ;;  %3046 = vmatpush1.msra.mxu1 %v2933_v9  ;;  %v2864_v23 = vsel %vm2415_vm14, %v2844_v58, %v2846_v29 }
 0x9bf   :  { %2981 = vmatprep.subr.mxu0 %v2864_v23  ;;  %3047 = vmatprep.subr.mxu1 %v2930_v13 }
 0x9c0   :  { %2982 = vmatpush1.msra.mxu0 %v2863_v8  ;;  %3048 = vmatpush1.msra.mxu1 %v2929_v17 }
 0x9c1   :  { %2983 = vmatprep.subr.mxu0 %v2860_v32  ;;  %3049 = vmatprep.subr.mxu1 %v2926_v35  ;;  %v2848_v62 = vpop.permute.xlu1 %2847  ;;  %v2812_v55 = vpop.permute.xlu0 %2811 }
 0x9c2   :  { %v2865_v5 = vsel %vm2415_vm14, %v2846_v29, %v2848_v62  ;;  %2984 = vmatpush1.msra.mxu0 %v2859_v60  ;;  %3050 = vmatpush1.msra.mxu1 %v2925_v57  ;;  %v2866_v46 = vsel %vm2415_vm14, %v2848_v62, %v4782_v19  ;;  %v2851_v25 = vsel %vm2415_vm14, %v2812_v55, %v4798_v54 }
 0x9c3   :  { %2985 = vmatprep.subr.mxu0 %v2856_v41  ;;  %3051 = vmatprep.subr.mxu1 %v2866_v46 }
 0x9c4   :  { %2986 = vmatpush1.msra.mxu0 %v2855_v26  ;;  %3052 = vmatpush1.msra.mxu1 %v2865_v5 }
 0x9c5   :  { %3053 = vmatprep.subr.mxu1 %v2862_v61  ;;  %v2816_v56 = vpop.permute.xlu1 %2815 }
 0x9c6   :  { %3054 = vmatpush1.msra.mxu1 %v2861_v50  ;;  %v2852_v19 = vsel %vm2415_vm14, %v4798_v54, %v2816_v56  ;;  %v2853_v16 = vsel %vm2415_vm14, %v2816_v56, %v2818_v37 }
 0x9c7   :  { %2987 = vmatprep.subr.mxu0 %v2852_v19  ;;  %3055 = vmatprep.subr.mxu1 %v2858_v39 }
 0x9c8   :  { %2988 = vmatpush1.msra.mxu0 %v2851_v25  ;;  %3056 = vmatpush1.msra.mxu1 %v2857_v3 }
 0x9c9   :  { %2989 = vmatprep.subr.mxu0 %v4716_v48  ;;  %v2820_v34 = vpop.permute.xlu1 %2819 }
 0x9ca   :  { %2990 = vmatpush1.msra.mxu0 %v4712_v21  ;;  %v2854_v45 = vsel %vm2415_vm14, %v2818_v37, %v2820_v34  ;;  %v2955_v21 = vld [vmem:[%s4886_s17] sm:$0xff]  ;;  %s3293_s17 = smov [#allocation6]  }
 0x9cb   :  { %2991 = vmatprep.subr.mxu0 %v4704_v49  ;;  %3057 = vmatprep.subr.mxu1 %v2854_v45  ;;  %s3113_s10 = sshll.u32 %s3293_s17, 4  ;;  %s3114_s10 = int_to_ptr.vmem [resolvable:$true] %s3113_s10 }
 0x9cc   :  { %2992 = vmatpush1.msra.mxu0 %v4700_v47  ;;  %3058 = vmatpush1.msra.mxu1 %v2853_v16  ;;  %s3260_s26 = scalar_lea.vmem %s3114_s10, 256  ;;  %p3265_p6 = scmp.lt.s32.totalorder %s3114_s10, %s3114_s10 }
 0x9cd   :  { %2993 = vmatprep.subr.mxu0 %v4691_v52  ;;  %3059 = vmatprep.subr.mxu1 %v4726_v20  ;;  %p3261_p5 = scmp.ne.s32.totalorder %s3114_s10, %s3260_s26  ;;  %p3266_p7 = scmp.lt.s32.totalorder %s3260_s26, %s3260_s26 }
 0x9ce   :  { %2994 = vmatpush1.msra.mxu0 %v4686_v22  ;;  %3060 = vmatpush1.msra.mxu1 %v4724_v18 }
 0x9cf   :  { %2995 = vmatprep.subr.mxu0 %v4681_v28  ;;  %3061 = vmatprep.subr.mxu1 %v4718_v14  ;;  %p3267_p8 = por %p3266_p7, %p3265_p6 }
 0x9d0   :  { %2996 = vmatpush1.msra.mxu0 %v4678_v0  ;;  %3062 = vmatpush1.msra.mxu1 %v4714_v42 }
 0x9d1   :  { %3185 = vmatmul.mubr.msk.f32.vlgmr.msra.gmra.mxu0 %vm1828_vm4, %v2955_v21  ;;  %3063 = vmatprep.subr.mxu1 %v4706_v53  ;;  %p3268_p9 = pnand %p3267_p8, %p3261_p5 }
 0x9d2   :  { %3064 = vmatpush1.msra.mxu1 %v4702_v10 }
 0x9d3   :  { %3065 = vmatprep.subr.mxu1 %v4693_v38 }
 0x9d4   :  { %3066 = vmatpush1.msra.mxu1 %v4688_v11 }
 0x9d5   :  { %3186 = vmatmul.mubr.msk.f32.vlgmr.msra.gmra.mxu1 %vm1828_vm4, %v2955_v21 }
 0x9d6   :  { %v2960_v22 = vpop.permute.xlu1 %2959 }
 0xa91   :  { %v3031_v28 = vpop.f32.mrf.mxu0 }
 0xa92   :  { %v3032_v52 = vadd.f32 %v3031_v28, %v2960_v22 }
 0xa93   :  { %v3033_v47 = vpop.f32.mrf.mxu0 }
 0xa94   :  { %3105 = vst [vmem:[#allocation6] sm:$0xff] %v3032_v52 }
 0xa95   :  { %v3101_v0 = vpop.f32.mrf.mxu1 }
 0xa96   :  { %v3102_v49 = vadd.f32 %v3101_v0, %v2960_v22 }
 0xa97   :  { %v3103_v42 = vpop.f32.mrf.mxu1 }
 0xa98   :  { %3107 = vst [vmem:[#allocation6 + $0x8] sm:$0xff] %v3102_v49 }
 0xa99   :  { %3271 = shalt.err (!%p3268_p9)
}
 0xa9a   :  { %s3294_s22 = smov 128   ;;  %s3295_s2 = smov 8  }
 0xa9b   :  { %3119 = dma.vmem_to_hbm [thread:$0]  %s3114_s10, 256, %s4888_s19, [#allocation5], %s3294_s22, %s3294_s22, %s3295_s2  }
 0xa9c   :  { %3282 = dma.done.wait [#allocation5], 256  }
 0xa9d   :  { %3283 = vsyncadd [#allocation5], 4294967040 }
 0xa9e   :  { %3123 = vsyncpa [#allocation4], 1 }
 0xa9f   :  { %3124 = vsyncpa [#allocation5], 1 }

</bundles_post_ra>
